<compile_context>
chip_gen: v7x
topology: tpu7x:2x2x1
jax: 0.10.0
libtpu: 0.0.40
codegen_flags: <defaults>
</compile_context>

<pallas_src>
import functools
import math

import jax
import jax.numpy as jnp
from jax.experimental import pallas as pl
from jax.experimental.pallas import tpu as pltpu


def _gelu_tanh(x):
    # TODO(synk): PyTorch nn.GELU() default is the exact erf form; Mosaic has no erf
    # lowering, so the tanh approximation is used (max abs deviation ~1e-3).
    c = math.sqrt(2.0 / math.pi)
    return 0.5 * x * (1.0 + jnp.tanh(c * (x + 0.044715 * x * x * x)))


def _make_intersection_kernel(num_sets, num_particles, emb, b_blk, eps=1e-12):
    S = num_sets * num_particles
    P = num_particles
    M = b_blk * S
    bf16 = jnp.bfloat16

    def kernel(x_ref, wqkv_ref, bqkv_ref, w1_ref, b1_ref, w2_ref, b2_ref,
               lnw_ref, lnb_ref, sel_ref, o_ref):
        wqkv = wqkv_ref[...]          # [E, 3E] bf16 (Q columns pre-scaled by 1/sqrt(E))
        bqkv = bqkv_ref[...]          # [1, 3E] f32
        w1 = w1_ref[...]              # [E, E]  bf16
        b1 = b1_ref[...]              # [1, E]  f32
        w2 = w2_ref[...]              # [E, E]  bf16
        b2 = b2_ref[...]              # [1, E]  f32

        def self_attention(h):
            # merged QKV projection over all B_BLK*S rows: one big MXU push,
            # bf16 operands, f32 accumulation.
            qkv = jnp.dot(h.astype(bf16), wqkv,
                          preferred_element_type=jnp.float32) + bqkv       # [M,3E] f32
            q = qkv[:, 0 * emb:1 * emb].reshape(b_blk, S, emb)
            k = qkv[:, 1 * emb:2 * emb].reshape(b_blk, S, emb)
            v = qkv[:, 2 * emb:3 * emb].reshape(b_blk, S, emb)
            # 1/sqrt(E) already folded into the Q weight/bias (parameter prep).
            scores = jax.lax.dot_general(
                q.astype(bf16), k.astype(bf16),
                (((2,), (2,)), ((0,), (0,))),
                preferred_element_type=jnp.float32)                        # [b_blk,S,S]
            m = jnp.max(scores, axis=-1, keepdims=True)
            e = jnp.exp(scores - m)
            denom = jnp.sum(e, axis=-1, keepdims=True)
            probs = e * pl.reciprocal(denom, approx=True)                  # EUP, not VALU
            ctx = jax.lax.dot_general(
                probs.astype(bf16), v.astype(bf16),
                (((2,), (1,)), ((0,), (0,))),
                preferred_element_type=jnp.float32)                        # [b_blk,S,E]
            return ctx.reshape(M, emb)

        def layer_norm(h, idx):
            g = lnw_ref[pl.ds(idx, 1), :]                                  # [1, E]
            b = lnb_ref[pl.ds(idx, 1), :]                                  # [1, E]
            u = jnp.mean(h, axis=-1, keepdims=True)
            d = h - u
            s = jnp.mean(d * d, axis=-1, keepdims=True)
            return g * (d * jax.lax.rsqrt(s + eps)) + b

        def ffn(h):
            a = jnp.dot(h.astype(bf16), w1, preferred_element_type=jnp.float32) + b1
            a = _gelu_tanh(a)
            return jnp.dot(a.astype(bf16), w2, preferred_element_type=jnp.float32) + b2

        # dropout (eval mode) == identity everywhere.
        x = x_ref[...].reshape(M, emb)     # fold B_BLK graphs into the matmul M dim
        h = self_attention(x)
        h = layer_norm(h, 0)
        h = ffn(h) + h
        h = layer_norm(h, 1)
        h = self_attention(h)
        h = layer_norm(h, 2)
        h = ffn(h) + h
        h = layer_norm(h, 3)

        # particles = flatten[:, num_sets * arange(num_particles)]:
        # 0/1 selection matmul against a precomputed grid-invariant constant
        # (exact in f32: each output row copies exactly one input row).
        h3 = h.reshape(b_blk, S, emb)
        sel = jnp.broadcast_to(sel_ref[...], (b_blk, P, S))
        out = jax.lax.dot_general(
            sel, h3, (((2,), (1,)), ((0,), (0,))),
            preferred_element_type=jnp.float32)                            # [b_blk,P,E]
        o_ref[...] = out

    return kernel


def prepare_intersection_params(params, num_sets, num_particles):
    """One-time parameter preparation (hoisted out of the per-forward wrapper)."""
    wq, bq, wk, bk, wv, bv, w1, b1, w2, b2, ln_w, ln_b = params
    emb = wq.shape[0]
    inv_sqrt_e = 1.0 / math.sqrt(emb)
    # Merge Q/K/V projections into one [E, 3E] operand; fold the 1/sqrt(E) attention
    # scale into the Q columns so the kernel never scales the [*, S, S] score tensor.
    wqkv = jnp.concatenate([wq * inv_sqrt_e, wk, wv], axis=1).astype(jnp.bfloat16)
    bqkv = jnp.concatenate([bq * inv_sqrt_e, bk, bv], axis=1).astype(jnp.float32)
    # bf16 MXU operands (f32 accumulation happens in-kernel); biases / LN params stay f32.
    w1b = w1.astype(jnp.bfloat16)
    w2b = w2.astype(jnp.bfloat16)
    b1f = b1.astype(jnp.float32)
    b2f = b2.astype(jnp.float32)
    lnw = ln_w.astype(jnp.float32)
    lnb = ln_b.astype(jnp.float32)
    # 0/1 selection matrix: out[p, :] = flatten[num_sets * p, :]
    S = num_sets * num_particles
    p_ids = jnp.arange(num_particles, dtype=jnp.int32)[:, None]
    s_ids = jnp.arange(S, dtype=jnp.int32)[None, :]
    sel = (s_ids == p_ids * num_sets).astype(jnp.float32)
    return (wqkv, bqkv, w1b, b1f, w2b, b2f, lnw, lnb, sel)


def _pick_b_blk(B, S, E, itemsize):
    # >= 256 rows per grid step feeds the 2x256x256 MXU on v6e/v7x (v5e's 4x128x128 is
    # happy with less), but cap the activation tile (double-buffered by the pipeline)
    # at a few MiB so it also fits v7x's 64 MiB physical VMEM, and keep >= 2 grid steps
    # when B >= 2 so the "parallel" batch axis can feed both v7x TensorCores.
    target_rows = 256
    b_blk = max(1, -(-target_rows // S))
    tile_budget = 4 * 1024 * 1024
    b_blk = min(b_blk, max(1, tile_budget // max(1, S * E * itemsize)))
    if B >= 2:
        b_blk = min(b_blk, -(-B // 2))
    return max(1, min(b_blk, B))


def _weight_spec(shape, single_buffer):
    index_map = lambda b: (0,) * len(shape)
    buffered = getattr(pl, "Buffered", None)
    if single_buffer and buffered is not None:
        # Grid-invariant operand: single-buffer it; the default double-buffering wastes
        # 2x VMEM on blocks whose index_map never changes.
        return pl.BlockSpec(shape, index_map, pipeline_mode=buffered(1))
    return pl.BlockSpec(shape, index_map)


def intersection_forward(particles_sets, prepared_params, *, b_blk=None,
                         single_buffer_weights=True):
    """particles_sets: [B, num_sets, num_particles, E] -> [B, num_particles, E]."""
    wqkv, bqkv, w1, b1, w2, b2, ln_w, ln_b, sel = prepared_params
    B, num_sets, P, E = particles_sets.shape
    S = num_sets * P
    x = particles_sets.reshape(B, S, E)          # keep the caller's dtype (f32 or bf16)

    if b_blk is None:
        b_blk = _pick_b_blk(B, S, E, x.dtype.itemsize)
    n_blocks = pl.cdiv(B, b_blk)
    b_pad = n_blocks * b_blk
    if b_pad != B:
        x = jnp.pad(x, ((0, b_pad - B), (0, 0), (0, 0)))

    kernel = _make_intersection_kernel(num_sets, P, E, b_blk)
    wspec = functools.partial(_weight_spec, single_buffer=single_buffer_weights)

    out = pl.pallas_call(
        kernel,
        grid=(n_blocks,),
        in_specs=[
            pl.BlockSpec((b_blk, S, E), lambda b: (b, 0, 0)),   # B_BLK graphs / step
            wspec(wqkv.shape),
            wspec(bqkv.shape),
            wspec(w1.shape),
            wspec(b1.shape),
            wspec(w2.shape),
            wspec(b2.shape),
            wspec(ln_w.shape),
            wspec(ln_b.shape),
            wspec(sel.shape),
        ],
        out_specs=pl.BlockSpec((b_blk, P, E), lambda b: (b, 0, 0)),
        out_shape=jax.ShapeDtypeStruct((b_pad, P, E), jnp.float32),
        compiler_params=pltpu.CompilerParams(
            dimension_semantics=("parallel",),
            vmem_limit_bytes=64 * 1024 * 1024),
    )(x, wqkv, bqkv, w1, b1, w2, b2, ln_w, ln_b, sel)
    return out[:B] if b_pad != B else out


# ---------------- pure-JAX reference (for a correctness check) ----------------
def intersection_reference(particles_sets, params):
    wq, bq, wk, bk, wv, bv, w1, b1, w2, b2, ln_w, ln_b = params
    B, num_sets, P, E = particles_sets.shape
    x = particles_sets.reshape(B, num_sets * P, E)
    hp = "highest"

    def attn(h):
        q = jnp.einsum("bse,ef->bsf", h, wq, precision=hp) + bq
        k = jnp.einsum("bse,ef->bsf", h, wk, precision=hp) + bk
        v = jnp.einsum("bse,ef->bsf", h, wv, precision=hp) + bv
        s = jnp.einsum("bqe,bke->bqk", q, k, precision=hp) / math.sqrt(E)
        p = jax.nn.softmax(s, axis=-1)
        return jnp.einsum("bqk,bke->bqe", p, v, precision=hp)

    def ln(h, i):
        u = jnp.mean(h, -1, keepdims=True)
        d = h - u
        s = jnp.mean(d * d, -1, keepdims=True)
        return ln_w[i] * (d / jnp.sqrt(s + 1e-12)) + ln_b[i]

    def ffn(h):
        a = _gelu_tanh(jnp.einsum("bse,ef->bsf", h, w1, precision=hp) + b1)
        return jnp.einsum("bse,ef->bsf", a, w2, precision=hp) + b2

    h = attn(x); h = ln(h, 0); h = ffn(h) + h; h = ln(h, 1)
    h = attn(h); h = ln(h, 2); h = ffn(h) + h; h = ln(h, 3)
    return h[:, ::num_sets]   # == h[:, num_sets * arange(P)]


if __name__ == "__main__":
    B = 8
    NUM_SETS = 2
    NUM_PARTICLES = 4
    EMB = 128   # embedding_size (module default 512; small for the self-test)

    key = jax.random.PRNGKey(0)
    keys = jax.random.split(key, 12)

    def init(k, shape, scale=0.05):
        return scale * jax.random.normal(k, shape, dtype=jnp.float32)

    particles_sets = jax.random.normal(
        keys[0], (B, NUM_SETS, NUM_PARTICLES, EMB), dtype=jnp.float32)

    # shared SelfAttention weights (used twice in the forward)
    wq = init(keys[1], (EMB, EMB)); bq = init(keys[2], (1, EMB))
    wk = init(keys[3], (EMB, EMB)); bk = init(keys[4], (1, EMB))
    wv = init(keys[5], (EMB, EMB)); bv = init(keys[6], (1, EMB))
    # shared FFN weights (used twice)
    w1 = init(keys[7], (EMB, EMB)); b1 = init(keys[8], (1, EMB))
    w2 = init(keys[9], (EMB, EMB)); b2 = init(keys[10], (1, EMB))
    # 4 distinct LayerNorms, stacked as [4, EMB]
    ln_w = jnp.ones((4, EMB), jnp.float32)
    ln_b = jnp.zeros((4, EMB), jnp.float32)

    params = (wq, bq, wk, bk, wv, bv, w1, b1, w2, b2, ln_w, ln_b)
    prepared = prepare_intersection_params(params, NUM_SETS, NUM_PARTICLES)

    def run(single_buffer):
        f = functools.partial(intersection_forward,
                              single_buffer_weights=single_buffer)
        return jax.block_until_ready(jax.jit(f)(particles_sets, prepared))

    try:
        out = run(True)
    except Exception:
        # Fallback if this jax build rejects pl.Buffered(1) single-buffering of the
        # grid-invariant weight blocks (a VMEM-only optimization, not a semantic one).
        out = run(False)

    assert out.shape == (B, NUM_PARTICLES, EMB) and out.dtype == jnp.float32

    ref = intersection_reference(particles_sets, params)
    # bf16 MXU operands (with f32 accumulation) vs. the "highest"-precision f32 reference:
    # error compounds through 2 attention/FFN blocks + 4 LayerNorms, so the tolerance is
    # loosened accordingly (per the review's correctness note).
    max_err = float(jnp.max(jnp.abs(out - ref)))
    assert jnp.allclose(out, ref, atol=2.5e-2, rtol=2.5e-2), f"max abs err {max_err}"

    print("KERNEL_OK")
</pallas_src>

<mosaic_0001>
module attributes {stable_mosaic.version = 11 : i64} {
  func.func @kernel(%arg0: i32, %arg1: memref<4x8x128xf32, #tpu.memory_space<vmem>>, %arg2: memref<128x384xbf16, #tpu.memory_space<vmem>>, %arg3: memref<1x384xf32, #tpu.memory_space<vmem>>, %arg4: memref<128x128xbf16, #tpu.memory_space<vmem>>, %arg5: memref<1x128xf32, #tpu.memory_space<vmem>>, %arg6: memref<128x128xbf16, #tpu.memory_space<vmem>>, %arg7: memref<1x128xf32, #tpu.memory_space<vmem>>, %arg8: memref<4x128xf32, #tpu.memory_space<vmem>>, %arg9: memref<4x128xf32, #tpu.memory_space<vmem>>, %arg10: memref<4x8xf32, #tpu.memory_space<vmem>>, %arg11: memref<4x4x128xf32, #tpu.memory_space<vmem>>) attributes {dimension_semantics = [#tpu.dimension_semantics<parallel>], iteration_bounds = array<i64: 2>, scalar_prefetch = 0 : i64, scratch_operands = 0 : i64, tpu.core_type = #tpu.core_type<tc>, window_params = [{transform_indices = @transform_0, window_bounds = array<i64: 4, 8, 128>}, {pipeline_mode = #tpu.pipeline_mode<synchronous>, transform_indices = @transform_1, window_bounds = array<i64: 128, 384>}, {pipeline_mode = #tpu.pipeline_mode<synchronous>, transform_indices = @transform_2, window_bounds = array<i64: 1, 384>}, {pipeline_mode = #tpu.pipeline_mode<synchronous>, transform_indices = @transform_3, window_bounds = array<i64: 128, 128>}, {pipeline_mode = #tpu.pipeline_mode<synchronous>, transform_indices = @transform_4, window_bounds = array<i64: 1, 128>}, {pipeline_mode = #tpu.pipeline_mode<synchronous>, transform_indices = @transform_5, window_bounds = array<i64: 128, 128>}, {pipeline_mode = #tpu.pipeline_mode<synchronous>, transform_indices = @transform_6, window_bounds = array<i64: 1, 128>}, {pipeline_mode = #tpu.pipeline_mode<synchronous>, transform_indices = @transform_7, window_bounds = array<i64: 4, 128>}, {pipeline_mode = #tpu.pipeline_mode<synchronous>, transform_indices = @transform_8, window_bounds = array<i64: 4, 128>}, {pipeline_mode = #tpu.pipeline_mode<synchronous>, transform_indices = @transform_9, window_bounds = array<i64: 4, 8>}, {transform_indices = @transform_10, window_bounds = array<i64: 4, 4, 128>}]} {
    %c0 = arith.constant 0 : index
    %c0_0 = arith.constant 0 : index
    %0 = vector.load %arg2[%c0, %c0_0] : memref<128x384xbf16, #tpu.memory_space<vmem>>, vector<128x384xbf16>
    %c0_1 = arith.constant 0 : index
    %c0_2 = arith.constant 0 : index
    %1 = vector.load %arg3[%c0_1, %c0_2] : memref<1x384xf32, #tpu.memory_space<vmem>>, vector<1x384xf32>
    %c0_3 = arith.constant 0 : index
    %c0_4 = arith.constant 0 : index
    %2 = vector.load %arg4[%c0_3, %c0_4] : memref<128x128xbf16, #tpu.memory_space<vmem>>, vector<128x128xbf16>
    %c0_5 = arith.constant 0 : index
    %c0_6 = arith.constant 0 : index
    %3 = vector.load %arg5[%c0_5, %c0_6] : memref<1x128xf32, #tpu.memory_space<vmem>>, vector<1x128xf32>
    %c0_7 = arith.constant 0 : index
    %c0_8 = arith.constant 0 : index
    %4 = vector.load %arg6[%c0_7, %c0_8] : memref<128x128xbf16, #tpu.memory_space<vmem>>, vector<128x128xbf16>
    %c0_9 = arith.constant 0 : index
    %c0_10 = arith.constant 0 : index
    %5 = vector.load %arg7[%c0_9, %c0_10] : memref<1x128xf32, #tpu.memory_space<vmem>>, vector<1x128xf32>
    %c0_11 = arith.constant 0 : index
    %c0_12 = arith.constant 0 : index
    %c0_13 = arith.constant 0 : index
    %6 = vector.load %arg1[%c0_11, %c0_12, %c0_13] : memref<4x8x128xf32, #tpu.memory_space<vmem>>, vector<4x8x128xf32>
    %7 = vector.shape_cast %6 : vector<4x8x128xf32> to vector<32x128xf32>
    %8 = arith.truncf %7 : vector<32x128xf32> to vector<32x128xbf16>
    %cst = arith.constant dense<0.000000e+00> : vector<32x384xf32>
    %9 = tpu.matmul %8, %0, %cst {dimension_numbers = #tpu.dot_dimension_numbers<[1], [0], [0], [1], [0, 0, 1, 1], [], []>} : vector<32x128xbf16>, vector<128x384xbf16>, vector<32x384xf32> -> vector<32x384xf32>
    %10 = vector.broadcast %1 : vector<1x384xf32> to vector<32x384xf32>
    %11 = arith.addf %9, %10 : vector<32x384xf32>
    %12 = vector.extract_strided_slice %11 {offsets = [0, 0], sizes = [32, 128], strides = [1, 1]} : vector<32x384xf32> to vector<32x128xf32>
    %13 = vector.shape_cast %12 : vector<32x128xf32> to vector<4x8x128xf32>
    %14 = vector.extract_strided_slice %11 {offsets = [0, 128], sizes = [32, 128], strides = [1, 1]} : vector<32x384xf32> to vector<32x128xf32>
    %15 = vector.shape_cast %14 : vector<32x128xf32> to vector<4x8x128xf32>
    %16 = vector.extract_strided_slice %11 {offsets = [0, 256], sizes = [32, 128], strides = [1, 1]} : vector<32x384xf32> to vector<32x128xf32>
    %17 = vector.shape_cast %16 : vector<32x128xf32> to vector<4x8x128xf32>
    %18 = arith.truncf %13 : vector<4x8x128xf32> to vector<4x8x128xbf16>
    %19 = arith.truncf %15 : vector<4x8x128xf32> to vector<4x8x128xbf16>
    %cst_14 = arith.constant dense<0.000000e+00> : vector<4x8x8xf32>
    %20 = tpu.matmul %18, %19, %cst_14 {dimension_numbers = #tpu.dot_dimension_numbers<[2], [2], [1], [1], [0, 0, 0, 1, 1, 1], [0], [0]>} : vector<4x8x128xbf16>, vector<4x8x128xbf16>, vector<4x8x8xf32> -> vector<4x8x8xf32>
    %cst_15 = arith.constant dense<0xFF800000> : vector<4x8xf32>
    %21 = vector.multi_reduction <maximumf>, %20, %cst_15 [2] : vector<4x8x8xf32> to vector<4x8xf32>
    %22 = vector.shape_cast %21 : vector<4x8xf32> to vector<4x8x1xf32>
    %23 = vector.broadcast %22 : vector<4x8x1xf32> to vector<4x8x8xf32>
    %24 = arith.subf %20, %23 : vector<4x8x8xf32>
    %25 = math.exp %24 : vector<4x8x8xf32>
    %cst_16 = arith.constant dense<0.000000e+00> : vector<4x8xf32>
    %26 = vector.multi_reduction <add>, %25, %cst_16 [2] : vector<4x8x8xf32> to vector<4x8xf32>
    %27 = vector.shape_cast %26 : vector<4x8xf32> to vector<4x8x1xf32>
    %28 = tpu.reciprocal %27 {approx = true} : vector<4x8x1xf32> -> vector<4x8x1xf32>
    %29 = vector.broadcast %28 : vector<4x8x1xf32> to vector<4x8x8xf32>
    %30 = arith.mulf %25, %29 : vector<4x8x8xf32>
    %31 = arith.truncf %30 : vector<4x8x8xf32> to vector<4x8x8xbf16>
    %32 = arith.truncf %17 : vector<4x8x128xf32> to vector<4x8x128xbf16>
    %cst_17 = arith.constant dense<0.000000e+00> : vector<4x8x128xf32>
    %33 = tpu.matmul %31, %32, %cst_17 {dimension_numbers = #tpu.dot_dimension_numbers<[2], [1], [1], [2], [0, 0, 0, 1, 1, 2], [0], [0]>} : vector<4x8x8xbf16>, vector<4x8x128xbf16>, vector<4x8x128xf32> -> vector<4x8x128xf32>
    %34 = vector.shape_cast %33 : vector<4x8x128xf32> to vector<32x128xf32>
    %c0_18 = arith.constant 0 : index
    %c0_19 = arith.constant 0 : index
    %35 = vector.load %arg8[%c0_18, %c0_19] : memref<4x128xf32, #tpu.memory_space<vmem>>, vector<1x128xf32>
    %c0_20 = arith.constant 0 : index
    %c0_21 = arith.constant 0 : index
    %36 = vector.load %arg9[%c0_20, %c0_21] : memref<4x128xf32, #tpu.memory_space<vmem>>, vector<1x128xf32>
    %cst_22 = arith.constant dense<0.000000e+00> : vector<32xf32>
    %37 = vector.multi_reduction <add>, %34, %cst_22 [1] : vector<32x128xf32> to vector<32xf32>
    %38 = vector.shape_cast %37 : vector<32xf32> to vector<32x1xf32>
    %cst_23 = arith.constant 1.280000e+02 : f32
    %39 = vector.broadcast %cst_23 : f32 to vector<32x1xf32>
    %40 = arith.divf %38, %39 : vector<32x1xf32>
    %41 = vector.broadcast %40 : vector<32x1xf32> to vector<32x128xf32>
    %42 = arith.subf %34, %41 : vector<32x128xf32>
    %43 = arith.mulf %42, %42 : vector<32x128xf32>
    %cst_24 = arith.constant dense<0.000000e+00> : vector<32xf32>
    %44 = vector.multi_reduction <add>, %43, %cst_24 [1] : vector<32x128xf32> to vector<32xf32>
    %45 = vector.shape_cast %44 : vector<32xf32> to vector<32x1xf32>
    %cst_25 = arith.constant 1.280000e+02 : f32
    %46 = vector.broadcast %cst_25 : f32 to vector<32x1xf32>
    %47 = arith.divf %45, %46 : vector<32x1xf32>
    %cst_26 = arith.constant 9.99999996E-13 : f32
    %48 = vector.broadcast %cst_26 : f32 to vector<32x1xf32>
    %49 = arith.addf %47, %48 : vector<32x1xf32>
    %50 = math.rsqrt %49 : vector<32x1xf32>
    %51 = vector.broadcast %50 : vector<32x1xf32> to vector<32x128xf32>
    %52 = arith.mulf %42, %51 : vector<32x128xf32>
    %53 = vector.broadcast %35 : vector<1x128xf32> to vector<32x128xf32>
    %54 = arith.mulf %53, %52 : vector<32x128xf32>
    %55 = vector.broadcast %36 : vector<1x128xf32> to vector<32x128xf32>
    %56 = arith.addf %54, %55 : vector<32x128xf32>
    %57 = arith.truncf %56 : vector<32x128xf32> to vector<32x128xbf16>
    %cst_27 = arith.constant dense<0.000000e+00> : vector<32x128xf32>
    %58 = tpu.matmul %57, %2, %cst_27 {dimension_numbers = #tpu.dot_dimension_numbers<[1], [0], [0], [1], [0, 0, 1, 1], [], []>} : vector<32x128xbf16>, vector<128x128xbf16>, vector<32x128xf32> -> vector<32x128xf32>
    %59 = vector.broadcast %3 : vector<1x128xf32> to vector<32x128xf32>
    %60 = arith.addf %58, %59 : vector<32x128xf32>
    %cst_28 = arith.constant 5.000000e-01 : f32
    %61 = vector.broadcast %cst_28 : f32 to vector<32x128xf32>
    %62 = arith.mulf %61, %60 : vector<32x128xf32>
    %cst_29 = arith.constant 4.471500e-02 : f32
    %63 = vector.broadcast %cst_29 : f32 to vector<32x128xf32>
    %64 = arith.mulf %63, %60 : vector<32x128xf32>
    %65 = arith.mulf %64, %60 : vector<32x128xf32>
    %66 = arith.mulf %65, %60 : vector<32x128xf32>
    %67 = arith.addf %60, %66 : vector<32x128xf32>
    %cst_30 = arith.constant 0.797884583 : f32
    %68 = vector.broadcast %cst_30 : f32 to vector<32x128xf32>
    %69 = arith.mulf %68, %67 : vector<32x128xf32>
    %70 = math.tanh %69 : vector<32x128xf32>
    %cst_31 = arith.constant 1.000000e+00 : f32
    %71 = vector.broadcast %cst_31 : f32 to vector<32x128xf32>
    %72 = arith.addf %71, %70 : vector<32x128xf32>
    %73 = arith.mulf %62, %72 : vector<32x128xf32>
    %74 = arith.truncf %73 : vector<32x128xf32> to vector<32x128xbf16>
    %cst_32 = arith.constant dense<0.000000e+00> : vector<32x128xf32>
    %75 = tpu.matmul %74, %4, %cst_32 {dimension_numbers = #tpu.dot_dimension_numbers<[1], [0], [0], [1], [0, 0, 1, 1], [], []>} : vector<32x128xbf16>, vector<128x128xbf16>, vector<32x128xf32> -> vector<32x128xf32>
    %76 = vector.broadcast %5 : vector<1x128xf32> to vector<32x128xf32>
    %77 = arith.addf %75, %76 : vector<32x128xf32>
    %78 = arith.addf %77, %56 : vector<32x128xf32>
    %c1 = arith.constant 1 : index
    %c0_33 = arith.constant 0 : index
    %79 = vector.load %arg8[%c1, %c0_33] : memref<4x128xf32, #tpu.memory_space<vmem>>, vector<1x128xf32>
    %c1_34 = arith.constant 1 : index
    %c0_35 = arith.constant 0 : index
    %80 = vector.load %arg9[%c1_34, %c0_35] : memref<4x128xf32, #tpu.memory_space<vmem>>, vector<1x128xf32>
    %cst_36 = arith.constant dense<0.000000e+00> : vector<32xf32>
    %81 = vector.multi_reduction <add>, %78, %cst_36 [1] : vector<32x128xf32> to vector<32xf32>
    %82 = vector.shape_cast %81 : vector<32xf32> to vector<32x1xf32>
    %cst_37 = arith.constant 1.280000e+02 : f32
    %83 = vector.broadcast %cst_37 : f32 to vector<32x1xf32>
    %84 = arith.divf %82, %83 : vector<32x1xf32>
    %85 = vector.broadcast %84 : vector<32x1xf32> to vector<32x128xf32>
    %86 = arith.subf %78, %85 : vector<32x128xf32>
    %87 = arith.mulf %86, %86 : vector<32x128xf32>
    %cst_38 = arith.constant dense<0.000000e+00> : vector<32xf32>
    %88 = vector.multi_reduction <add>, %87, %cst_38 [1] : vector<32x128xf32> to vector<32xf32>
    %89 = vector.shape_cast %88 : vector<32xf32> to vector<32x1xf32>
    %cst_39 = arith.constant 1.280000e+02 : f32
    %90 = vector.broadcast %cst_39 : f32 to vector<32x1xf32>
    %91 = arith.divf %89, %90 : vector<32x1xf32>
    %cst_40 = arith.constant 9.99999996E-13 : f32
    %92 = vector.broadcast %cst_40 : f32 to vector<32x1xf32>
    %93 = arith.addf %91, %92 : vector<32x1xf32>
    %94 = math.rsqrt %93 : vector<32x1xf32>
    %95 = vector.broadcast %94 : vector<32x1xf32> to vector<32x128xf32>
    %96 = arith.mulf %86, %95 : vector<32x128xf32>
    %97 = vector.broadcast %79 : vector<1x128xf32> to vector<32x128xf32>
    %98 = arith.mulf %97, %96 : vector<32x128xf32>
    %99 = vector.broadcast %80 : vector<1x128xf32> to vector<32x128xf32>
    %100 = arith.addf %98, %99 : vector<32x128xf32>
    %101 = arith.truncf %100 : vector<32x128xf32> to vector<32x128xbf16>
    %cst_41 = arith.constant dense<0.000000e+00> : vector<32x384xf32>
    %102 = tpu.matmul %101, %0, %cst_41 {dimension_numbers = #tpu.dot_dimension_numbers<[1], [0], [0], [1], [0, 0, 1, 1], [], []>} : vector<32x128xbf16>, vector<128x384xbf16>, vector<32x384xf32> -> vector<32x384xf32>
    %103 = vector.broadcast %1 : vector<1x384xf32> to vector<32x384xf32>
    %104 = arith.addf %102, %103 : vector<32x384xf32>
    %105 = vector.extract_strided_slice %104 {offsets = [0, 0], sizes = [32, 128], strides = [1, 1]} : vector<32x384xf32> to vector<32x128xf32>
    %106 = vector.shape_cast %105 : vector<32x128xf32> to vector<4x8x128xf32>
    %107 = vector.extract_strided_slice %104 {offsets = [0, 128], sizes = [32, 128], strides = [1, 1]} : vector<32x384xf32> to vector<32x128xf32>
    %108 = vector.shape_cast %107 : vector<32x128xf32> to vector<4x8x128xf32>
    %109 = vector.extract_strided_slice %104 {offsets = [0, 256], sizes = [32, 128], strides = [1, 1]} : vector<32x384xf32> to vector<32x128xf32>
    %110 = vector.shape_cast %109 : vector<32x128xf32> to vector<4x8x128xf32>
    %111 = arith.truncf %106 : vector<4x8x128xf32> to vector<4x8x128xbf16>
    %112 = arith.truncf %108 : vector<4x8x128xf32> to vector<4x8x128xbf16>
    %cst_42 = arith.constant dense<0.000000e+00> : vector<4x8x8xf32>
    %113 = tpu.matmul %111, %112, %cst_42 {dimension_numbers = #tpu.dot_dimension_numbers<[2], [2], [1], [1], [0, 0, 0, 1, 1, 1], [0], [0]>} : vector<4x8x128xbf16>, vector<4x8x128xbf16>, vector<4x8x8xf32> -> vector<4x8x8xf32>
    %cst_43 = arith.constant dense<0xFF800000> : vector<4x8xf32>
    %114 = vector.multi_reduction <maximumf>, %113, %cst_43 [2] : vector<4x8x8xf32> to vector<4x8xf32>
    %115 = vector.shape_cast %114 : vector<4x8xf32> to vector<4x8x1xf32>
    %116 = vector.broadcast %115 : vector<4x8x1xf32> to vector<4x8x8xf32>
    %117 = arith.subf %113, %116 : vector<4x8x8xf32>
    %118 = math.exp %117 : vector<4x8x8xf32>
    %cst_44 = arith.constant dense<0.000000e+00> : vector<4x8xf32>
    %119 = vector.multi_reduction <add>, %118, %cst_44 [2] : vector<4x8x8xf32> to vector<4x8xf32>
    %120 = vector.shape_cast %119 : vector<4x8xf32> to vector<4x8x1xf32>
    %121 = tpu.reciprocal %120 {approx = true} : vector<4x8x1xf32> -> vector<4x8x1xf32>
    %122 = vector.broadcast %121 : vector<4x8x1xf32> to vector<4x8x8xf32>
    %123 = arith.mulf %118, %122 : vector<4x8x8xf32>
    %124 = arith.truncf %123 : vector<4x8x8xf32> to vector<4x8x8xbf16>
    %125 = arith.truncf %110 : vector<4x8x128xf32> to vector<4x8x128xbf16>
    %cst_45 = arith.constant dense<0.000000e+00> : vector<4x8x128xf32>
    %126 = tpu.matmul %124, %125, %cst_45 {dimension_numbers = #tpu.dot_dimension_numbers<[2], [1], [1], [2], [0, 0, 0, 1, 1, 2], [0], [0]>} : vector<4x8x8xbf16>, vector<4x8x128xbf16>, vector<4x8x128xf32> -> vector<4x8x128xf32>
    %127 = vector.shape_cast %126 : vector<4x8x128xf32> to vector<32x128xf32>
    %c2 = arith.constant 2 : index
    %c0_46 = arith.constant 0 : index
    %128 = vector.load %arg8[%c2, %c0_46] : memref<4x128xf32, #tpu.memory_space<vmem>>, vector<1x128xf32>
    %c2_47 = arith.constant 2 : index
    %c0_48 = arith.constant 0 : index
    %129 = vector.load %arg9[%c2_47, %c0_48] : memref<4x128xf32, #tpu.memory_space<vmem>>, vector<1x128xf32>
    %cst_49 = arith.constant dense<0.000000e+00> : vector<32xf32>
    %130 = vector.multi_reduction <add>, %127, %cst_49 [1] : vector<32x128xf32> to vector<32xf32>
    %131 = vector.shape_cast %130 : vector<32xf32> to vector<32x1xf32>
    %cst_50 = arith.constant 1.280000e+02 : f32
    %132 = vector.broadcast %cst_50 : f32 to vector<32x1xf32>
    %133 = arith.divf %131, %132 : vector<32x1xf32>
    %134 = vector.broadcast %133 : vector<32x1xf32> to vector<32x128xf32>
    %135 = arith.subf %127, %134 : vector<32x128xf32>
    %136 = arith.mulf %135, %135 : vector<32x128xf32>
    %cst_51 = arith.constant dense<0.000000e+00> : vector<32xf32>
    %137 = vector.multi_reduction <add>, %136, %cst_51 [1] : vector<32x128xf32> to vector<32xf32>
    %138 = vector.shape_cast %137 : vector<32xf32> to vector<32x1xf32>
    %cst_52 = arith.constant 1.280000e+02 : f32
    %139 = vector.broadcast %cst_52 : f32 to vector<32x1xf32>
    %140 = arith.divf %138, %139 : vector<32x1xf32>
    %cst_53 = arith.constant 9.99999996E-13 : f32
    %141 = vector.broadcast %cst_53 : f32 to vector<32x1xf32>
    %142 = arith.addf %140, %141 : vector<32x1xf32>
    %143 = math.rsqrt %142 : vector<32x1xf32>
    %144 = vector.broadcast %143 : vector<32x1xf32> to vector<32x128xf32>
    %145 = arith.mulf %135, %144 : vector<32x128xf32>
    %146 = vector.broadcast %128 : vector<1x128xf32> to vector<32x128xf32>
    %147 = arith.mulf %146, %145 : vector<32x128xf32>
    %148 = vector.broadcast %129 : vector<1x128xf32> to vector<32x128xf32>
    %149 = arith.addf %147, %148 : vector<32x128xf32>
    %150 = arith.truncf %149 : vector<32x128xf32> to vector<32x128xbf16>
    %cst_54 = arith.constant dense<0.000000e+00> : vector<32x128xf32>
    %151 = tpu.matmul %150, %2, %cst_54 {dimension_numbers = #tpu.dot_dimension_numbers<[1], [0], [0], [1], [0, 0, 1, 1], [], []>} : vector<32x128xbf16>, vector<128x128xbf16>, vector<32x128xf32> -> vector<32x128xf32>
    %152 = vector.broadcast %3 : vector<1x128xf32> to vector<32x128xf32>
    %153 = arith.addf %151, %152 : vector<32x128xf32>
    %cst_55 = arith.constant 5.000000e-01 : f32
    %154 = vector.broadcast %cst_55 : f32 to vector<32x128xf32>
    %155 = arith.mulf %154, %153 : vector<32x128xf32>
    %cst_56 = arith.constant 4.471500e-02 : f32
    %156 = vector.broadcast %cst_56 : f32 to vector<32x128xf32>
    %157 = arith.mulf %156, %153 : vector<32x128xf32>
    %158 = arith.mulf %157, %153 : vector<32x128xf32>
    %159 = arith.mulf %158, %153 : vector<32x128xf32>
    %160 = arith.addf %153, %159 : vector<32x128xf32>
    %cst_57 = arith.constant 0.797884583 : f32
    %161 = vector.broadcast %cst_57 : f32 to vector<32x128xf32>
    %162 = arith.mulf %161, %160 : vector<32x128xf32>
    %163 = math.tanh %162 : vector<32x128xf32>
    %cst_58 = arith.constant 1.000000e+00 : f32
    %164 = vector.broadcast %cst_58 : f32 to vector<32x128xf32>
    %165 = arith.addf %164, %163 : vector<32x128xf32>
    %166 = arith.mulf %155, %165 : vector<32x128xf32>
    %167 = arith.truncf %166 : vector<32x128xf32> to vector<32x128xbf16>
    %cst_59 = arith.constant dense<0.000000e+00> : vector<32x128xf32>
    %168 = tpu.matmul %167, %4, %cst_59 {dimension_numbers = #tpu.dot_dimension_numbers<[1], [0], [0], [1], [0, 0, 1, 1], [], []>} : vector<32x128xbf16>, vector<128x128xbf16>, vector<32x128xf32> -> vector<32x128xf32>
    %169 = vector.broadcast %5 : vector<1x128xf32> to vector<32x128xf32>
    %170 = arith.addf %168, %169 : vector<32x128xf32>
    %171 = arith.addf %170, %149 : vector<32x128xf32>
    %c3 = arith.constant 3 : index
    %c0_60 = arith.constant 0 : index
    %172 = vector.load %arg8[%c3, %c0_60] : memref<4x128xf32, #tpu.memory_space<vmem>>, vector<1x128xf32>
    %c3_61 = arith.constant 3 : index
    %c0_62 = arith.constant 0 : index
    %173 = vector.load %arg9[%c3_61, %c0_62] : memref<4x128xf32, #tpu.memory_space<vmem>>, vector<1x128xf32>
    %cst_63 = arith.constant dense<0.000000e+00> : vector<32xf32>
    %174 = vector.multi_reduction <add>, %171, %cst_63 [1] : vector<32x128xf32> to vector<32xf32>
    %175 = vector.shape_cast %174 : vector<32xf32> to vector<32x1xf32>
    %cst_64 = arith.constant 1.280000e+02 : f32
    %176 = vector.broadcast %cst_64 : f32 to vector<32x1xf32>
    %177 = arith.divf %175, %176 : vector<32x1xf32>
    %178 = vector.broadcast %177 : vector<32x1xf32> to vector<32x128xf32>
    %179 = arith.subf %171, %178 : vector<32x128xf32>
    %180 = arith.mulf %179, %179 : vector<32x128xf32>
    %cst_65 = arith.constant dense<0.000000e+00> : vector<32xf32>
    %181 = vector.multi_reduction <add>, %180, %cst_65 [1] : vector<32x128xf32> to vector<32xf32>
    %182 = vector.shape_cast %181 : vector<32xf32> to vector<32x1xf32>
    %cst_66 = arith.constant 1.280000e+02 : f32
    %183 = vector.broadcast %cst_66 : f32 to vector<32x1xf32>
    %184 = arith.divf %182, %183 : vector<32x1xf32>
    %cst_67 = arith.constant 9.99999996E-13 : f32
    %185 = vector.broadcast %cst_67 : f32 to vector<32x1xf32>
    %186 = arith.addf %184, %185 : vector<32x1xf32>
    %187 = math.rsqrt %186 : vector<32x1xf32>
    %188 = vector.broadcast %187 : vector<32x1xf32> to vector<32x128xf32>
    %189 = arith.mulf %179, %188 : vector<32x128xf32>
    %190 = vector.broadcast %172 : vector<1x128xf32> to vector<32x128xf32>
    %191 = arith.mulf %190, %189 : vector<32x128xf32>
    %192 = vector.broadcast %173 : vector<1x128xf32> to vector<32x128xf32>
    %193 = arith.addf %191, %192 : vector<32x128xf32>
    %194 = vector.shape_cast %193 : vector<32x128xf32> to vector<4x8x128xf32>
    %c0_68 = arith.constant 0 : index
    %c0_69 = arith.constant 0 : index
    %195 = vector.load %arg10[%c0_68, %c0_69] : memref<4x8xf32, #tpu.memory_space<vmem>>, vector<4x8xf32>
    %196 = vector.shape_cast %195 : vector<4x8xf32> to vector<1x4x8xf32>
    %197 = vector.broadcast %196 : vector<1x4x8xf32> to vector<4x4x8xf32>
    %cst_70 = arith.constant dense<0.000000e+00> : vector<4x4x128xf32>
    %198 = tpu.matmul %197, %194, %cst_70 {dimension_numbers = #tpu.dot_dimension_numbers<[2], [1], [1], [2], [0, 0, 0, 1, 1, 2], [0], [0]>} : vector<4x4x8xf32>, vector<4x8x128xf32>, vector<4x4x128xf32> -> vector<4x4x128xf32>
    %c0_71 = arith.constant 0 : index
    %c0_72 = arith.constant 0 : index
    %c0_73 = arith.constant 0 : index
    %199 = vector.load %arg11[%c0_71, %c0_72, %c0_73] : memref<4x4x128xf32, #tpu.memory_space<vmem>>, vector<4x4x128xf32>
    tpu.vector_store %arg11[%c0_71, %c0_72, %c0_73], %198 {strides = array<i32>} : memref<4x4x128xf32, #tpu.memory_space<vmem>>, vector<4x4x128xf32>,
    return
  }
  func.func @transform_0(%arg0: i32) -> (i32, i32, i32) {
    %c0_i32 = arith.constant 0 : i32
    %c0_i32_0 = arith.constant 0 : i32
    %c0_i32_1 = arith.constant 0 : i32
    return %arg0, %c0_i32, %c0_i32_0 : i32, i32, i32
  }
  func.func @transform_1(%arg0: i32) -> (i32, i32) {
    %c0_i32 = arith.constant 0 : i32
    %c0_i32_0 = arith.constant 0 : i32
    %c0_i32_1 = arith.constant 0 : i32
    return %c0_i32, %c0_i32_0 : i32, i32
  }
  func.func @transform_2(%arg0: i32) -> (i32, i32) {
    %c0_i32 = arith.constant 0 : i32
    %c0_i32_0 = arith.constant 0 : i32
    %c0_i32_1 = arith.constant 0 : i32
    return %c0_i32, %c0_i32_0 : i32, i32
  }
  func.func @transform_3(%arg0: i32) -> (i32, i32) {
    %c0_i32 = arith.constant 0 : i32
    %c0_i32_0 = arith.constant 0 : i32
    %c0_i32_1 = arith.constant 0 : i32
    return %c0_i32, %c0_i32_0 : i32, i32
  }
  func.func @transform_4(%arg0: i32) -> (i32, i32) {
    %c0_i32 = arith.constant 0 : i32
    %c0_i32_0 = arith.constant 0 : i32
    %c0_i32_1 = arith.constant 0 : i32
    return %c0_i32, %c0_i32_0 : i32, i32
  }
  func.func @transform_5(%arg0: i32) -> (i32, i32) {
    %c0_i32 = arith.constant 0 : i32
    %c0_i32_0 = arith.constant 0 : i32
    %c0_i32_1 = arith.constant 0 : i32
    return %c0_i32, %c0_i32_0 : i32, i32
  }
  func.func @transform_6(%arg0: i32) -> (i32, i32) {
    %c0_i32 = arith.constant 0 : i32
    %c0_i32_0 = arith.constant 0 : i32
    %c0_i32_1 = arith.constant 0 : i32
    return %c0_i32, %c0_i32_0 : i32, i32
  }
  func.func @transform_7(%arg0: i32) -> (i32, i32) {
    %c0_i32 = arith.constant 0 : i32
    %c0_i32_0 = arith.constant 0 : i32
    %c0_i32_1 = arith.constant 0 : i32
    return %c0_i32, %c0_i32_0 : i32, i32
  }
  func.func @transform_8(%arg0: i32) -> (i32, i32) {
    %c0_i32 = arith.constant 0 : i32
    %c0_i32_0 = arith.constant 0 : i32
    %c0_i32_1 = arith.constant 0 : i32
    return %c0_i32, %c0_i32_0 : i32, i32
  }
  func.func @transform_9(%arg0: i32) -> (i32, i32) {
    %c0_i32 = arith.constant 0 : i32
    %c0_i32_0 = arith.constant 0 : i32
    %c0_i32_1 = arith.constant 0 : i32
    return %c0_i32, %c0_i32_0 : i32, i32
  }
  func.func @transform_10(%arg0: i32) -> (i32, i32, i32) {
    %c0_i32 = arith.constant 0 : i32
    %c0_i32_0 = arith.constant 0 : i32
    %c0_i32_1 = arith.constant 0 : i32
    return %arg0, %c0_i32, %c0_i32_0 : i32, i32, i32
  }
}

module attributes {stable_mosaic.version = 11 : i64} {
  func.func @kernel(%arg0: i32, %arg1: memref<4x8x128xf32, #tpu.memory_space<vmem>>, %arg2: memref<128x384xbf16, #tpu.memory_space<vmem>>, %arg3: memref<1x384xf32, #tpu.memory_space<vmem>>, %arg4: memref<128x128xbf16, #tpu.memory_space<vmem>>, %arg5: memref<1x128xf32, #tpu.memory_space<vmem>>, %arg6: memref<128x128xbf16, #tpu.memory_space<vmem>>, %arg7: memref<1x128xf32, #tpu.memory_space<vmem>>, %arg8: memref<4x128xf32, #tpu.memory_space<vmem>>, %arg9: memref<4x128xf32, #tpu.memory_space<vmem>>, %arg10: memref<4x8xf32, #tpu.memory_space<vmem>>, %arg11: memref<4x4x128xf32, #tpu.memory_space<vmem>>) attributes {dimension_semantics = [#tpu.dimension_semantics<parallel>], iteration_bounds = array<i64: 2>, scalar_prefetch = 0 : i64, scratch_operands = 0 : i64, tpu.core_type = #tpu.core_type<tc>, window_params = [{transform_indices = @transform_0, window_bounds = array<i64: 4, 8, 128>}, {pipeline_mode = #tpu.pipeline_mode<synchronous>, transform_indices = @transform_1, window_bounds = array<i64: 128, 384>}, {pipeline_mode = #tpu.pipeline_mode<synchronous>, transform_indices = @transform_2, window_bounds = array<i64: 1, 384>}, {pipeline_mode = #tpu.pipeline_mode<synchronous>, transform_indices = @transform_3, window_bounds = array<i64: 128, 128>}, {pipeline_mode = #tpu.pipeline_mode<synchronous>, transform_indices = @transform_4, window_bounds = array<i64: 1, 128>}, {pipeline_mode = #tpu.pipeline_mode<synchronous>, transform_indices = @transform_5, window_bounds = array<i64: 128, 128>}, {pipeline_mode = #tpu.pipeline_mode<synchronous>, transform_indices = @transform_6, window_bounds = array<i64: 1, 128>}, {pipeline_mode = #tpu.pipeline_mode<synchronous>, transform_indices = @transform_7, window_bounds = array<i64: 4, 128>}, {pipeline_mode = #tpu.pipeline_mode<synchronous>, transform_indices = @transform_8, window_bounds = array<i64: 4, 128>}, {pipeline_mode = #tpu.pipeline_mode<synchronous>, transform_indices = @transform_9, window_bounds = array<i64: 4, 8>}, {transform_indices = @transform_10, window_bounds = array<i64: 4, 4, 128>}]} {
    %c0 = arith.constant 0 : index
    %c0_0 = arith.constant 0 : index
    %0 = vector.load %arg2[%c0, %c0_0] : memref<128x384xbf16, #tpu.memory_space<vmem>>, vector<128x384xbf16>
    %c0_1 = arith.constant 0 : index
    %c0_2 = arith.constant 0 : index
    %1 = vector.load %arg3[%c0_1, %c0_2] : memref<1x384xf32, #tpu.memory_space<vmem>>, vector<1x384xf32>
    %c0_3 = arith.constant 0 : index
    %c0_4 = arith.constant 0 : index
    %2 = vector.load %arg4[%c0_3, %c0_4] : memref<128x128xbf16, #tpu.memory_space<vmem>>, vector<128x128xbf16>
    %c0_5 = arith.constant 0 : index
    %c0_6 = arith.constant 0 : index
    %3 = vector.load %arg5[%c0_5, %c0_6] : memref<1x128xf32, #tpu.memory_space<vmem>>, vector<1x128xf32>
    %c0_7 = arith.constant 0 : index
    %c0_8 = arith.constant 0 : index
    %4 = vector.load %arg6[%c0_7, %c0_8] : memref<128x128xbf16, #tpu.memory_space<vmem>>, vector<128x128xbf16>
    %c0_9 = arith.constant 0 : index
    %c0_10 = arith.constant 0 : index
    %5 = vector.load %arg7[%c0_9, %c0_10] : memref<1x128xf32, #tpu.memory_space<vmem>>, vector<1x128xf32>
    %c0_11 = arith.constant 0 : index
    %c0_12 = arith.constant 0 : index
    %c0_13 = arith.constant 0 : index
    %6 = vector.load %arg1[%c0_11, %c0_12, %c0_13] : memref<4x8x128xf32, #tpu.memory_space<vmem>>, vector<4x8x128xf32>
    %7 = vector.shape_cast %6 : vector<4x8x128xf32> to vector<32x128xf32>
    %8 = arith.truncf %7 : vector<32x128xf32> to vector<32x128xbf16>
    %cst = arith.constant dense<0.000000e+00> : vector<32x384xf32>
    %9 = tpu.matmul %8, %0, %cst {dimension_numbers = #tpu.dot_dimension_numbers<[1], [0], [0], [1], [0, 0, 1, 1], [], []>} : vector<32x128xbf16>, vector<128x384xbf16>, vector<32x384xf32> -> vector<32x384xf32>
    %10 = vector.broadcast %1 : vector<1x384xf32> to vector<32x384xf32>
    %11 = arith.addf %9, %10 : vector<32x384xf32>
    %12 = vector.extract_strided_slice %11 {offsets = [0, 0], sizes = [32, 128], strides = [1, 1]} : vector<32x384xf32> to vector<32x128xf32>
    %13 = vector.shape_cast %12 : vector<32x128xf32> to vector<4x8x128xf32>
    %14 = vector.extract_strided_slice %11 {offsets = [0, 128], sizes = [32, 128], strides = [1, 1]} : vector<32x384xf32> to vector<32x128xf32>
    %15 = vector.shape_cast %14 : vector<32x128xf32> to vector<4x8x128xf32>
    %16 = vector.extract_strided_slice %11 {offsets = [0, 256], sizes = [32, 128], strides = [1, 1]} : vector<32x384xf32> to vector<32x128xf32>
    %17 = vector.shape_cast %16 : vector<32x128xf32> to vector<4x8x128xf32>
    %18 = arith.truncf %13 : vector<4x8x128xf32> to vector<4x8x128xbf16>
    %19 = arith.truncf %15 : vector<4x8x128xf32> to vector<4x8x128xbf16>
    %cst_14 = arith.constant dense<0.000000e+00> : vector<4x8x8xf32>
    %20 = tpu.matmul %18, %19, %cst_14 {dimension_numbers = #tpu.dot_dimension_numbers<[2], [2], [1], [1], [0, 0, 0, 1, 1, 1], [0], [0]>} : vector<4x8x128xbf16>, vector<4x8x128xbf16>, vector<4x8x8xf32> -> vector<4x8x8xf32>
    %cst_15 = arith.constant dense<0xFF800000> : vector<4x8xf32>
    %21 = vector.multi_reduction <maximumf>, %20, %cst_15 [2] : vector<4x8x8xf32> to vector<4x8xf32>
    %22 = vector.shape_cast %21 : vector<4x8xf32> to vector<4x8x1xf32>
    %23 = vector.broadcast %22 : vector<4x8x1xf32> to vector<4x8x8xf32>
    %24 = arith.subf %20, %23 : vector<4x8x8xf32>
    %25 = math.exp %24 : vector<4x8x8xf32>
    %cst_16 = arith.constant dense<0.000000e+00> : vector<4x8xf32>
    %26 = vector.multi_reduction <add>, %25, %cst_16 [2] : vector<4x8x8xf32> to vector<4x8xf32>
    %27 = vector.shape_cast %26 : vector<4x8xf32> to vector<4x8x1xf32>
    %28 = tpu.reciprocal %27 {approx = true} : vector<4x8x1xf32> -> vector<4x8x1xf32>
    %29 = vector.broadcast %28 : vector<4x8x1xf32> to vector<4x8x8xf32>
    %30 = arith.mulf %25, %29 : vector<4x8x8xf32>
    %31 = arith.truncf %30 : vector<4x8x8xf32> to vector<4x8x8xbf16>
    %32 = arith.truncf %17 : vector<4x8x128xf32> to vector<4x8x128xbf16>
    %cst_17 = arith.constant dense<0.000000e+00> : vector<4x8x128xf32>
    %33 = tpu.matmul %31, %32, %cst_17 {dimension_numbers = #tpu.dot_dimension_numbers<[2], [1], [1], [2], [0, 0, 0, 1, 1, 2], [0], [0]>} : vector<4x8x8xbf16>, vector<4x8x128xbf16>, vector<4x8x128xf32> -> vector<4x8x128xf32>
    %34 = vector.shape_cast %33 : vector<4x8x128xf32> to vector<32x128xf32>
    %c0_18 = arith.constant 0 : index
    %c0_19 = arith.constant 0 : index
    %35 = vector.load %arg8[%c0_18, %c0_19] : memref<4x128xf32, #tpu.memory_space<vmem>>, vector<1x128xf32>
    %c0_20 = arith.constant 0 : index
    %c0_21 = arith.constant 0 : index
    %36 = vector.load %arg9[%c0_20, %c0_21] : memref<4x128xf32, #tpu.memory_space<vmem>>, vector<1x128xf32>
    %cst_22 = arith.constant dense<0.000000e+00> : vector<32xf32>
    %37 = vector.multi_reduction <add>, %34, %cst_22 [1] : vector<32x128xf32> to vector<32xf32>
    %38 = vector.shape_cast %37 : vector<32xf32> to vector<32x1xf32>
    %cst_23 = arith.constant 1.280000e+02 : f32
    %39 = vector.broadcast %cst_23 : f32 to vector<32x1xf32>
    %40 = arith.divf %38, %39 : vector<32x1xf32>
    %41 = vector.broadcast %40 : vector<32x1xf32> to vector<32x128xf32>
    %42 = arith.subf %34, %41 : vector<32x128xf32>
    %43 = arith.mulf %42, %42 : vector<32x128xf32>
    %cst_24 = arith.constant dense<0.000000e+00> : vector<32xf32>
    %44 = vector.multi_reduction <add>, %43, %cst_24 [1] : vector<32x128xf32> to vector<32xf32>
    %45 = vector.shape_cast %44 : vector<32xf32> to vector<32x1xf32>
    %cst_25 = arith.constant 1.280000e+02 : f32
    %46 = vector.broadcast %cst_25 : f32 to vector<32x1xf32>
    %47 = arith.divf %45, %46 : vector<32x1xf32>
    %cst_26 = arith.constant 9.99999996E-13 : f32
    %48 = vector.broadcast %cst_26 : f32 to vector<32x1xf32>
    %49 = arith.addf %47, %48 : vector<32x1xf32>
    %50 = math.rsqrt %49 : vector<32x1xf32>
    %51 = vector.broadcast %50 : vector<32x1xf32> to vector<32x128xf32>
    %52 = arith.mulf %42, %51 : vector<32x128xf32>
    %53 = vector.broadcast %35 : vector<1x128xf32> to vector<32x128xf32>
    %54 = arith.mulf %53, %52 : vector<32x128xf32>
    %55 = vector.broadcast %36 : vector<1x128xf32> to vector<32x128xf32>
    %56 = arith.addf %54, %55 : vector<32x128xf32>
    %57 = arith.truncf %56 : vector<32x128xf32> to vector<32x128xbf16>
    %cst_27 = arith.constant dense<0.000000e+00> : vector<32x128xf32>
    %58 = tpu.matmul %57, %2, %cst_27 {dimension_numbers = #tpu.dot_dimension_numbers<[1], [0], [0], [1], [0, 0, 1, 1], [], []>} : vector<32x128xbf16>, vector<128x128xbf16>, vector<32x128xf32> -> vector<32x128xf32>
    %59 = vector.broadcast %3 : vector<1x128xf32> to vector<32x128xf32>
    %60 = arith.addf %58, %59 : vector<32x128xf32>
    %cst_28 = arith.constant 5.000000e-01 : f32
    %61 = vector.broadcast %cst_28 : f32 to vector<32x128xf32>
    %62 = arith.mulf %61, %60 : vector<32x128xf32>
    %cst_29 = arith.constant 4.471500e-02 : f32
    %63 = vector.broadcast %cst_29 : f32 to vector<32x128xf32>
    %64 = arith.mulf %63, %60 : vector<32x128xf32>
    %65 = arith.mulf %64, %60 : vector<32x128xf32>
    %66 = arith.mulf %65, %60 : vector<32x128xf32>
    %67 = arith.addf %60, %66 : vector<32x128xf32>
    %cst_30 = arith.constant 0.797884583 : f32
    %68 = vector.broadcast %cst_30 : f32 to vector<32x128xf32>
    %69 = arith.mulf %68, %67 : vector<32x128xf32>
    %70 = math.tanh %69 : vector<32x128xf32>
    %cst_31 = arith.constant 1.000000e+00 : f32
    %71 = vector.broadcast %cst_31 : f32 to vector<32x128xf32>
    %72 = arith.addf %71, %70 : vector<32x128xf32>
    %73 = arith.mulf %62, %72 : vector<32x128xf32>
    %74 = arith.truncf %73 : vector<32x128xf32> to vector<32x128xbf16>
    %cst_32 = arith.constant dense<0.000000e+00> : vector<32x128xf32>
    %75 = tpu.matmul %74, %4, %cst_32 {dimension_numbers = #tpu.dot_dimension_numbers<[1], [0], [0], [1], [0, 0, 1, 1], [], []>} : vector<32x128xbf16>, vector<128x128xbf16>, vector<32x128xf32> -> vector<32x128xf32>
    %76 = vector.broadcast %5 : vector<1x128xf32> to vector<32x128xf32>
    %77 = arith.addf %75, %76 : vector<32x128xf32>
    %78 = arith.addf %77, %56 : vector<32x128xf32>
    %c1 = arith.constant 1 : index
    %c0_33 = arith.constant 0 : index
    %79 = vector.load %arg8[%c1, %c0_33] : memref<4x128xf32, #tpu.memory_space<vmem>>, vector<1x128xf32>
    %c1_34 = arith.constant 1 : index
    %c0_35 = arith.constant 0 : index
    %80 = vector.load %arg9[%c1_34, %c0_35] : memref<4x128xf32, #tpu.memory_space<vmem>>, vector<1x128xf32>
    %cst_36 = arith.constant dense<0.000000e+00> : vector<32xf32>
    %81 = vector.multi_reduction <add>, %78, %cst_36 [1] : vector<32x128xf32> to vector<32xf32>
    %82 = vector.shape_cast %81 : vector<32xf32> to vector<32x1xf32>
    %cst_37 = arith.constant 1.280000e+02 : f32
    %83 = vector.broadcast %cst_37 : f32 to vector<32x1xf32>
    %84 = arith.divf %82, %83 : vector<32x1xf32>
    %85 = vector.broadcast %84 : vector<32x1xf32> to vector<32x128xf32>
    %86 = arith.subf %78, %85 : vector<32x128xf32>
    %87 = arith.mulf %86, %86 : vector<32x128xf32>
    %cst_38 = arith.constant dense<0.000000e+00> : vector<32xf32>
    %88 = vector.multi_reduction <add>, %87, %cst_38 [1] : vector<32x128xf32> to vector<32xf32>
    %89 = vector.shape_cast %88 : vector<32xf32> to vector<32x1xf32>
    %cst_39 = arith.constant 1.280000e+02 : f32
    %90 = vector.broadcast %cst_39 : f32 to vector<32x1xf32>
    %91 = arith.divf %89, %90 : vector<32x1xf32>
    %cst_40 = arith.constant 9.99999996E-13 : f32
    %92 = vector.broadcast %cst_40 : f32 to vector<32x1xf32>
    %93 = arith.addf %91, %92 : vector<32x1xf32>
    %94 = math.rsqrt %93 : vector<32x1xf32>
    %95 = vector.broadcast %94 : vector<32x1xf32> to vector<32x128xf32>
    %96 = arith.mulf %86, %95 : vector<32x128xf32>
    %97 = vector.broadcast %79 : vector<1x128xf32> to vector<32x128xf32>
    %98 = arith.mulf %97, %96 : vector<32x128xf32>
    %99 = vector.broadcast %80 : vector<1x128xf32> to vector<32x128xf32>
    %100 = arith.addf %98, %99 : vector<32x128xf32>
    %101 = arith.truncf %100 : vector<32x128xf32> to vector<32x128xbf16>
    %cst_41 = arith.constant dense<0.000000e+00> : vector<32x384xf32>
    %102 = tpu.matmul %101, %0, %cst_41 {dimension_numbers = #tpu.dot_dimension_numbers<[1], [0], [0], [1], [0, 0, 1, 1], [], []>} : vector<32x128xbf16>, vector<128x384xbf16>, vector<32x384xf32> -> vector<32x384xf32>
    %103 = vector.broadcast %1 : vector<1x384xf32> to vector<32x384xf32>
    %104 = arith.addf %102, %103 : vector<32x384xf32>
    %105 = vector.extract_strided_slice %104 {offsets = [0, 0], sizes = [32, 128], strides = [1, 1]} : vector<32x384xf32> to vector<32x128xf32>
    %106 = vector.shape_cast %105 : vector<32x128xf32> to vector<4x8x128xf32>
    %107 = vector.extract_strided_slice %104 {offsets = [0, 128], sizes = [32, 128], strides = [1, 1]} : vector<32x384xf32> to vector<32x128xf32>
    %108 = vector.shape_cast %107 : vector<32x128xf32> to vector<4x8x128xf32>
    %109 = vector.extract_strided_slice %104 {offsets = [0, 256], sizes = [32, 128], strides = [1, 1]} : vector<32x384xf32> to vector<32x128xf32>
    %110 = vector.shape_cast %109 : vector<32x128xf32> to vector<4x8x128xf32>
    %111 = arith.truncf %106 : vector<4x8x128xf32> to vector<4x8x128xbf16>
    %112 = arith.truncf %108 : vector<4x8x128xf32> to vector<4x8x128xbf16>
    %cst_42 = arith.constant dense<0.000000e+00> : vector<4x8x8xf32>
    %113 = tpu.matmul %111, %112, %cst_42 {dimension_numbers = #tpu.dot_dimension_numbers<[2], [2], [1], [1], [0, 0, 0, 1, 1, 1], [0], [0]>} : vector<4x8x128xbf16>, vector<4x8x128xbf16>, vector<4x8x8xf32> -> vector<4x8x8xf32>
    %cst_43 = arith.constant dense<0xFF800000> : vector<4x8xf32>
    %114 = vector.multi_reduction <maximumf>, %113, %cst_43 [2] : vector<4x8x8xf32> to vector<4x8xf32>
    %115 = vector.shape_cast %114 : vector<4x8xf32> to vector<4x8x1xf32>
    %116 = vector.broadcast %115 : vector<4x8x1xf32> to vector<4x8x8xf32>
    %117 = arith.subf %113, %116 : vector<4x8x8xf32>
    %118 = math.exp %117 : vector<4x8x8xf32>
    %cst_44 = arith.constant dense<0.000000e+00> : vector<4x8xf32>
    %119 = vector.multi_reduction <add>, %118, %cst_44 [2] : vector<4x8x8xf32> to vector<4x8xf32>
    %120 = vector.shape_cast %119 : vector<4x8xf32> to vector<4x8x1xf32>
    %121 = tpu.reciprocal %120 {approx = true} : vector<4x8x1xf32> -> vector<4x8x1xf32>
    %122 = vector.broadcast %121 : vector<4x8x1xf32> to vector<4x8x8xf32>
    %123 = arith.mulf %118, %122 : vector<4x8x8xf32>
    %124 = arith.truncf %123 : vector<4x8x8xf32> to vector<4x8x8xbf16>
    %125 = arith.truncf %110 : vector<4x8x128xf32> to vector<4x8x128xbf16>
    %cst_45 = arith.constant dense<0.000000e+00> : vector<4x8x128xf32>
    %126 = tpu.matmul %124, %125, %cst_45 {dimension_numbers = #tpu.dot_dimension_numbers<[2], [1], [1], [2], [0, 0, 0, 1, 1, 2], [0], [0]>} : vector<4x8x8xbf16>, vector<4x8x128xbf16>, vector<4x8x128xf32> -> vector<4x8x128xf32>
    %127 = vector.shape_cast %126 : vector<4x8x128xf32> to vector<32x128xf32>
    %c2 = arith.constant 2 : index
    %c0_46 = arith.constant 0 : index
    %128 = vector.load %arg8[%c2, %c0_46] : memref<4x128xf32, #tpu.memory_space<vmem>>, vector<1x128xf32>
    %c2_47 = arith.constant 2 : index
    %c0_48 = arith.constant 0 : index
    %129 = vector.load %arg9[%c2_47, %c0_48] : memref<4x128xf32, #tpu.memory_space<vmem>>, vector<1x128xf32>
    %cst_49 = arith.constant dense<0.000000e+00> : vector<32xf32>
    %130 = vector.multi_reduction <add>, %127, %cst_49 [1] : vector<32x128xf32> to vector<32xf32>
    %131 = vector.shape_cast %130 : vector<32xf32> to vector<32x1xf32>
    %cst_50 = arith.constant 1.280000e+02 : f32
    %132 = vector.broadcast %cst_50 : f32 to vector<32x1xf32>
    %133 = arith.divf %131, %132 : vector<32x1xf32>
    %134 = vector.broadcast %133 : vector<32x1xf32> to vector<32x128xf32>
    %135 = arith.subf %127, %134 : vector<32x128xf32>
    %136 = arith.mulf %135, %135 : vector<32x128xf32>
    %cst_51 = arith.constant dense<0.000000e+00> : vector<32xf32>
    %137 = vector.multi_reduction <add>, %136, %cst_51 [1] : vector<32x128xf32> to vector<32xf32>
    %138 = vector.shape_cast %137 : vector<32xf32> to vector<32x1xf32>
    %cst_52 = arith.constant 1.280000e+02 : f32
    %139 = vector.broadcast %cst_52 : f32 to vector<32x1xf32>
    %140 = arith.divf %138, %139 : vector<32x1xf32>
    %cst_53 = arith.constant 9.99999996E-13 : f32
    %141 = vector.broadcast %cst_53 : f32 to vector<32x1xf32>
    %142 = arith.addf %140, %141 : vector<32x1xf32>
    %143 = math.rsqrt %142 : vector<32x1xf32>
    %144 = vector.broadcast %143 : vector<32x1xf32> to vector<32x128xf32>
    %145 = arith.mulf %135, %144 : vector<32x128xf32>
    %146 = vector.broadcast %128 : vector<1x128xf32> to vector<32x128xf32>
    %147 = arith.mulf %146, %145 : vector<32x128xf32>
    %148 = vector.broadcast %129 : vector<1x128xf32> to vector<32x128xf32>
    %149 = arith.addf %147, %148 : vector<32x128xf32>
    %150 = arith.truncf %149 : vector<32x128xf32> to vector<32x128xbf16>
    %cst_54 = arith.constant dense<0.000000e+00> : vector<32x128xf32>
    %151 = tpu.matmul %150, %2, %cst_54 {dimension_numbers = #tpu.dot_dimension_numbers<[1], [0], [0], [1], [0, 0, 1, 1], [], []>} : vector<32x128xbf16>, vector<128x128xbf16>, vector<32x128xf32> -> vector<32x128xf32>
    %152 = vector.broadcast %3 : vector<1x128xf32> to vector<32x128xf32>
    %153 = arith.addf %151, %152 : vector<32x128xf32>
    %cst_55 = arith.constant 5.000000e-01 : f32
    %154 = vector.broadcast %cst_55 : f32 to vector<32x128xf32>
    %155 = arith.mulf %154, %153 : vector<32x128xf32>
    %cst_56 = arith.constant 4.471500e-02 : f32
    %156 = vector.broadcast %cst_56 : f32 to vector<32x128xf32>
    %157 = arith.mulf %156, %153 : vector<32x128xf32>
    %158 = arith.mulf %157, %153 : vector<32x128xf32>
    %159 = arith.mulf %158, %153 : vector<32x128xf32>
    %160 = arith.addf %153, %159 : vector<32x128xf32>
    %cst_57 = arith.constant 0.797884583 : f32
    %161 = vector.broadcast %cst_57 : f32 to vector<32x128xf32>
    %162 = arith.mulf %161, %160 : vector<32x128xf32>
    %163 = math.tanh %162 : vector<32x128xf32>
    %cst_58 = arith.constant 1.000000e+00 : f32
    %164 = vector.broadcast %cst_58 : f32 to vector<32x128xf32>
    %165 = arith.addf %164, %163 : vector<32x128xf32>
    %166 = arith.mulf %155, %165 : vector<32x128xf32>
    %167 = arith.truncf %166 : vector<32x128xf32> to vector<32x128xbf16>
    %cst_59 = arith.constant dense<0.000000e+00> : vector<32x128xf32>
    %168 = tpu.matmul %167, %4, %cst_59 {dimension_numbers = #tpu.dot_dimension_numbers<[1], [0], [0], [1], [0, 0, 1, 1], [], []>} : vector<32x128xbf16>, vector<128x128xbf16>, vector<32x128xf32> -> vector<32x128xf32>
    %169 = vector.broadcast %5 : vector<1x128xf32> to vector<32x128xf32>
    %170 = arith.addf %168, %169 : vector<32x128xf32>
    %171 = arith.addf %170, %149 : vector<32x128xf32>
    %c3 = arith.constant 3 : index
    %c0_60 = arith.constant 0 : index
    %172 = vector.load %arg8[%c3, %c0_60] : memref<4x128xf32, #tpu.memory_space<vmem>>, vector<1x128xf32>
    %c3_61 = arith.constant 3 : index
    %c0_62 = arith.constant 0 : index
    %173 = vector.load %arg9[%c3_61, %c0_62] : memref<4x128xf32, #tpu.memory_space<vmem>>, vector<1x128xf32>
    %cst_63 = arith.constant dense<0.000000e+00> : vector<32xf32>
    %174 = vector.multi_reduction <add>, %171, %cst_63 [1] : vector<32x128xf32> to vector<32xf32>
    %175 = vector.shape_cast %174 : vector<32xf32> to vector<32x1xf32>
    %cst_64 = arith.constant 1.280000e+02 : f32
    %176 = vector.broadcast %cst_64 : f32 to vector<32x1xf32>
    %177 = arith.divf %175, %176 : vector<32x1xf32>
    %178 = vector.broadcast %177 : vector<32x1xf32> to vector<32x128xf32>
    %179 = arith.subf %171, %178 : vector<32x128xf32>
    %180 = arith.mulf %179, %179 : vector<32x128xf32>
    %cst_65 = arith.constant dense<0.000000e+00> : vector<32xf32>
    %181 = vector.multi_reduction <add>, %180, %cst_65 [1] : vector<32x128xf32> to vector<32xf32>
    %182 = vector.shape_cast %181 : vector<32xf32> to vector<32x1xf32>
    %cst_66 = arith.constant 1.280000e+02 : f32
    %183 = vector.broadcast %cst_66 : f32 to vector<32x1xf32>
    %184 = arith.divf %182, %183 : vector<32x1xf32>
    %cst_67 = arith.constant 9.99999996E-13 : f32
    %185 = vector.broadcast %cst_67 : f32 to vector<32x1xf32>
    %186 = arith.addf %184, %185 : vector<32x1xf32>
    %187 = math.rsqrt %186 : vector<32x1xf32>
    %188 = vector.broadcast %187 : vector<32x1xf32> to vector<32x128xf32>
    %189 = arith.mulf %179, %188 : vector<32x128xf32>
    %190 = vector.broadcast %172 : vector<1x128xf32> to vector<32x128xf32>
    %191 = arith.mulf %190, %189 : vector<32x128xf32>
    %192 = vector.broadcast %173 : vector<1x128xf32> to vector<32x128xf32>
    %193 = arith.addf %191, %192 : vector<32x128xf32>
    %194 = vector.shape_cast %193 : vector<32x128xf32> to vector<4x8x128xf32>
    %c0_68 = arith.constant 0 : index
    %c0_69 = arith.constant 0 : index
    %195 = vector.load %arg10[%c0_68, %c0_69] : memref<4x8xf32, #tpu.memory_space<vmem>>, vector<4x8xf32>
    %196 = vector.shape_cast %195 : vector<4x8xf32> to vector<1x4x8xf32>
    %197 = vector.broadcast %196 : vector<1x4x8xf32> to vector<4x4x8xf32>
    %cst_70 = arith.constant dense<0.000000e+00> : vector<4x4x128xf32>
    %198 = tpu.matmul %197, %194, %cst_70 {dimension_numbers = #tpu.dot_dimension_numbers<[2], [1], [1], [2], [0, 0, 0, 1, 1, 2], [0], [0]>} : vector<4x4x8xf32>, vector<4x8x128xf32>, vector<4x4x128xf32> -> vector<4x4x128xf32>
    %c0_71 = arith.constant 0 : index
    %c0_72 = arith.constant 0 : index
    %c0_73 = arith.constant 0 : index
    %199 = vector.load %arg11[%c0_71, %c0_72, %c0_73] : memref<4x4x128xf32, #tpu.memory_space<vmem>>, vector<4x4x128xf32>
    tpu.vector_store %arg11[%c0_71, %c0_72, %c0_73], %198 {strides = array<i32>} : memref<4x4x128xf32, #tpu.memory_space<vmem>>, vector<4x4x128xf32>,
    return
  }
  func.func @transform_0(%arg0: i32) -> (i32, i32, i32) {
    %c0_i32 = arith.constant 0 : i32
    %c0_i32_0 = arith.constant 0 : i32
    %c0_i32_1 = arith.constant 0 : i32
    return %arg0, %c0_i32, %c0_i32_0 : i32, i32, i32
  }
  func.func @transform_1(%arg0: i32) -> (i32, i32) {
    %c0_i32 = arith.constant 0 : i32
    %c0_i32_0 = arith.constant 0 : i32
    %c0_i32_1 = arith.constant 0 : i32
    return %c0_i32, %c0_i32_0 : i32, i32
  }
  func.func @transform_2(%arg0: i32) -> (i32, i32) {
    %c0_i32 = arith.constant 0 : i32
    %c0_i32_0 = arith.constant 0 : i32
    %c0_i32_1 = arith.constant 0 : i32
    return %c0_i32, %c0_i32_0 : i32, i32
  }
  func.func @transform_3(%arg0: i32) -> (i32, i32) {
    %c0_i32 = arith.constant 0 : i32
    %c0_i32_0 = arith.constant 0 : i32
    %c0_i32_1 = arith.constant 0 : i32
    return %c0_i32, %c0_i32_0 : i32, i32
  }
  func.func @transform_4(%arg0: i32) -> (i32, i32) {
    %c0_i32 = arith.constant 0 : i32
    %c0_i32_0 = arith.constant 0 : i32
    %c0_i32_1 = arith.constant 0 : i32
    return %c0_i32, %c0_i32_0 : i32, i32
  }
  func.func @transform_5(%arg0: i32) -> (i32, i32) {
    %c0_i32 = arith.constant 0 : i32
    %c0_i32_0 = arith.constant 0 : i32
    %c0_i32_1 = arith.constant 0 : i32
    return %c0_i32, %c0_i32_0 : i32, i32
  }
  func.func @transform_6(%arg0: i32) -> (i32, i32) {
    %c0_i32 = arith.constant 0 : i32
    %c0_i32_0 = arith.constant 0 : i32
    %c0_i32_1 = arith.constant 0 : i32
    return %c0_i32, %c0_i32_0 : i32, i32
  }
  func.func @transform_7(%arg0: i32) -> (i32, i32) {
    %c0_i32 = arith.constant 0 : i32
    %c0_i32_0 = arith.constant 0 : i32
    %c0_i32_1 = arith.constant 0 : i32
    return %c0_i32, %c0_i32_0 : i32, i32
  }
  func.func @transform_8(%arg0: i32) -> (i32, i32) {
    %c0_i32 = arith.constant 0 : i32
    %c0_i32_0 = arith.constant 0 : i32
    %c0_i32_1 = arith.constant 0 : i32
    return %c0_i32, %c0_i32_0 : i32, i32
  }
  func.func @transform_9(%arg0: i32) -> (i32, i32) {
    %c0_i32 = arith.constant 0 : i32
    %c0_i32_0 = arith.constant 0 : i32
    %c0_i32_1 = arith.constant 0 : i32
    return %c0_i32, %c0_i32_0 : i32, i32
  }
  func.func @transform_10(%arg0: i32) -> (i32, i32, i32) {
    %c0_i32 = arith.constant 0 : i32
    %c0_i32_0 = arith.constant 0 : i32
    %c0_i32_1 = arith.constant 0 : i32
    return %arg0, %c0_i32, %c0_i32_0 : i32, i32, i32
  }
}

</mosaic_0001>

<bundles_post_ra>
// kernel: intersection_forward.1
= control target key start
LH: loop header
LB: loop body
LE: loop exit
PB: predicated region body
PF: predicated region fallthrough
CT: control target
= control target key end

     0   :  { %s4776_s0 = inlined_call_operand.hbm [shape: f32[8,8,128], index: 0, kind: input, shape index: {}]   ;;  %s4777_s1 = inlined_call_operand.hbm [shape: bf16[128,384], index: 1, kind: input, shape index: {}]   ;;  %s4778_s2 = inlined_call_operand.hbm [shape: f32[1,384], index: 2, kind: input, shape index: {}]   ;;  %s4779_s3 = inlined_call_operand.hbm [shape: bf16[128,128], index: 3, kind: input, shape index: {}]   ;;  %s4780_s4 = inlined_call_operand.hbm [shape: f32[1,128], index: 4, kind: input, shape index: {}]   ;;  %s4781_s5 = inlined_call_operand.hbm [shape: bf16[128,128], index: 5, kind: input, shape index: {}]   ;;  %s4782_s6 = inlined_call_operand.hbm [shape: f32[1,128], index: 6, kind: input, shape index: {}]   ;;  %s4783_s7 = inlined_call_operand.hbm [shape: f32[4,128], index: 7, kind: input, shape index: {}]   ;;  %s4784_s8 = inlined_call_operand.hbm [shape: f32[4,128], index: 8, kind: input, shape index: {}]   ;;  %s4785_s9 = inlined_call_operand.hbm [shape: f32[4,8], index: 9, kind: input, shape index: {}]   ;;  %s4786_s10 = inlined_call_operand.hbm [shape: f32[8,4,128], index: 10, kind: output, shape index: {}]  }
   0x1   :  { %4792 = sst [smem:[#allocation28_spill]] %s4777_s1 }
   0x2   :  { %4793 = sst [smem:[#allocation29_spill]] %s4786_s10 }
   0x3   :  { %15 = vsyncpa [#allocation3], 0 }
   0x4   :  { %17 = vsyncpa [#allocation3 + $0x1], 0 }
   0x5   :  { %18 = vsyncpa [#allocation6], 0 }
   0x6   :  { %19 = vsyncpa [#allocation9], 0 }
   0x7   :  { %20 = vsyncpa [#allocation12], 0 }
   0x8   :  { %21 = vsyncpa [#allocation15], 0 }
   0x9   :  { %22 = vsyncpa [#allocation18], 0 }
   0xa   :  { %23 = vsyncpa [#allocation4], 0 }
   0xb   :  { %25 = vsyncpa [#allocation4 + $0x1], 0  ;;  %s3990_s13 = smov 0   ;;  %s3992_s14 = smov 0  }
   0xc   :  { %s3994_s15 = smov 0   ;;  %s3996_s16 = smov 0  }
   0xd LB: > { %s3913_s17 = smov [#allocation5]   ;;  %s4011_s19 = sadd.s32 4294967295, %s3911_s16   ;;  %s3911_s16 = sphi %s3996_s16, %s4823_s16   ;;  %s3907_s15 = sphi %s3994_s15, %s4822_s15   ;;  %s3903_s14 = sphi %s3992_s14, %s4821_s14   ;;  %s3899_s13 = sphi %s3990_s13, %s4820_s13  }
   0xe   : > { %s289_s18 = sshll.u32 %s3913_s17, 4  ;;  %p2836_p0 = scmp.ge.s32.totalorder %s3911_s16, 1  ;;  %s4016_s18 = int_to_ptr.vmem [resolvable:$true] %s289_s18 }
   0xf   : > { %p4789_p1 = scmp.eq.s32.totalorder %s4011_s19, 0  ;;  %p277_p2 = scmp.lt.s32.totalorder %s3911_s16, 3 }
  0x10   : > { %s3914_s21 = smov [#allocation8]   ;;  %s3915_s24 = smov [#allocation11]  }
  0x11   : > { %p4018_p3 = pnand %p2836_p0, %p277_p2  ;;  %s313_s22 = sshll.u32 %s3914_s21, 4  ;;  %s4031_s22 = int_to_ptr.vmem [resolvable:$true] %s313_s22 }
  0x12   : > { %s4033_s25 = sshll.u32 %s3915_s24, 4  ;;  %s4797_s1 = sld [smem:[#allocation28_spill]]  ;;  %s338_s25 = int_to_ptr.vmem [resolvable:$true] %s4033_s25 }
  0x13   : > { %s4794_s20 = scalar_select %p4018_p3, 1, 0 }
  0x14   : > { %p3307_p5 = pneg %p4018_p3 }
  0x15   : > { %4795 = sst [smem:[#allocation27_spill]] %s4794_s20 }
  0x16   : > { %p4027_p6 = pnand %p3307_p5, %p4789_p1 }
  0x18   : > { %s3543_s28 = scalar_lea.hbm %s4797_s1, 3072  ;;  %p4043_p8 = pneg %p4027_p6 }
  0x19   : > { %p3544_p7 = scmp.ne.s32.totalorder %s4797_s1, %s3543_s28  ;;  %p3550_p11 = scmp.lt.u32.totalorder %s3543_s28, %s4797_s1 }
  0x1b   : > { %p3546_p9 = pnand %p4043_p8, %p3544_p7 }
  0x1d   : > { %p3547_p10 = pneg %p3546_p9 }
  0x1f   : > { %p3552_p12 = pnand %p3550_p11, %p3547_p10 }
  0x21   : > { %3555 = shalt.err (!%p3552_p12)
}
  0x22   : > { %s3556_s21 = scalar_lea.vmem %s4016_s18, 3072  ;;  %p3564_p5 = scmp.lt.s32.totalorder %s4016_s18, %s4016_s18 }
  0x23   : > { %p3557_p13 = scmp.ne.s32.totalorder %s4016_s18, %s3556_s21  ;;  %p3565_p4 = scmp.lt.s32.totalorder %s3556_s21, %s3556_s21 }
  0x25   : > { %p3559_p0 = pnand %p3557_p13, %p4043_p8  ;;  %p3566_p7 = por %p3565_p4, %p3564_p5 }
  0x27   : > { %p3560_p2 = pneg %p3559_p0 }
  0x29   : > { %p3567_p9 = pnand %p3566_p7, %p3560_p2 }
  0x2b   : > { %3570 = shalt.err (!%p3567_p9)
}
  0x2c   : > { %s3916_s24 = smov 192   ;;  %s3917_s26 = smov 12  }
  0x2d   : > { %3310 = dma.hbm_to_vmem [thread:$0]  (!%p4027_p6), %s4797_s1, 3072, %s4016_s18, [#allocation6], %s3916_s24, %s3916_s24, %s3917_s26  }
  0x2e   : > { %s3571_s12 = scalar_lea.hbm %s4779_s3, 1024 }
  0x2f   : > { %p3572_p4 = scmp.ne.s32.totalorder %s4779_s3, %s3571_s12  ;;  %p3578_p12 = scmp.lt.u32.totalorder %s3571_s12, %s4779_s3 }
  0x31   : > { %p3574_p10 = pnand %p3572_p4, %p4043_p8 }
  0x33   : > { %p3575_p11 = pneg %p3574_p10 }
  0x35   : > { %p3580_p13 = pnand %p3578_p12, %p3575_p11 }
  0x37   : > { %3583 = shalt.err (!%p3580_p13)
}
  0x38   : > { %s3584_s18 = scalar_lea.vmem %s4031_s22, 1024  ;;  %p3592_p7 = scmp.lt.s32.totalorder %s4031_s22, %s4031_s22 }
  0x39   : > { %p3585_p0 = scmp.ne.s32.totalorder %s4031_s22, %s3584_s18  ;;  %p3593_p9 = scmp.lt.s32.totalorder %s3584_s18, %s3584_s18 }
  0x3b   : > { %p3587_p2 = pnand %p3585_p0, %p4043_p8  ;;  %p3594_p4 = por %p3593_p9, %p3592_p7 }
  0x3d   : > { %p3588_p5 = pneg %p3587_p2 }
  0x3f   : > { %p3595_p10 = pnand %p3594_p4, %p3588_p5 }
  0x41   : > { %3598 = shalt.err (!%p3595_p10)
}
  0x42   : > { %s3918_s10 = smov 64   ;;  %s3919_s20 = smov 4  }
  0x43   : > { %3316 = dma.hbm_to_vmem [thread:$0]  (!%p4027_p6), %s4779_s3, 1024, %s4031_s22, [#allocation9], %s3918_s10, %s3918_s10, %s3919_s20  }
  0x44   : > { %s3599_s29 = scalar_lea.hbm %s4781_s5, 1024 }
  0x45   : > { %p3600_p11 = scmp.ne.s32.totalorder %s4781_s5, %s3599_s29  ;;  %p3606_p0 = scmp.lt.u32.totalorder %s3599_s29, %s4781_s5 }
  0x47   : > { %p3602_p12 = pnand %p3600_p11, %p4043_p8 }
  0x49   : > { %p3603_p13 = pneg %p3602_p12 }
  0x4b   : > { %p3608_p2 = pnand %p3606_p0, %p3603_p13 }
  0x4d   : > { %3611 = shalt.err (!%p3608_p2)
}
  0x4e   : > { %s3612_s18 = scalar_lea.vmem %s338_s25, 1024  ;;  %p3620_p4 = scmp.lt.s32.totalorder %s338_s25, %s338_s25 }
  0x4f   : > { %p3613_p5 = scmp.ne.s32.totalorder %s338_s25, %s3612_s18  ;;  %p3621_p10 = scmp.lt.s32.totalorder %s3612_s18, %s3612_s18 }
  0x51   : > { %p3615_p7 = pnand %p3613_p5, %p4043_p8  ;;  %p3622_p1 = por %p3621_p10, %p3620_p4 }
  0x53   : > { %p3616_p9 = pneg %p3615_p7 }
  0x55   : > { %p3623_p3 = pnand %p3622_p1, %p3616_p9 }
  0x57   : > { %3626 = shalt.err (!%p3623_p3)
}
  0x58   : > { %3322 = dma.hbm_to_vmem [thread:$0]  (!%p4027_p6), %s4781_s5, 1024, %s338_s25, [#allocation12], %s3918_s10, %s3918_s10, %s3919_s20  }
  0x59   : > { %s3920_s26 = smov [#allocation14]   ;;  %s3921_s28 = smov [#allocation7]  }
  0x5a   : > { %s362_s27 = sshll.u32 %s3920_s26, 4  ;;  %s303_s29 = sshll.u32 %s3921_s28, 4  ;;  %s363_s27 = int_to_ptr.vmem [resolvable:$true] %s362_s27  ;;  %s304_s29 = int_to_ptr.vmem [resolvable:$true] %s303_s29 }
  0x5b   : > { %s3627_s17 = scalar_lea.hbm %s4783_s7, 64 }
  0x5c   : > { %p3628_p1 = scmp.ne.s32.totalorder %s4783_s7, %s3627_s17  ;;  %p3634_p12 = scmp.lt.u32.totalorder %s3627_s17, %s4783_s7 }
  0x5e   : > { %p3630_p3 = pnand %p3628_p1, %p4043_p8 }
  0x60   : > { %p3631_p11 = pneg %p3630_p3 }
  0x62   : > { %p3636_p13 = pnand %p3634_p12, %p3631_p11 }
  0x64   : > { %3639 = shalt.err (!%p3636_p13)
}
  0x65   : > { %s3640_s25 = scalar_lea.vmem %s363_s27, 64  ;;  %p3648_p7 = scmp.lt.s32.totalorder %s363_s27, %s363_s27 }
  0x66   : > { %p3641_p0 = scmp.ne.s32.totalorder %s363_s27, %s3640_s25  ;;  %p3649_p9 = scmp.lt.s32.totalorder %s3640_s25, %s3640_s25 }
  0x68   : > { %p3643_p2 = pnand %p3641_p0, %p4043_p8  ;;  %p3650_p4 = por %p3649_p9, %p3648_p7 }
  0x6a   : > { %p3644_p5 = pneg %p3643_p2 }
  0x6c   : > { %p3651_p10 = pnand %p3650_p4, %p3644_p5 }
  0x6e   : > { %3654 = shalt.err (!%p3651_p10)
}
  0x6f   : > { %3328 = dma.hbm_to_vmem [thread:$0]  (!%p4027_p6), %s4783_s7, 64, %s363_s27, [#allocation15]  }
  0x70   : > { %s3655_s26 = scalar_lea.hbm %s4778_s2, 48 }
  0x71   : > { %p3656_p1 = scmp.ne.s32.totalorder %s4778_s2, %s3655_s26  ;;  %p3662_p12 = scmp.lt.u32.totalorder %s3655_s26, %s4778_s2 }
  0x73   : > { %p3658_p3 = pnand %p3656_p1, %p4043_p8 }
  0x75   : > { %p3659_p11 = pneg %p3658_p3 }
  0x77   : > { %p3664_p13 = pnand %p3662_p12, %p3659_p11 }
  0x79   : > { %3667 = shalt.err (!%p3664_p13)
}
  0x7a   : > { %s3668_s21 = scalar_lea.vmem %s304_s29, 48  ;;  %s3675_s27 = scalar_lea.vmem %s304_s29, 64 }
  0x7b   : > { %p3669_p0 = scmp.ne.s32.totalorder %s304_s29, %s3668_s21  ;;  %p3676_p7 = scmp.lt.s32.totalorder %s304_s29, %s304_s29 }
  0x7c   : > { %p3677_p9 = scmp.lt.s32.totalorder %s3675_s27, %s3668_s21 }
  0x7d   : > { %p3671_p2 = pnand %p3669_p0, %p4043_p8 }
  0x7e   : > { %p3678_p4 = por %p3677_p9, %p3676_p7 }
  0x7f   : > { %p3672_p5 = pneg %p3671_p2 }
  0x81   : > { %p3679_p10 = pnand %p3678_p4, %p3672_p5 }
  0x83   : > { %3682 = shalt.err (!%p3679_p10)
}
  0x84   : > { %3313 = dma.hbm_to_vmem [thread:$0]  (!%p4027_p6), %s4778_s2, 48, %s304_s29, [#allocation6]  }
  0x85   : > { %s3922_s25 = smov [#allocation10]   ;;  %s3923_s20 = smov [#allocation13]  }
  0x86   : > { %s327_s10 = sshll.u32 %s3922_s25, 4  ;;  %s351_s1 = sshll.u32 %s3923_s20, 4  ;;  %s328_s10 = int_to_ptr.vmem [resolvable:$true] %s327_s10  ;;  %s352_s1 = int_to_ptr.vmem [resolvable:$true] %s351_s1 }
  0x87   : > { %s3683_s28 = scalar_lea.hbm %s4780_s4, 16 }
  0x88   : > { %p3684_p1 = scmp.ne.s32.totalorder %s4780_s4, %s3683_s28  ;;  %p3690_p12 = scmp.lt.u32.totalorder %s3683_s28, %s4780_s4 }
  0x8a   : > { %p3686_p3 = pnand %p3684_p1, %p4043_p8 }
  0x8c   : > { %p3687_p11 = pneg %p3686_p3 }
  0x8e   : > { %p3692_p13 = pnand %p3690_p12, %p3687_p11 }
  0x90   : > { %3695 = shalt.err (!%p3692_p13)
}
  0x91   : > { %s3696_s29 = scalar_lea.vmem %s328_s10, 16  ;;  %s3703_s27 = scalar_lea.vmem %s328_s10, 32 }
  0x92   : > { %p3697_p0 = scmp.ne.s32.totalorder %s328_s10, %s3696_s29  ;;  %p3704_p7 = scmp.lt.s32.totalorder %s328_s10, %s328_s10 }
  0x93   : > { %p3705_p9 = scmp.lt.s32.totalorder %s3703_s27, %s3696_s29 }
  0x94   : > { %p3699_p2 = pnand %p3697_p0, %p4043_p8 }
  0x95   : > { %p3706_p4 = por %p3705_p9, %p3704_p7 }
  0x96   : > { %p3700_p5 = pneg %p3699_p2 }
  0x98   : > { %p3707_p10 = pnand %p3706_p4, %p3700_p5 }
  0x9a   : > { %3710 = shalt.err (!%p3707_p10)
}
  0x9b   : > { %3319 = dma.hbm_to_vmem [thread:$0]  (!%p4027_p6), %s4780_s4, 16, %s328_s10, [#allocation9]  }
  0x9c   : > { %s3711_s24 = scalar_lea.hbm %s4782_s6, 16 }
  0x9d   : > { %p3712_p1 = scmp.ne.s32.totalorder %s4782_s6, %s3711_s24  ;;  %p3718_p12 = scmp.lt.u32.totalorder %s3711_s24, %s4782_s6 }
  0x9f   : > { %p3714_p3 = pnand %p3712_p1, %p4043_p8 }
  0xa1   : > { %p3715_p11 = pneg %p3714_p3 }
  0xa3   : > { %p3720_p13 = pnand %p3718_p12, %p3715_p11 }
  0xa5   : > { %3723 = shalt.err (!%p3720_p13)
}
  0xa6   : > { %s3724_s17 = scalar_lea.vmem %s352_s1, 16  ;;  %s3731_s10 = scalar_lea.vmem %s352_s1, 32 }
  0xa7   : > { %p3725_p0 = scmp.ne.s32.totalorder %s352_s1, %s3724_s17  ;;  %p3732_p7 = scmp.lt.s32.totalorder %s352_s1, %s352_s1 }
  0xa8   : > { %p3733_p9 = scmp.lt.s32.totalorder %s3731_s10, %s3724_s17 }
  0xa9   : > { %p3727_p2 = pnand %p3725_p0, %p4043_p8 }
  0xaa   : > { %p3734_p4 = por %p3733_p9, %p3732_p7 }
  0xab   : > { %p3728_p5 = pneg %p3727_p2 }
  0xad   : > { %p3735_p10 = pnand %p3734_p4, %p3728_p5 }
  0xaf   : > { %3738 = shalt.err (!%p3735_p10)
}
  0xb0   : > { %3325 = dma.hbm_to_vmem [thread:$0]  (!%p4027_p6), %s4782_s6, 16, %s352_s1, [#allocation12]  }
  0xb1   : > { %s3924_s27 = smov [#allocation16]   ;;  %s3925_s22 = smov [#allocation17]  }
  0xb2   : > { %s373_s18 = sshll.u32 %s3924_s27, 4  ;;  %s384_s25 = sshll.u32 %s3925_s22, 4  ;;  %s374_s18 = int_to_ptr.vmem [resolvable:$true] %s373_s18  ;;  %s385_s25 = int_to_ptr.vmem [resolvable:$true] %s384_s25 }
  0xb3   : > { %s3739_s26 = scalar_lea.hbm %s4784_s8, 64 }
  0xb4   : > { %p3740_p1 = scmp.ne.s32.totalorder %s4784_s8, %s3739_s26  ;;  %p3746_p12 = scmp.lt.u32.totalorder %s3739_s26, %s4784_s8 }
  0xb6   : > { %p3742_p3 = pnand %p3740_p1, %p4043_p8 }
  0xb8   : > { %p3743_p11 = pneg %p3742_p3 }
  0xba   : > { %p3748_p13 = pnand %p3746_p12, %p3743_p11 }
  0xbc   : > { %3751 = shalt.err (!%p3748_p13)
}
  0xbd   : > { %s3752_s1 = scalar_lea.vmem %s374_s18, 64  ;;  %p3760_p7 = scmp.lt.s32.totalorder %s374_s18, %s374_s18 }
  0xbe   : > { %p3753_p0 = scmp.ne.s32.totalorder %s374_s18, %s3752_s1  ;;  %p3761_p9 = scmp.lt.s32.totalorder %s3752_s1, %s3752_s1 }
  0xc0   : > { %p3755_p2 = pnand %p3753_p0, %p4043_p8  ;;  %p3762_p4 = por %p3761_p9, %p3760_p7 }
  0xc2   : > { %p3756_p5 = pneg %p3755_p2 }
  0xc4   : > { %p3763_p10 = pnand %p3762_p4, %p3756_p5 }
  0xc6   : > { %3766 = shalt.err (!%p3763_p10)
}
  0xc7   : > { %3331 = dma.hbm_to_vmem [thread:$0]  (!%p4027_p6), %s4784_s8, 64, %s374_s18, [#allocation15]  }
  0xc8   : > { %s3767_s22 = scalar_lea.hbm %s4785_s9, 64 }
  0xc9   : > { %p3768_p1 = scmp.ne.s32.totalorder %s4785_s9, %s3767_s22  ;;  %p3774_p12 = scmp.lt.u32.totalorder %s3767_s22, %s4785_s9 }
  0xcb   : > { %p3770_p3 = pnand %p3768_p1, %p4043_p8 }
  0xcd   : > { %p3771_p11 = pneg %p3770_p3 }
  0xcf   : > { %p3776_p13 = pnand %p3774_p12, %p3771_p11 }
  0xd1   : > { %3779 = shalt.err (!%p3776_p13)
}
  0xd2   : > { %s3780_s30 = scalar_lea.vmem %s385_s25, 64  ;;  %p3788_p7 = scmp.lt.s32.totalorder %s385_s25, %s385_s25 }
  0xd3   : > { %p3781_p0 = scmp.ne.s32.totalorder %s385_s25, %s3780_s30  ;;  %p3789_p9 = scmp.lt.s32.totalorder %s3780_s30, %s3780_s30 }
  0xd5   : > { %p3783_p2 = pnand %p3781_p0, %p4043_p8  ;;  %p3790_p4 = por %p3789_p9, %p3788_p7 }
  0xd7   : > { %p3784_p5 = pneg %p3783_p2 }
  0xd9   : > { %p3791_p10 = pnand %p3790_p4, %p3784_p5 }
  0xdb   : > { %3794 = shalt.err (!%p3791_p10)
}
  0xdc   : > { %3334 = dma.hbm_to_vmem [thread:$0]  (!%p4027_p6), %s4785_s9, 64, %s385_s25, [#allocation18]  }
  0xdd   : > { %s2835_s11 = sadd.s32 4294967294, %s3911_s16   ;;  %s4216_s23 = sadd.s32 1, %s3911_s16  }
  0xde   : > { %s38_s17 = sadd.s32 1, %s3907_s15  ;;  %s35_s1 = ssub.s32 %s3911_s16, %s4216_s23 }
  0xdf   : > { %p45_p8 = scmp.ne.s32.totalorder %s3907_s15, %s3903_s14  ;;  %p36_p1 = scmp.eq.s32.totalorder %s35_s1, 0 }
  0xe0   : > { %p46_p3 = scmp.eq.s32.totalorder %s3911_s16, 0  ;;  %p51_p11 = scmp.ne.s32.totalorder %s3903_s14, %s3899_s13 }
  0xe1   : > { %p264_p12 = scmp.eq.s32.totalorder %s4011_s19, 1  ;;  %p4799_p0 = scmp.eq.s32.totalorder %s4011_s19, 0 }
  0xe2   : > { %s4228_s10 = scalar_select %p36_p1, %s3907_s15, %s38_s17  }
  0xe3   : > { %p47_p13 = por %p46_p3, %p45_p8  ;;  %p4232_p2 = por %p4799_p0, %p51_p11 }
  0xe4   : > { %p4236_p6 = por %p264_p12, %p45_p8  ;;  %p270_p5 = scmp.eq.s32.totalorder %s2835_s11, 1 }
  0xe5   : > { %p3352_p7 = scmp.lt.s32.totalorder %s3911_s16, 2  ;;  %s395_s29 = sand.u32 1, %s3907_s15  }
  0xe6   : > { %s4801_s25 = scalar_select %p4236_p6, 1, 0 }
  0xe7   : > { %p4242_p9 = por %p270_p5, %p51_p11  ;;  %s2847_s22 = sshll.u32 %s395_s29, 5 }
  0xe8   : > { %s2929_s20 = sshll.u32 %s3911_s16, 9  ;;  %s399_s30 = scalar_lea.vmem [#allocation2], %s2847_s22 }
  0xe9   : > { %s4802_s27 = scalar_select %p4242_p9, 1, 0 }
  0xea   : > { %s4250_s28 = scalar_lea.hbm %s4776_s0, %s2929_s20  ;;  %s406_s18 = sshll.u32 %s399_s30, 4  ;;  %s4256_s18 = int_to_ptr.vmem [resolvable:$true] %s406_s18 }
  0xeb   : > { %p4252_p4 = pnand %p3352_p7, %p47_p13  ;;  %s4258_s11 = scalar_lea.sflag [#allocation3], %s395_s29 }
  0xec   : > { %s3795_s17 = scalar_lea.hbm %s4250_s28, 512  ;;  %s3800_s20 = scalar_lea.hbm %s4776_s0, 1024 }
  0xed   : > { %p3796_p10 = scmp.ne.s32.totalorder %s4250_s28, %s3795_s17  ;;  %p3797_p8 = pneg %p4252_p4 }
  0xee   : > { %p3801_p11 = scmp.lt.u32.totalorder %s4250_s28, %s4776_s0  ;;  %p3802_p12 = scmp.lt.u32.totalorder %s3800_s20, %s3795_s17 }
  0xef   : > { %p3798_p1 = pnand %p3797_p8, %p3796_p10  ;;  %p3804_p0 = scmp.lt.u32.totalorder %s3795_s17, %s4250_s28 }
  0xf0   : > { %p3803_p13 = por %p3802_p12, %p3801_p11 }
  0xf1   : > { %p3799_p3 = pneg %p3798_p1 }
  0xf2   : > { %p3805_p5 = por %p3804_p0, %p3803_p13 }
  0xf4   : > { %p3806_p7 = pnand %p3805_p5, %p3799_p3 }
  0xf6   : > { %3809 = shalt.err (!%p3806_p7)
}
  0xf7   : > { %s3810_s29 = scalar_lea.vmem %s4256_s18, 512  ;;  %s3926_s30 = smov [#allocation2]  }
  0xf8   : > { %p3811_p10 = scmp.ne.s32.totalorder %s4256_s18, %s3810_s29  ;;  %s3815_s1 = sshll.u32 %s3926_s30, 4  ;;  %s3816_s1 = int_to_ptr.vmem [resolvable:$false] %s3815_s1 }
  0xf9   : > { %s3817_s22 = scalar_lea.vmem %s3816_s1, 1024  ;;  %p3818_p6 = scmp.lt.s32.totalorder %s4256_s18, %s3816_s1 }
  0xfa   : > { %p3813_p1 = pnand %p3811_p10, %p3797_p8  ;;  %p3819_p11 = scmp.lt.s32.totalorder %s3817_s22, %s3810_s29 }
  0xfc   : > { %p3814_p9 = pneg %p3813_p1  ;;  %p3820_p12 = por %p3819_p11, %p3818_p6 }
  0xfe   : > { %p3821_p13 = pnand %p3820_p12, %p3814_p9 }
 0x100   : > { %3824 = shalt.err (!%p3821_p13)
}
 0x101   : > { %s3927_s17 = smov 128   ;;  %s3928_s20 = smov 8  }
 0x102   : > { %3338 = dma.hbm_to_vmem [thread:$0]  (!%p4252_p4), %s4250_s28, 512, %s4256_s18, %s4258_s11, %s3927_s17, %s3927_s17, %s3928_s20  }
 0x103   : > { %s4804_s24 = sld [smem:[#allocation27_spill]] }
 0x109   : > { %p4805_p8 = scmp.ne.s32.totalorder %s4804_s24, 0 }
 0x10a   : > { %s4289_s26 = sand.u32 (!%p4805_p8), 1, %s3903_s14  }
 0x10b   : > { %418 = sbr.rel (%p4805_p8) target bundleno = 4684 (0x124c), region = 60  ;;  %s2851_s29 = sshll.u32 (!%p4805_p8), %s4289_s26, 5 }
 0x10c   : > { %s421_s30 = scalar_lea.sflag (!%p4805_p8), [#allocation3], %s4289_s26  ;;  %s4293_s1 = scalar_lea.vmem (!%p4805_p8), [#allocation2], %s2851_s29 }
 0x112   : > { %3870 = dma.done.wait (%p4232_p2), %s421_s30, 512  }
 0x113   : > { %3872 = vsyncadd (%p4232_p2), %s421_s30, 4294966784  ;;  %p4806_p6 = scmp.eq.s32.totalorder %s4011_s19, 0 }
 0x115   : > { %3874 = dma.done.wait (%p4806_p6), [#allocation6], 3120   ;;  %p4807_p9 = pmov %p4806_p6 }
 0x116   : > { %p4808_p4 = pmov %p4806_p6 }
 0x117   : > { %3876 = vsyncadd (%p4807_p9), [#allocation6], 4294964176 }
 0x118   : > { %3878 = dma.done.wait (%p4808_p4), [#allocation9], 1040   ;;  %p4809_p3 = pmov %p4808_p4 }
 0x11a   : > { %3880 = vsyncadd (%p4809_p3), [#allocation9], 4294966256  ;;  %p4810_p0 = pmov %p4809_p3 }
 0x11c   : > { %3882 = dma.done.wait (%p4810_p0), [#allocation12], 1040   ;;  %p4811_p5 = pmov %p4810_p0 }
 0x11d   : > { %p4812_p2 = pmov %p4810_p0 }
 0x11e   : > { %3884 = vsyncadd (%p4811_p5), [#allocation12], 4294966256 }
 0x11f   : > { %3886 = dma.done.wait (%p4812_p2), [#allocation15], 128   ;;  %p4813_p7 = pmov %p4810_p0 }
 0x120   : > { %p4814_p10 = pmov %p4810_p0 }
 0x121   : > { %3888 = vsyncadd (%p4813_p7), [#allocation15], 4294967168 }
 0x122   : > { %3890 = dma.done.wait (%p4814_p10), [#allocation18], 64   ;;  %p4815_p1 = pmov %p4810_p0 }
 0x123   : > { %v3929_v0 = vmov 0   ;;  %v4320_v1 = vld [vmem:[#allocation5 + $0x4] ss:$12 sps:$4 sm:$0xff]   ;;  %v4322_v2 = vld [vmem:[#allocation5] ss:$12 sps:$4 sm:$0xff]   ;;  %v570_v28 = vld [vmem:[%s4293_s1 + $0x18] sm:$0xff]  ;;  %v574_v32 = vlaneseq }
 0x124   : > { %3892 = vsyncadd (%p4815_p1), [#allocation18], 4294967232  ;;  %749 = vmatprep.mubr.bf16.mxu0 %v3929_v0  ;;  %717 = vmatprep.subr.bf16.mxu0 %v4320_v1  ;;  %v4325_v3 = vld [vmem:[#allocation5 + $0x1c] ss:$12 sps:$4 sm:$0xff]   ;;  %v4328_v4 = vld [vmem:[#allocation5 + $0x18] ss:$12 sps:$4 sm:$0xff]  }
 0x125   : > { %718 = vmatpush1.bf16.msra.mxu0 %v4322_v2  ;;  %v4331_v5 = vld [vmem:[#allocation5 + $0x34] ss:$12 sps:$4 sm:$0xff]   ;;  %v4334_v6 = vld [vmem:[#allocation5 + $0x30] ss:$12 sps:$4 sm:$0xff]   ;;  %v4337_v7 = vld [vmem:[#allocation5 + $0x4c] ss:$12 sps:$4 sm:$0xff]  }
 0x126   : > { %719 = vmatprep.subr.bf16.mxu0 %v4325_v3  ;;  %v567_v8 = vld [vmem:[%s4293_s1] sm:$0xff]  ;;  %v4341_v9 = vld [vmem:[#allocation5 + $0x48] ss:$12 sps:$4 sm:$0xff]   ;;  %v4370_v20 = vld [vmem:[#allocation5 + $0x50] ss:$12 sps:$4 sm:$0xff]   ;;  %v3930_v31 = vmov 0.0  }
 0x127   : > { %v4343_v10 = vld [vmem:[#allocation5 + $0x64] ss:$12 sps:$4 sm:$0xff]   ;;  %v568_v11 = vld [vmem:[%s4293_s1 + $0x8] sm:$0xff]  ;;  %v4365_v19 = vld [vmem:[#allocation5 + $0x94] ss:$12 sps:$4 sm:$0xff]   ;;  %vm3931_vm0 = vmmov 0  }
 0x128   : > { %v571_v12 = vpack.c.bf16 %v568_v11, %v567_v8  ;;  %v4347_v13 = vld [vmem:[#allocation5 + $0x8] ss:$12 sps:$4 sm:$0xff]   ;;  %v4349_v14 = vld [vmem:[#allocation5 + $0x20] ss:$12 sps:$4 sm:$0xff]   ;;  %v4360_v17 = vld [vmem:[#allocation5 + $0x38] ss:$12 sps:$4 sm:$0xff]  }
 0x129   : > { %720 = vmatpush1.bf16.msra.mxu0 %v4328_v4  ;;  %v4351_v15 = vld [vmem:[#allocation5 + $0x60] ss:$12 sps:$4 sm:$0xff]   ;;  %3031 = vmatprep.subr.bf16.mxu1 %v4347_v13  ;;  %v4355_v16 = vld [vmem:[#allocation5 + $0x7c] ss:$12 sps:$4 sm:$0xff]   ;;  %v4362_v18 = vld [vmem:[#allocation5 + $0x78] ss:$12 sps:$4 sm:$0xff]  }
 0x12a   : > { %721 = vmatprep.subr.bf16.mxu0 %v4331_v5  ;;  %3047 = vmatprep.mubr.bf16.mxu1 %v571_v12  ;;  %v4372_v21 = vld [vmem:[#allocation5 + $0x90] ss:$12 sps:$4 sm:$0xff]   ;;  %v4374_v22 = vld [vmem:[#allocation5 + $0xac] ss:$12 sps:$4 sm:$0xff]   ;;  %v4376_v23 = vld [vmem:[#allocation5 + $0x68] ss:$12 sps:$4 sm:$0xff]  }
 0x12b   : > { %3032 = vmatpush3.bf16.msra.mxu1 %v4347_v13  ;;  %v4382_v24 = vld [vmem:[#allocation5 + $0xa8] ss:$12 sps:$4 sm:$0xff]   ;;  %v4384_v25 = vld [vmem:[#allocation5 + $0x80] ss:$12 sps:$4 sm:$0xff]   ;;  %v4393_v26 = vld [vmem:[#allocation5 + $0x98] ss:$12 sps:$4 sm:$0xff]  }
 0x12c   : > { %3033 = vmatprep.subr.bf16.mxu1 %v4349_v14  ;;  %v569_v27 = vld [vmem:[%s4293_s1 + $0x10] sm:$0xff]  ;;  %v575_v33 = vshrl.u32 %v574_v32, 7  ;;  %v532_v35 = vld [vmem:[#allocation7] sm:$0x7]  ;;  %vm1043_vm1 = vcmask 1043456   ;;  %vm987_vm2 = vcmask 64512  }
 0x12d   : > { %722 = vmatpush1.bf16.msra.mxu0 %v4334_v6  ;;  %v4400_v29 = vld [vmem:[#allocation5 + $0xb0] ss:$12 sps:$4 sm:$0xff]   ;;  %v572_v30 = vpack.c.bf16 %v570_v28, %v569_v27  ;;  %s2861_s21 = sshll.u32 %s4289_s26, 4  ;;  %s2930_s12 = sshll.u32 %s4011_s19, 8 }
 0x12e   : > { %723 = vmatprep.subr.bf16.mxu0 %v4337_v7  ;;  %v580_v34 = vsub.s32 1, %v575_v33  ;;  %v576_v37 = vsub.s32 0, %v575_v33  ;;  %v584_v47 = vsub.s32 2, %v575_v33  ;;  %s496_s28 = scalar_lea.vmem [#allocation19], %s2861_s21  ;;  %s4816_s17 = sld [smem:[#allocation29_spill]] }
 0x12f   : > { %3034 = vmatpush3.bf16.msra.mxu1 %v4349_v14  ;;  %s2676_s18 = sshll.u32 %s496_s28, 4  ;;  %s2663_s19 = scalar_lea.sflag [#allocation4], %s4289_s26  ;;  %s4727_s18 = int_to_ptr.vmem [resolvable:$true] %s2676_s18 }
 0x130   : > { %3035 = vmatprep.subr.bf16.mxu1 %v4360_v17  ;;  %v4411_v36 = vrot.slane %v532_v35, %v580_v34  ;;  %v4414_v42 = vrot.slane %v532_v35, %v576_v37  ;;  %v4422_v54 = vrot.slane %v532_v35, %v584_v47  ;;  %s3825_s24 = scalar_lea.vmem %s4727_s18, 256  ;;  %p4817_p12 = scmp.ne.s32.totalorder %s4801_s25, 0 }
 0x131   : > { %724 = vmatpush1.bf16.msra.mxu0 %v4341_v9  ;;  %p3826_p11 = scmp.ne.s32.totalorder %s4727_s18, %s3825_s24  ;;  %s3932_s29 = smov [#allocation19]  }
 0x132   : > { %725 = vmatprep.subr.bf16.mxu0 %v4343_v10  ;;  %s3829_s30 = sshll.u32 %s3932_s29, 4  ;;  %s3830_s30 = int_to_ptr.vmem [resolvable:$false] %s3829_s30 }
 0x133   : > { %3036 = vmatpush3.bf16.msra.mxu1 %v4360_v17  ;;  %p3827_p13 = pnand %p3826_p11, %p4817_p12  ;;  %s3831_s1 = scalar_lea.vmem %s3830_s30, 512 }
 0x134   : > { %3037 = vmatprep.subr.bf16.mxu1 %v4370_v20  ;;  %s4732_s20 = scalar_lea.hbm %s4816_s17, %s2930_s12  ;;  %p3832_p6 = scmp.lt.s32.totalorder %s4727_s18, %s3830_s30 }
 0x135   : > { %726 = vmatpush1.bf16.msra.mxu0 %v4351_v15  ;;  %p3828_p8 = pneg %p3827_p13  ;;  %p3833_p9 = scmp.lt.s32.totalorder %s3831_s1, %s3825_s24 }
 0x136   : > { %727 = vmatprep.subr.bf16.mxu0 %v4355_v16 }
 0x137   : > { %3038 = vmatpush3.bf16.msra.mxu1 %v4370_v20  ;;  %p3834_p4 = por %p3833_p9, %p3832_p6 }
 0x138   : > { %3039 = vmatprep.subr.bf16.mxu1 %v4376_v23 }
 0x139   : > { %728 = vmatpush1.bf16.msra.mxu0 %v4362_v18  ;;  %p3835_p3 = pnand %p3834_p4, %p3828_p8 }
 0x13a   : > { %729 = vmatprep.subr.bf16.mxu0 %v4365_v19 }
 0x13b   : > { %3040 = vmatpush3.bf16.msra.mxu1 %v4376_v23 }
 0x13c   : > { %3041 = vmatprep.subr.bf16.mxu1 %v4384_v25 }
 0x13d   : > { %730 = vmatpush1.bf16.msra.mxu0 %v4372_v21 }
 0x13e   : > { %731 = vmatprep.subr.bf16.mxu0 %v4374_v22 }
 0x13f   : > { %3042 = vmatpush3.bf16.msra.mxu1 %v4384_v25 }
 0x140   : > { %3043 = vmatprep.subr.bf16.mxu1 %v4393_v26 }
 0x141   : > { %732 = vmatpush1.bf16.msra.mxu0 %v4382_v24 }
 0x142   : > { %3057 = vmatprep.subr.bf16.mxu0 %v3930_v31 }
 0x143   : > { %3044 = vmatpush3.bf16.msra.mxu1 %v4393_v26 }
 0x144   : > { %750 = vmatmul.mubr.bf16.vlgmr.msra.gmra.mrb[0].mxu0 %v571_v12  ;;  %3045 = vmatprep.subr.bf16.mxu1 %v4400_v29 }
 0x145   : > { %759 = vmatprep.mubr.bf16.mxu0 %v3929_v0 }
 0x147   : > { %3046 = vmatpush3.bf16.msra.mxu1 %v4400_v29 }
 0x148   : > { %3051 = vmatprep.subr.bf16.mxu1 %v3930_v31 }
 0x14a   : > { %3048 = vmatmul.mubr.bf16.vlgmr.msra.gmra.mrb[0].mxu1 %v572_v30 }
 0x14b   : > { %3053 = vmatprep.mubr.msk.bf16.mxu1 %vm3931_vm0, %v3930_v31 }
 0x14c   : > { %760 = vmatmul.mubr.bf16.gmra.mrb[4].mxu0 %v572_v30 }
 0x14d   : > { %3059 = vmatprep.mubr.msk.bf16.mxu0 %vm3931_vm0, %v3930_v31 }
 0x217   : > { %v751_v38 = vpop.f32.mrb[0].mxu0 }
 0x218   : > { %v753_v39 = vpop.f32.mrb[1].mxu0  ;;  %v752_v48 = vadd.f32 %v751_v38, %v4414_v42 }
 0x219   : > { %v754_v40 = vadd.f32 %v753_v39, %v4411_v36  ;;  %v755_v41 = vpop.f32.mrb[2].mxu0 }
 0x21a   : > { %v757_v43 = vpop.f32.mrb[3].mxu0  ;;  %v756_v50 = vadd.f32 %v755_v41, %v4414_v42  ;;  %v819_v55 = vpack.c.bf16 %v752_v48, %v752_v48 }
 0x21b   : > { %v823_v44 = vpack.c.bf16 %v754_v40, %v754_v40  ;;  %v758_v45 = vadd.f32 %v757_v43, %v4411_v36 }
 0x21c   : > { %v820_v60 = vpack.c.bf16 %v756_v50, %v756_v50 }
 0x21d   : > { %v824_v46 = vpack.c.bf16 %v758_v45, %v758_v45  ;;  %3052 = vmatpush3.bf16.xpose.msra.mxu1 %v823_v44  ;;  %v4425_v59 = vpop.f32.mrb[0].mxu1 }
 0x21e   : > { %3063 = vmatprep.subr.bf16.mxu1 %v3930_v31  ;;  %v804_v61 = vpop.f32.mrb[1].mxu1 }
 0x21f   : > { %v761_v49 = vpop.f32.mrb[4].mxu0  ;;  %3058 = vmatpush3.bf16.xpose.msra.mxu0 %v824_v46  ;;  %v805_v63 = vadd.f32 %v804_v61, %v4422_v54  ;;  %v4430_v8 = vpop.f32.mrb[2].mxu1 }
 0x220   : > { %v763_v51 = vpop.f32.mrb[5].mxu0  ;;  %3069 = vmatprep.subr.bf16.mxu0 %v3930_v31  ;;  %v762_v11 = vadd.f32 %v761_v49, %v4414_v42  ;;  %v807_v12 = vpop.f32.mrb[3].mxu1 }
 0x221   : > { %v764_v52 = vadd.f32 %v763_v51, %v4411_v36  ;;  %v765_v53 = vpop.f32.mrb[6].mxu0  ;;  %v1036_v27 = vpack.c.bf16 %v805_v63, %v805_v63  ;;  %v808_v28 = vadd.f32 %v807_v12, %v4422_v54 }
 0x222   : > { %v767_v56 = vpop.f32.mrb[7].mxu0  ;;  %v766_v30 = vadd.f32 %v765_v53, %v4414_v42  ;;  %v821_v33 = vpack.c.bf16 %v762_v11, %v762_v11 }
 0x223   : > { %v825_v57 = vpack.c.bf16 %v764_v52, %v764_v52  ;;  %v768_v58 = vadd.f32 %v767_v56, %v4411_v36  ;;  %v1037_v32 = vpack.c.bf16 %v808_v28, %v808_v28  ;;  %v1045_v34 = vsel %vm1043_vm1, %v1036_v27, 0 }
 0x224   : > { %3054 = vmatmul.mubr.bf16.vlgmr.msra.gmra.mrb[4].mxu1 %v819_v55  ;;  %v822_v35 = vpack.c.bf16 %v766_v30, %v766_v30 }
 0x225   : > { %v826_v62 = vpack.c.bf16 %v768_v58, %v768_v58  ;;  %3064 = vmatpush3.bf16.xpose.msra.mxu1 %v825_v57  ;;  %3065 = vmatprep.mubr.msk.bf16.mxu1 %vm3931_vm0, %v3930_v31  ;;  %v1091_v37 = vsel %vm1043_vm1, %v1037_v32, 0 }
 0x226   : > { %3060 = vmatmul.mubr.bf16.vlgmr.msra.gmra.mrb[8].mxu0 %v820_v60  ;;  %3075 = vmatprep.subr.bf16.mxu1 %v3930_v31 }
 0x227   : > { %3070 = vmatpush3.bf16.xpose.msra.mxu0 %v826_v62  ;;  %3071 = vmatprep.mubr.msk.bf16.mxu0 %vm3931_vm0, %v3930_v31 }
 0x228   : > { %3081 = vmatprep.subr.bf16.mxu0 %v3930_v31 }
 0x22c   : > { %3066 = vmatmul.mubr.bf16.vlgmr.msra.gmra.mrb[8].mxu1 %v821_v33 }
 0x22d   : > { %3076 = vmatpush3.bf16.msra.mxu1 %v1045_v34  ;;  %3077 = vmatprep.mubr.msk.bf16.mxu1 %vm3931_vm0, %v3930_v31 }
 0x22e   : > { %3072 = vmatmul.mubr.bf16.vlgmr.msra.gmra.mrb[12].mxu0 %v822_v35  ;;  %3087 = vmatprep.subr.bf16.mxu1 %v3930_v31 }
 0x22f   : > { %3082 = vmatpush3.bf16.msra.mxu0 %v1091_v37  ;;  %3083 = vmatprep.mubr.msk.bf16.mxu0 %vm3931_vm0, %v3930_v31 }
 0x230   : > { %3093 = vmatprep.subr.bf16.mxu0 %v3930_v31 }
 0x2f7   : > { %v861_v38 = vpop.f32.mrb[4].mxu1 }
 0x2f8   : > { %v3055_v39 = vpop.f32.mrb[5].mxu1  ;;  %v988_v40 = vsel %vm987_vm2, %v861_v38, -inf }
 0x2f9   : > { %v901_v41 = vpop.f32.mrb[8].mxu0  ;;  %989 = vmax.xlane.f32.xlu0 %v988_v40  ;;  %v864_v43 = vpop.f32.mrb[6].mxu1 }
 0x2fa   : > { %v3056_v44 = vpop.f32.mrb[7].mxu1  ;;  %v3061_v45 = vpop.f32.mrb[9].mxu0  ;;  %v991_v48 = vsel %vm987_vm2, %v901_v41, -inf }
 0x2fb   : > { %v904_v46 = vpop.f32.mrb[10].mxu0 }
 0x2fc   : > { %v3062_v47 = vpop.f32.mrb[11].mxu0 }
 0x2fd   : > { %992 = vmax.xlane.f32.xlu0 %v991_v48  ;;  %v813_v48 = vadd.f32 %v4425_v59, %v4422_v54 }
 0x2ff   : > { %v941_v49 = vpop.f32.mrb[8].mxu1 }
 0x300   : > { %v3067_v50 = vpop.f32.mrb[9].mxu1  ;;  %v994_v51 = vsel %vm987_vm2, %v941_v49, -inf }
 0x301   : > { %v981_v52 = vpop.f32.mrb[12].mxu0  ;;  %995 = vmax.xlane.f32.xlu1 %v994_v51  ;;  %v944_v53 = vpop.f32.mrb[10].mxu1  ;;  %v1038_v51 = vpack.c.bf16 %v813_v48, %v813_v48 }
 0x302   : > { %v3068_v55 = vpop.f32.mrb[11].mxu1  ;;  %v3073_v56 = vpop.f32.mrb[13].mxu0  ;;  %v997_v60 = vsel %vm987_vm2, %v981_v52, -inf }
 0x303   : > { %v984_v57 = vpop.f32.mrb[14].mxu0 }
 0x304   : > { %v3074_v58 = vpop.f32.mrb[15].mxu0 }
 0x305   : > { %998 = vmax.xlane.f32.xlu1 %v997_v60  ;;  %v1137_v58 = vsel %vm1043_vm1, %v1038_v51, 0 }
 0x386   : > { %v990_v61 = vpop.xlane.xlu0 %989 }
 0x387   : > { %v1000_v62 = vsub.f32 %v861_v38, %v990_v61 }
 0x389   : > { %v1004_v63 = vmul.f32 1.442695, %v1000_v62 }
 0x38a   : > { %v993_v11 = vpop.xlane.xlu0 %992 }
 0x38b   : > { %3463 = vpow2.f32 %v1004_v63  ;;  %v1001_v12 = vsub.f32 %v901_v41, %v993_v11 }
 0x38d   : > { %v1006_v27 = vmul.f32 1.442695, %v1001_v12 }
 0x38e   : > { %v996_v28 = vpop.xlane.xlu1 %995 }
 0x38f   : > { %3465 = vpow2.f32 %v1006_v27  ;;  %v1002_v30 = vsub.f32 %v941_v49, %v996_v28 }
 0x391   : > { %v1008_v32 = vmul.f32 1.442695, %v1002_v30 }
 0x392   : > { %v999_v33 = vpop.xlane.xlu1 %998 }
 0x393   : > { %3467 = vpow2.f32 %v1008_v32  ;;  %v1003_v34 = vsub.f32 %v981_v52, %v999_v33  ;;  %v816_v52 = vadd.f32 %v4430_v8, %v4422_v54 }
 0x395   : > { %v3464_v35 = vpop.eup %3463  ;;  %v1010_v37 = vmul.f32 1.442695, %v1003_v34  ;;  %v1039_v60 = vpack.c.bf16 %v816_v52, %v816_v52 }
 0x396   : > { %v1012_v39 = vsel %vm987_vm2, %v3464_v35, 0.0 }
 0x397   : > { %3469 = vpow2.f32 %v1010_v37  ;;  %1013 = vadd.xlane.f32.xlu0 %v1012_v39  ;;  %v1183_v63 = vsel %vm1043_vm1, %v1039_v60, 0 }
 0x399   : > { %v3466_v40 = vpop.eup %3465 }
 0x39a   : > { %v1015_v38 = vsel %vm987_vm2, %v3466_v40, 0.0 }
 0x39b   : > { %1016 = vadd.xlane.f32.xlu1 %v1015_v38 }
 0x39d   : > { %v3468_v43 = vpop.eup %3467 }
 0x39e   : > { %v1018_v41 = vsel %vm987_vm2, %v3468_v43, 0.0 }
 0x39f   : > { %1019 = vadd.xlane.f32.xlu0 %v1018_v41 }
 0x3a1   : > { %v3470_v44 = vpop.eup %3469 }
 0x3a2   : > { %v1021_v45 = vsel %vm987_vm2, %v3470_v44, 0.0 }
 0x3a3   : > { %1022 = vadd.xlane.f32.xlu1 %v1021_v45 }
 0x424   : > { %v1014_v46 = vpop.xlane.xlu0 %1013 }
 0x425   : > { %3471 = vrcp.f32 %v1014_v46 }
 0x428   : > { %v1017_v47 = vpop.xlane.xlu1 %1016 }
 0x429   : > { %3473 = vrcp.f32 %v1017_v47 }
 0x42c   : > { %v1020_v49 = vpop.xlane.xlu0 %1019 }
 0x42d   : > { %3475 = vrcp.f32 %v1020_v49 }
 0x42f   : > { %v3472_v50 = vpop.eup %3471 }
 0x430   : > { %v1028_v53 = vmul.f32 %v3472_v50, %v3464_v35  ;;  %v1023_v55 = vpop.xlane.xlu1 %1022 }
 0x431   : > { %3477 = vrcp.f32 %v1023_v55 }
 0x432   : > { %v1032_v56 = vpack.c.bf16 %v1028_v53, %v1028_v53 }
 0x433   : > { %v3474_v57 = vpop.eup %3473 }
 0x434   : > { %v1029_v61 = vmul.f32 %v3474_v57, %v3466_v40  ;;  %3078 = vmatmul.mubr.msk.bf16.vlgmr.msra.gmra.mrb[12].mxu1 %vm987_vm2, %v1032_v56 }
 0x435   : > { %3088 = vmatpush3.bf16.msra.mxu1 %v1137_v58  ;;  %3089 = vmatprep.mubr.msk.bf16.mxu1 %vm3931_vm0, %v3930_v31 }
 0x436   : > { %v1033_v59 = vpack.c.bf16 %v1029_v61, %v1029_v61 }
 0x437   : > { %v3476_v62 = vpop.eup %3475 }
 0x438   : > { %v1030_v8 = vmul.f32 %v3476_v62, %v3468_v43  ;;  %3084 = vmatmul.mubr.msk.bf16.vlgmr.msra.gmra.mrb[16].mxu0 %vm987_vm2, %v1033_v59 }
 0x439   : > { %3094 = vmatpush3.bf16.msra.mxu0 %v1183_v63  ;;  %3095 = vmatprep.mubr.msk.bf16.mxu0 %vm3931_vm0, %v3930_v31 }
 0x43a   : > { %v1034_v11 = vpack.c.bf16 %v1030_v8, %v1030_v8 }
 0x43b   : > { %v3478_v12 = vpop.eup %3477 }
 0x43c   : > { %v1031_v27 = vmul.f32 %v3478_v12, %v3470_v44  ;;  %3090 = vmatmul.mubr.msk.bf16.vlgmr.msra.gmra.mrb[16].mxu1 %vm987_vm2, %v1034_v11  ;;  %v4469_v12 = vld [vmem:[#allocation8] sm:$0xff]  }
 0x43d   : > { %3099 = vmatprep.subr.bf16.mxu1 %v4469_v12 }
 0x43e   : > { %v1035_v28 = vpack.c.bf16 %v1031_v27, %v1031_v27  ;;  %3100 = vmatpush3.bf16.msra.mxu1 %v4469_v12  ;;  %v4473_v27 = vld [vmem:[#allocation8 + $0x8] sm:$0xff]  }
 0x43f   : > { %3101 = vmatprep.subr.bf16.mxu1 %v4473_v27 }
 0x440   : > { %3096 = vmatmul.mubr.msk.bf16.vlgmr.msra.gmra.mrb[20].mxu0 %vm987_vm2, %v1035_v28  ;;  %v4477_v28 = vld [vmem:[#allocation8 + $0x10] sm:$0xff]  }
 0x442   : > { %3102 = vmatpush3.bf16.msra.mxu1 %v4473_v27 }
 0x443   : > { %3103 = vmatprep.subr.bf16.mxu1 %v4477_v28 }
 0x446   : > { %3104 = vmatpush3.bf16.msra.mxu1 %v4477_v28 }
 0x507   : > { %v1081_v30 = vpop.f32.mrb[12].mxu1 }
 0x508   : > { %1227 = vadd.xlane.f32.xlu0 %v1081_v30  ;;  %v3079_v32 = vpop.f32.mrb[13].mxu1 }
 0x509   : > { %v1084_v33 = vpop.f32.mrb[14].mxu1  ;;  %v4485_v32 = vld [vmem:[#allocation8 + $0x20] sm:$0xff]  }
 0x50a   : > { %v3080_v34 = vpop.f32.mrb[15].mxu1  ;;  %v4489_v33 = vld [vmem:[#allocation8 + $0x28] sm:$0xff]  }
 0x50b   : > { %v1127_v35 = vpop.f32.mrb[16].mxu0  ;;  %v4493_v34 = vld [vmem:[#allocation8 + $0x30] sm:$0xff]  }
 0x50c   : > { %1229 = vadd.xlane.f32.xlu1 %v1127_v35  ;;  %v3085_v37 = vpop.f32.mrb[17].mxu0 }
 0x50d   : > { %v1130_v39 = vpop.f32.mrb[18].mxu0 }
 0x50e   : > { %v3086_v40 = vpop.f32.mrb[19].mxu0 }
 0x50f   : > { %v1173_v38 = vpop.f32.mrb[16].mxu1 }
 0x510   : > { %1231 = vadd.xlane.f32.xlu0 %v1173_v38  ;;  %v3091_v43 = vpop.f32.mrb[17].mxu1 }
 0x511   : > { %v1176_v41 = vpop.f32.mrb[18].mxu1 }
 0x512   : > { %v3092_v44 = vpop.f32.mrb[19].mxu1 }
 0x513   : > { %v1219_v45 = vpop.f32.mrb[20].mxu0 }
 0x514   : > { %1233 = vadd.xlane.f32.xlu1 %v1219_v45  ;;  %v3097_v46 = vpop.f32.mrb[21].mxu0 }
 0x515   : > { %v1222_v47 = vpop.f32.mrb[22].mxu0 }
 0x516   : > { %v3098_v48 = vpop.f32.mrb[23].mxu0 }
 0x595   : > { %v1228_v49 = vpop.xlane.xlu0 %1227 }
 0x596   : > { %v1236_v50 = vmul.f32 0.0078125, %v1228_v49 }
 0x598   : > { %v1240_v51 = vsub.f32 %v1081_v30, %v1236_v50  ;;  %v4481_v30 = vld [vmem:[#allocation8 + $0x18] sm:$0xff]  }
 0x599   : > { %v1230_v52 = vpop.xlane.xlu1 %1229  ;;  %3105 = vmatprep.subr.bf16.mxu1 %v4481_v30 }
 0x59a   : > { %v1237_v53 = vmul.f32 0.0078125, %v1230_v52  ;;  %v1244_v55 = vmul.f32 %v1240_v51, %v1240_v51  ;;  %3106 = vmatpush3.bf16.msra.mxu1 %v4481_v30 }
 0x59b   : > { %3107 = vmatprep.subr.bf16.mxu1 %v4485_v32 }
 0x59c   : > { %v1241_v56 = vsub.f32 %v1127_v35, %v1237_v53  ;;  %1248 = vadd.xlane.f32.xlu0 %v1244_v55  ;;  %v4495_v35 = vld [vmem:[#allocation8 + $0x38] sm:$0xff]   ;;  %v2890_v53 = vld [vmem:[#allocation14] ss:$0 sm:$0xff] }
 0x59d   : > { %v1232_v57 = vpop.xlane.xlu0 %1231 }
 0x59e   : > { %v1238_v58 = vmul.f32 0.0078125, %v1232_v57  ;;  %v1245_v60 = vmul.f32 %v1241_v56, %v1241_v56  ;;  %3108 = vmatpush3.bf16.msra.mxu1 %v4485_v32 }
 0x59f   : > { %3109 = vmatprep.subr.bf16.mxu1 %v4489_v33 }
 0x5a0   : > { %v1242_v61 = vsub.f32 %v1173_v38, %v1238_v58  ;;  %1250 = vadd.xlane.f32.xlu1 %v1245_v60  ;;  %v2891_v58 = vld [vmem:[#allocation16] ss:$0 sm:$0xff] }
 0x5a1   : > { %v1234_v59 = vpop.xlane.xlu1 %1233 }
 0x5a2   : > { %v1239_v62 = vmul.f32 0.0078125, %v1234_v59  ;;  %v1246_v63 = vmul.f32 %v1242_v61, %v1242_v61  ;;  %3110 = vmatpush3.bf16.msra.mxu1 %v4489_v33 }
 0x5a3   : > { %3111 = vmatprep.subr.bf16.mxu1 %v4493_v34 }
 0x5a4   : > { %v1243_v8 = vsub.f32 %v1219_v45, %v1239_v62  ;;  %1252 = vadd.xlane.f32.xlu0 %v1246_v63 }
 0x5a6   : > { %v1247_v11 = vmul.f32 %v1243_v8, %v1243_v8  ;;  %3112 = vmatpush3.bf16.msra.mxu1 %v4493_v34 }
 0x5a7   : > { %3113 = vmatprep.subr.bf16.mxu1 %v4495_v35 }
 0x5a8   : > { %1254 = vadd.xlane.f32.xlu1 %v1247_v11 }
 0x5aa   : > { %3114 = vmatpush3.bf16.msra.mxu1 %v4495_v35 }
 0x5ab   : > { %1602 = vmatprep.subr.bf16.mxu1 %v4320_v1 }
 0x629   : > { %v1249_v37 = vpop.xlane.xlu0 %1248 }
 0x62a   : > { %v1256_v39 = vmul.f32 0.0078125, %v1249_v37 }
 0x62c   : > { %v1260_v40 = vadd.f32 1e-12, %v1256_v39 }
 0x62d   : > { %v1251_v38 = vpop.xlane.xlu1 %1250 }
 0x62e   : > { %3479 = vrsqrt.f32 %v1260_v40  ;;  %v1257_v43 = vmul.f32 0.0078125, %v1251_v38 }
 0x630   : > { %v1261_v41 = vadd.f32 1e-12, %v1257_v43 }
 0x631   : > { %v1253_v44 = vpop.xlane.xlu0 %1252 }
 0x632   : > { %3481 = vrsqrt.f32 %v1261_v41  ;;  %v1258_v45 = vmul.f32 0.0078125, %v1253_v44 }
 0x634   : > { %v1262_v46 = vadd.f32 1e-12, %v1258_v45 }
 0x635   : > { %v1255_v47 = vpop.xlane.xlu1 %1254 }
 0x636   : > { %3483 = vrsqrt.f32 %v1262_v46  ;;  %v1259_v48 = vmul.f32 0.0078125, %v1255_v47 }
 0x638   : > { %v3480_v49 = vpop.eup %3479  ;;  %v1263_v50 = vadd.f32 1e-12, %v1259_v48 }
 0x639   : > { %v1268_v52 = vmul.f32 %v3480_v49, %v1240_v51 }
 0x63a   : > { %3485 = vrsqrt.f32 %v1263_v50 }
 0x63b   : > { %v1276_v57 = vmul.f32 %v2890_v53, %v1268_v52 }
 0x63c   : > { %v3482_v1 = vpop.eup %3481 }
 0x63d   : > { %v1269_v55 = vmul.f32 %v3482_v1, %v1241_v56  ;;  %v4502_v63 = vadd.f32 %v2891_v58, %v1276_v57 }
 0x63f   : > { %v1277_v60 = vmul.f32 %v2890_v53, %v1269_v55 }
 0x640   : > { %v3484_v59 = vpop.eup %3483 }
 0x641   : > { %v1270_v62 = vmul.f32 %v3484_v59, %v1242_v61  ;;  %v4504_v11 = vadd.f32 %v2891_v58, %v1277_v60 }
 0x643   : > { %v1288_v37 = vpack.c.bf16 %v4504_v11, %v4502_v63  ;;  %v1278_v51 = vmul.f32 %v2890_v53, %v1270_v62 }
 0x644   : > { %v3486_v39 = vpop.eup %3485 }
 0x645   : > { %v1271_v40 = vmul.f32 %v3486_v39, %v1243_v8  ;;  %3115 = vmatprep.mubr.bf16.mxu1 %v1288_v37  ;;  %v4508_v43 = vadd.f32 %v2891_v58, %v1278_v51 }
 0x647   : > { %v1279_v38 = vmul.f32 %v2890_v53, %v1271_v40 }
 0x649   : > { %v4510_v56 = vadd.f32 %v2891_v58, %v1279_v38 }
 0x64b   : > { %v1289_v41 = vpack.c.bf16 %v4510_v56, %v4508_v43 }
 0x64d   : > { %3116 = vmatmul.mubr.bf16.vlgmr.msra.gmra.mrb[20].mxu1 %v1289_v41 }
 0x64e   : > { %1603 = vmatpush1.bf16.msra.mxu1 %v4322_v2  ;;  %1634 = vmatprep.mubr.bf16.mxu1 %v3929_v0  ;;  %v4531_v2 = vld [vmem:[#allocation11] sm:$0xff]  }
 0x64f   : > { %1604 = vmatprep.subr.bf16.mxu1 %v4325_v3  ;;  %3119 = vmatprep.subr.bf16.mxu0 %v4531_v2  ;;  %v4535_v3 = vld [vmem:[#allocation11 + $0x8] sm:$0xff]  }
 0x650   : > { %3120 = vmatpush3.bf16.msra.mxu0 %v4531_v2 }
 0x651   : > { %3121 = vmatprep.subr.bf16.mxu0 %v4535_v3 }
 0x652   : > { %1605 = vmatpush1.bf16.msra.mxu1 %v4328_v4  ;;  %v4539_v4 = vld [vmem:[#allocation11 + $0x10] sm:$0xff]  }
 0x653   : > { %1606 = vmatprep.subr.bf16.mxu1 %v4331_v5  ;;  %v4543_v5 = vld [vmem:[#allocation11 + $0x18] sm:$0xff]  }
 0x654   : > { %3122 = vmatpush3.bf16.msra.mxu0 %v4535_v3 }
 0x655   : > { %3123 = vmatprep.subr.bf16.mxu0 %v4539_v4 }
 0x656   : > { %1607 = vmatpush1.bf16.msra.mxu1 %v4334_v6  ;;  %v4546_v6 = vld [vmem:[#allocation11 + $0x20] sm:$0xff]  }
 0x657   : > { %1608 = vmatprep.subr.bf16.mxu1 %v4337_v7  ;;  %v4550_v7 = vld [vmem:[#allocation11 + $0x28] sm:$0xff]  }
 0x658   : > { %3124 = vmatpush3.bf16.msra.mxu0 %v4539_v4 }
 0x659   : > { %3125 = vmatprep.subr.bf16.mxu0 %v4543_v5 }
 0x65a   : > { %1609 = vmatpush1.bf16.msra.mxu1 %v4341_v9  ;;  %v4554_v9 = vld [vmem:[#allocation11 + $0x30] sm:$0xff]  }
 0x65b   : > { %1610 = vmatprep.subr.bf16.mxu1 %v4343_v10  ;;  %v4558_v10 = vld [vmem:[#allocation11 + $0x38] sm:$0xff]  }
 0x65c   : > { %3126 = vmatpush3.bf16.msra.mxu0 %v4543_v5 }
 0x65d   : > { %3127 = vmatprep.subr.bf16.mxu0 %v4546_v6 }
 0x65e   : > { %1611 = vmatpush1.bf16.msra.mxu1 %v4351_v15  ;;  %v4564_v15 = vld [vmem:[#allocation10] ss:$0 sm:$0xff] }
 0x65f   : > { %1612 = vmatprep.subr.bf16.mxu1 %v4355_v16 }
 0x660   : > { %3128 = vmatpush3.bf16.msra.mxu0 %v4546_v6 }
 0x661   : > { %3129 = vmatprep.subr.bf16.mxu0 %v4550_v7 }
 0x662   : > { %1613 = vmatpush1.bf16.msra.mxu1 %v4362_v18 }
 0x663   : > { %1614 = vmatprep.subr.bf16.mxu1 %v4365_v19 }
 0x664   : > { %3130 = vmatpush3.bf16.msra.mxu0 %v4550_v7 }
 0x665   : > { %3131 = vmatprep.subr.bf16.mxu0 %v4554_v9 }
 0x666   : > { %1615 = vmatpush1.bf16.msra.mxu1 %v4372_v21 }
 0x667   : > { %1616 = vmatprep.subr.bf16.mxu1 %v4374_v22 }
 0x668   : > { %3132 = vmatpush3.bf16.msra.mxu0 %v4554_v9 }
 0x669   : > { %3133 = vmatprep.subr.bf16.mxu0 %v4558_v10 }
 0x66a   : > { %1617 = vmatpush1.bf16.msra.mxu1 %v4382_v24 }
 0x66b   : > { %3165 = vmatprep.subr.bf16.mxu1 %v3930_v31 }
 0x66c   : > { %3134 = vmatpush3.bf16.msra.mxu0 %v4558_v10 }
 0x66d   : > { %3139 = vmatprep.subr.bf16.mxu0 %v4347_v13 }
 0x720   : > { %v3117_v16 = vpop.f32.mrb[20].mxu1 }
 0x721   : > { %v1387_v18 = vadd.f32 %v3117_v16, %v4564_v15  ;;  %v1378_v19 = vpop.f32.mrb[21].mxu1 }
 0x722   : > { %v1379_v21 = vadd.f32 %v4564_v15, %v1378_v19  ;;  %v3118_v22 = vpop.f32.mrb[22].mxu1 }
 0x723   : > { %v1399_v24 = vmul.f32 0.044715, %v1387_v18  ;;  %v1390_v61 = vadd.f32 %v3118_v22, %v4564_v15  ;;  %v1381_v8 = vpop.f32.mrb[23].mxu1 }
 0x724   : > { %v1397_v44 = vmul.f32 0.044715, %v1379_v21  ;;  %v1382_v45 = vadd.f32 %v4564_v15, %v1381_v8  ;;  %v1395_v8 = vmul.f32 0.5, %v1387_v18 }
 0x725   : > { %v1403_v46 = vmul.f32 %v1399_v24, %v1387_v18  ;;  %v1400_v47 = vmul.f32 0.044715, %v1390_v61 }
 0x726   : > { %v1401_v48 = vmul.f32 %v1397_v44, %v1379_v21  ;;  %v1398_v49 = vmul.f32 0.044715, %v1382_v45  ;;  %v1396_v44 = vmul.f32 0.5, %v1390_v61 }
 0x727   : > { %v1407_v50 = vmul.f32 %v1403_v46, %v1387_v18  ;;  %v1404_v52 = vmul.f32 %v1400_v47, %v1390_v61  ;;  %v1393_v47 = vmul.f32 0.5, %v1379_v21 }
 0x728   : > { %v1405_v53 = vmul.f32 %v1401_v48, %v1379_v21  ;;  %v1402_v1 = vmul.f32 %v1398_v49, %v1382_v45  ;;  %v1394_v48 = vmul.f32 0.5, %v1382_v45 }
 0x729   : > { %v1411_v55 = vadd.f32 %v1407_v50, %v1387_v18  ;;  %v1408_v57 = vmul.f32 %v1404_v52, %v1390_v61 }
 0x72a   : > { %v1406_v58 = vmul.f32 %v1402_v1, %v1382_v45  ;;  %v1409_v60 = vadd.f32 %v1405_v53, %v1379_v21 }
 0x72b   : > { %v1415_v59 = vmul.f32 0.7978846, %v1411_v55  ;;  %v1412_v62 = vadd.f32 %v1408_v57, %v1390_v61 }
 0x72c   : > { %v1410_v37 = vadd.f32 %v1406_v58, %v1382_v45  ;;  %v1413_v39 = vmul.f32 0.7978846, %v1409_v60 }
 0x72d   : > { %3487 = vtanh.f32 %v1415_v59  ;;  %v1416_v40 = vmul.f32 0.7978846, %v1412_v62 }
 0x72e   : > { %v1414_v51 = vmul.f32 0.7978846, %v1410_v37  ;;  %3489 = vtanh.f32 %v1413_v39 }
 0x72f   : > { %3491 = vtanh.f32 %v1416_v40 }
 0x730   : > { %3493 = vtanh.f32 %v1414_v51 }
 0x737   : > { %v3488_v38 = vpop.eup %3487 }
 0x738   : > { %v3490_v41 = vpop.eup %3489  ;;  %v1423_v16 = vadd.f32 1.0, %v3488_v38 }
 0x739   : > { %v3492_v19 = vpop.eup %3491  ;;  %v1421_v22 = vadd.f32 1.0, %v3490_v41 }
 0x73a   : > { %v3494_v24 = vpop.eup %3493  ;;  %v1424_v46 = vadd.f32 1.0, %v3492_v19  ;;  %v1427_v50 = vmul.f32 %v1423_v16, %v1395_v8 }
 0x73b   : > { %v1422_v49 = vadd.f32 1.0, %v3494_v24  ;;  %v1425_v53 = vmul.f32 %v1421_v22, %v1393_v47 }
 0x73c   : > { %v1428_v52 = vmul.f32 %v1424_v46, %v1396_v44 }
 0x73d   : > { %v1426_v1 = vmul.f32 %v1422_v49, %v1394_v48 }
 0x73e   : > { %v1430_v55 = vpack.c.bf16 %v1428_v52, %v1427_v50 }
 0x73f   : > { %v1429_v57 = vpack.c.bf16 %v1426_v1, %v1425_v53 }
 0x741   : > { %3135 = vmatprep.mubr.bf16.mxu0 %v1429_v57 }
 0x742   : > { %3136 = vmatmul.mubr.bf16.vlgmr.msra.gmra.mrb[24].mxu0 %v1430_v55 }
 0x743   : > { %3140 = vmatpush3.bf16.msra.mxu0 %v4347_v13  ;;  %v4586_v13 = vld [vmem:[#allocation13] ss:$0 sm:$0xff] }
 0x744   : > { %3141 = vmatprep.subr.bf16.mxu0 %v4349_v14 }
 0x747   : > { %3142 = vmatpush3.bf16.msra.mxu0 %v4349_v14 }
 0x748   : > { %3143 = vmatprep.subr.bf16.mxu0 %v4360_v17 }
 0x74b   : > { %3144 = vmatpush3.bf16.msra.mxu0 %v4360_v17 }
 0x74c   : > { %3145 = vmatprep.subr.bf16.mxu0 %v4370_v20 }
 0x74f   : > { %3146 = vmatpush3.bf16.msra.mxu0 %v4370_v20 }
 0x750   : > { %3147 = vmatprep.subr.bf16.mxu0 %v4376_v23 }
 0x753   : > { %3148 = vmatpush3.bf16.msra.mxu0 %v4376_v23 }
 0x754   : > { %3149 = vmatprep.subr.bf16.mxu0 %v4384_v25 }
 0x757   : > { %3150 = vmatpush3.bf16.msra.mxu0 %v4384_v25 }
 0x758   : > { %3151 = vmatprep.subr.bf16.mxu0 %v4393_v26 }
 0x75b   : > { %3152 = vmatpush3.bf16.msra.mxu0 %v4393_v26 }
 0x75c   : > { %3153 = vmatprep.subr.bf16.mxu0 %v4400_v29 }
 0x75f   : > { %3154 = vmatpush3.bf16.msra.mxu0 %v4400_v29 }
 0x760   : > { %3159 = vmatprep.subr.bf16.mxu0 %v3930_v31 }
 0x815   : > { %v3137_v14 = vpop.f32.mrb[24].mxu0 }
 0x816   : > { %v1519_v17 = vpop.f32.mrb[25].mxu0  ;;  %v1528_v25 = vadd.f32 %v3137_v14, %v4586_v13  ;;  %v2910_v14 = vld [vmem:[#allocation14 + $0x1] ss:$0 sm:$0xff] }
 0x817   : > { %v1520_v20 = vadd.f32 %v4586_v13, %v1519_v17  ;;  %v3138_v23 = vpop.f32.mrb[26].mxu0 }
 0x818   : > { %v1522_v18 = vpop.f32.mrb[27].mxu0  ;;  %v1531_v61 = vadd.f32 %v3138_v23, %v4586_v13  ;;  %v1536_v45 = vadd.f32 %v1528_v25, %v4508_v43 }
 0x819   : > { %v1523_v21 = vadd.f32 %v4586_v13, %v1522_v18  ;;  %v1534_v26 = vadd.f32 %v1520_v20, %v4502_v63 }
 0x81a   : > { %v1537_v58 = vadd.f32 %v1531_v61, %v4510_v56 }
 0x81b   : > { %1540 = vadd.xlane.f32.xlu0 %v1534_v26  ;;  %v1535_v29 = vadd.f32 %v1523_v21, %v4504_v11  ;;  %v2911_v21 = vld [vmem:[#allocation16 + $0x1] ss:$0 sm:$0xff] }
 0x81d   : > { %1542 = vadd.xlane.f32.xlu1 %v1535_v29 }
 0x81f   : > { %1544 = vadd.xlane.f32.xlu0 %v1536_v45 }
 0x821   : > { %1546 = vadd.xlane.f32.xlu1 %v1537_v58 }
 0x8a8   : > { %v1541_v60 = vpop.xlane.xlu0 %1540 }
 0x8a9   : > { %v1548_v59 = vmul.f32 0.0078125, %v1541_v60 }
 0x8aa   : > { %v1543_v62 = vpop.xlane.xlu1 %1542 }
 0x8ab   : > { %v1552_v37 = vsub.f32 %v1534_v26, %v1548_v59  ;;  %v1549_v39 = vmul.f32 0.0078125, %v1543_v62 }
 0x8ac   : > { %v1545_v40 = vpop.xlane.xlu0 %1544 }
 0x8ad   : > { %v1553_v51 = vsub.f32 %v1535_v29, %v1549_v39  ;;  %v1550_v63 = vmul.f32 0.0078125, %v1545_v40  ;;  %v1556_v38 = vmul.f32 %v1552_v37, %v1552_v37 }
 0x8ae   : > { %v1547_v41 = vpop.xlane.xlu1 %1546 }
 0x8af   : > { %v1554_v16 = vsub.f32 %v1536_v45, %v1550_v63  ;;  %v1551_v19 = vmul.f32 0.0078125, %v1547_v41  ;;  %1560 = vadd.xlane.f32.xlu0 %v1556_v38  ;;  %v1557_v11 = vmul.f32 %v1553_v51, %v1553_v51 }
 0x8b1   : > { %v1555_v22 = vsub.f32 %v1537_v58, %v1551_v19  ;;  %1562 = vadd.xlane.f32.xlu1 %v1557_v11  ;;  %v1558_v43 = vmul.f32 %v1554_v16, %v1554_v16 }
 0x8b3   : > { %1564 = vadd.xlane.f32.xlu0 %v1558_v43  ;;  %v1559_v56 = vmul.f32 %v1555_v22, %v1555_v22 }
 0x8b5   : > { %1566 = vadd.xlane.f32.xlu1 %v1559_v56 }
 0x93c   : > { %v1561_v24 = vpop.xlane.xlu0 %1560 }
 0x93d   : > { %v1568_v8 = vmul.f32 0.0078125, %v1561_v24 }
 0x93e   : > { %v1563_v44 = vpop.xlane.xlu1 %1562 }
 0x93f   : > { %v1572_v46 = vadd.f32 1e-12, %v1568_v8  ;;  %v1569_v47 = vmul.f32 0.0078125, %v1563_v44 }
 0x940   : > { %v1565_v48 = vpop.xlane.xlu0 %1564 }
 0x941   : > { %3495 = vrsqrt.f32 %v1572_v46  ;;  %v1573_v49 = vadd.f32 1e-12, %v1569_v47  ;;  %v1570_v50 = vmul.f32 0.0078125, %v1565_v48 }
 0x942   : > { %v1567_v52 = vpop.xlane.xlu1 %1566 }
 0x943   : > { %3497 = vrsqrt.f32 %v1573_v49  ;;  %v1574_v53 = vadd.f32 1e-12, %v1570_v50  ;;  %v1571_v1 = vmul.f32 0.0078125, %v1567_v52 }
 0x945   : > { %3499 = vrsqrt.f32 %v1574_v53  ;;  %v1575_v55 = vadd.f32 1e-12, %v1571_v1 }
 0x947   : > { %3501 = vrsqrt.f32 %v1575_v55 }
 0x94b   : > { %v3496_v57 = vpop.eup %3495 }
 0x94c   : > { %v1580_v17 = vmul.f32 %v3496_v57, %v1552_v37 }
 0x94d   : > { %v3498_v20 = vpop.eup %3497 }
 0x94e   : > { %v1581_v23 = vmul.f32 %v3498_v20, %v1553_v51  ;;  %v1588_v18 = vmul.f32 %v2910_v14, %v1580_v17 }
 0x94f   : > { %v3500_v25 = vpop.eup %3499 }
 0x950   : > { %v1582_v26 = vmul.f32 %v3500_v25, %v1554_v16  ;;  %v1589_v61 = vmul.f32 %v2910_v14, %v1581_v23  ;;  %v1596_v58 = vadd.f32 %v2911_v21, %v1588_v18 }
 0x951   : > { %v3502_v29 = vpop.eup %3501 }
 0x952   : > { %v1583_v45 = vmul.f32 %v3502_v29, %v1555_v22  ;;  %v1597_v60 = vadd.f32 %v2911_v21, %v1589_v61  ;;  %v1590_v59 = vmul.f32 %v2910_v14, %v1582_v26 }
 0x954   : > { %v1600_v62 = vpack.c.bf16 %v1597_v60, %v1596_v58  ;;  %v1591_v39 = vmul.f32 %v2910_v14, %v1583_v45  ;;  %v1598_v40 = vadd.f32 %v2911_v21, %v1590_v59 }
 0x956   : > { %1635 = vmatmul.mubr.bf16.vlgmr.msra.gmra.mrb[24].mxu1 %v1600_v62  ;;  %3155 = vmatprep.mubr.bf16.mxu0 %v1600_v62  ;;  %v1599_v63 = vadd.f32 %v2911_v21, %v1591_v39 }
 0x957   : > { %1644 = vmatprep.mubr.bf16.mxu1 %v3929_v0 }
 0x958   : > { %v1601_v37 = vpack.c.bf16 %v1599_v63, %v1598_v40 }
 0x95a   : > { %3156 = vmatmul.mubr.bf16.vlgmr.msra.gmra.mrb[28].mxu0 %v1601_v37 }
 0x95b   : > { %3161 = vmatprep.mubr.msk.bf16.mxu0 %vm3931_vm0, %v3930_v31 }
 0x95e   : > { %1645 = vmatmul.mubr.bf16.gmra.mrb[28].mxu1 %v1601_v37 }
 0x95f   : > { %3167 = vmatprep.mubr.msk.bf16.mxu1 %vm3931_vm0, %v3930_v31 }
 0xa29   : > { %v1636_v51 = vpop.f32.mrb[24].mxu1 }
 0xa2a   : > { %v1638_v38 = vpop.f32.mrb[25].mxu1  ;;  %v1637_v8 = vadd.f32 %v1636_v51, %v4414_v42 }
 0xa2b   : > { %v1639_v41 = vadd.f32 %v1638_v38, %v4411_v36  ;;  %v1640_v16 = vpop.f32.mrb[26].mxu1 }
 0xa2c   : > { %v1642_v19 = vpop.f32.mrb[27].mxu1  ;;  %v1641_v47 = vadd.f32 %v1640_v16, %v4414_v42  ;;  %v1704_v52 = vpack.c.bf16 %v1637_v8, %v1637_v8 }
 0xa2d   : > { %v1708_v11 = vpack.c.bf16 %v1639_v41, %v1639_v41  ;;  %v1643_v22 = vadd.f32 %v1642_v19, %v4411_v36  ;;  %v4603_v43 = vpop.f32.mrb[28].mxu0 }
 0xa2e   : > { %v1689_v0 = vpop.f32.mrb[29].mxu0  ;;  %v1705_v57 = vpack.c.bf16 %v1641_v47, %v1641_v47 }
 0xa2f   : > { %v1709_v56 = vpack.c.bf16 %v1643_v22, %v1643_v22  ;;  %v4605_v24 = vpop.f32.mrb[30].mxu0  ;;  %3160 = vmatpush3.bf16.xpose.msra.mxu0 %v1708_v11  ;;  %v1690_v14 = vadd.f32 %v1689_v0, %v4422_v54 }
 0xa30   : > { %v1692_v44 = vpop.f32.mrb[31].mxu0  ;;  %3171 = vmatprep.subr.bf16.mxu0 %v3930_v31 }
 0xa31   : > { %v1646_v46 = vpop.f32.mrb[28].mxu1  ;;  %3166 = vmatpush3.bf16.xpose.msra.mxu1 %v1709_v56  ;;  %v1693_v20 = vadd.f32 %v1692_v44, %v4422_v54 }
 0xa32   : > { %v1648_v48 = vpop.f32.mrb[29].mxu1  ;;  %3177 = vmatprep.subr.bf16.mxu1 %v3930_v31  ;;  %v1647_v23 = vadd.f32 %v1646_v46, %v4414_v42 }
 0xa33   : > { %v1649_v49 = vadd.f32 %v1648_v48, %v4411_v36  ;;  %v1650_v50 = vpop.f32.mrb[30].mxu1  ;;  %v1921_v25 = vpack.c.bf16 %v1693_v20, %v1693_v20 }
 0xa34   : > { %v1652_v53 = vpop.f32.mrb[31].mxu1  ;;  %v1651_v18 = vadd.f32 %v1650_v50, %v4414_v42  ;;  %v1706_v21 = vpack.c.bf16 %v1647_v23, %v1647_v23 }
 0xa35   : > { %v1710_v1 = vpack.c.bf16 %v1649_v49, %v1649_v49  ;;  %v1653_v55 = vadd.f32 %v1652_v53, %v4411_v36  ;;  %v1920_v36 = vpack.c.bf16 %v1690_v14, %v1690_v14  ;;  %v1974_v29 = vsel %vm1043_vm1, %v1921_v25, 0 }
 0xa36   : > { %3162 = vmatmul.mubr.bf16.vlgmr.msra.gmra.mrb[32].mxu0 %v1704_v52  ;;  %v1707_v61 = vpack.c.bf16 %v1651_v18, %v1651_v18 }
 0xa37   : > { %v1711_v17 = vpack.c.bf16 %v1653_v55, %v1653_v55  ;;  %3172 = vmatpush3.bf16.xpose.msra.mxu0 %v1710_v1  ;;  %3173 = vmatprep.mubr.msk.bf16.mxu0 %vm3931_vm0, %v3930_v31  ;;  %v1928_v26 = vsel %vm1043_vm1, %v1920_v36, 0 }
 0xa38   : > { %3168 = vmatmul.mubr.bf16.vlgmr.msra.gmra.mrb[32].mxu1 %v1705_v57  ;;  %3183 = vmatprep.subr.bf16.mxu0 %v3930_v31 }
 0xa39   : > { %3178 = vmatpush3.bf16.xpose.msra.mxu1 %v1711_v17  ;;  %3179 = vmatprep.mubr.msk.bf16.mxu1 %vm3931_vm0, %v3930_v31 }
 0xa3a   : > { %3189 = vmatprep.subr.bf16.mxu1 %v3930_v31 }
 0xa3e   : > { %3174 = vmatmul.mubr.bf16.vlgmr.msra.gmra.mrb[36].mxu0 %v1706_v21 }
 0xa3f   : > { %3184 = vmatpush3.bf16.msra.mxu0 %v1928_v26  ;;  %3185 = vmatprep.mubr.msk.bf16.mxu0 %vm3931_vm0, %v3930_v31 }
 0xa40   : > { %3180 = vmatmul.mubr.bf16.vlgmr.msra.gmra.mrb[36].mxu1 %v1707_v61  ;;  %3195 = vmatprep.subr.bf16.mxu0 %v3930_v31 }
 0xa41   : > { %3190 = vmatpush3.bf16.msra.mxu1 %v1974_v29  ;;  %3191 = vmatprep.mubr.msk.bf16.mxu1 %vm3931_vm0, %v3930_v31 }
 0xa42   : > { %3201 = vmatprep.subr.bf16.mxu1 %v3930_v31 }
 0xb09   : > { %v1746_v42 = vpop.f32.mrb[32].mxu0 }
 0xb0a   : > { %v3163_v45 = vpop.f32.mrb[33].mxu0  ;;  %v1872_v58 = vsel %vm987_vm2, %v1746_v42, -inf }
 0xb0b   : > { %1873 = vmax.xlane.f32.xlu0 %v1872_v58  ;;  %v1749_v60 = vpop.f32.mrb[34].mxu0  ;;  %v1786_v59 = vpop.f32.mrb[32].mxu1  ;;  %v1701_v58 = vadd.f32 %v4605_v24, %v4422_v54 }
 0xb0c   : > { %v3164_v62 = vpop.f32.mrb[35].mxu0  ;;  %v3169_v39 = vpop.f32.mrb[33].mxu1  ;;  %v1875_v40 = vsel %vm987_vm2, %v1786_v59, -inf }
 0xb0d   : > { %1876 = vmax.xlane.f32.xlu1 %v1875_v40  ;;  %v1789_v63 = vpop.f32.mrb[34].mxu1 }
 0xb0e   : > { %v3170_v37 = vpop.f32.mrb[35].mxu1  ;;  %v1923_v63 = vpack.c.bf16 %v1701_v58, %v1701_v58 }
 0xb11   : > { %v1826_v51 = vpop.f32.mrb[36].mxu0 }
 0xb12   : > { %v3175_v38 = vpop.f32.mrb[37].mxu0  ;;  %v1878_v41 = vsel %vm987_vm2, %v1826_v51, -inf }
 0xb13   : > { %v1866_v16 = vpop.f32.mrb[36].mxu1  ;;  %1879 = vmax.xlane.f32.xlu0 %v1878_v41  ;;  %v1829_v19 = vpop.f32.mrb[38].mxu0 }
 0xb14   : > { %v3176_v11 = vpop.f32.mrb[39].mxu0  ;;  %v3181_v22 = vpop.f32.mrb[37].mxu1  ;;  %v1881_v0 = vsel %vm987_vm2, %v1866_v16, -inf }
 0xb15   : > { %1882 = vmax.xlane.f32.xlu1 %v1881_v0  ;;  %v1869_v56 = vpop.f32.mrb[38].mxu1 }
 0xb16   : > { %v3182_v8 = vpop.f32.mrb[39].mxu1 }
 0xb98   : > { %v1874_v44 = vpop.xlane.xlu0 %1873 }
 0xb99   : > { %v1884_v46 = vsub.f32 %v1746_v42, %v1874_v44  ;;  %v1698_v42 = vadd.f32 %v4603_v43, %v4422_v54  ;;  %v2066_v54 = vsel %vm1043_vm1, %v1923_v63, 0 }
 0xb9a   : > { %v1877_v47 = vpop.xlane.xlu1 %1876 }
 0xb9b   : > { %v1888_v48 = vmul.f32 1.442695, %v1884_v46  ;;  %v1885_v49 = vsub.f32 %v1786_v59, %v1877_v47  ;;  %v1922_v62 = vpack.c.bf16 %v1698_v42, %v1698_v42 }
 0xb9d   : > { %3503 = vpow2.f32 %v1888_v48  ;;  %v1890_v50 = vmul.f32 1.442695, %v1885_v49  ;;  %v2020_v38 = vsel %vm1043_vm1, %v1922_v62, 0 }
 0xb9f   : > { %3505 = vpow2.f32 %v1890_v50 }
 0xba0   : > { %v1880_v52 = vpop.xlane.xlu0 %1879 }
 0xba1   : > { %v1886_v53 = vsub.f32 %v1826_v51, %v1880_v52 }
 0xba2   : > { %v1883_v1 = vpop.xlane.xlu1 %1882 }
 0xba3   : > { %v1892_v55 = vmul.f32 1.442695, %v1886_v53  ;;  %v1887_v57 = vsub.f32 %v1866_v16, %v1883_v1 }
 0xba5   : > { %3507 = vpow2.f32 %v1892_v55  ;;  %v1894_v14 = vmul.f32 1.442695, %v1887_v57 }
 0xba7   : > { %v3504_v17 = vpop.eup %3503  ;;  %3509 = vpow2.f32 %v1894_v14 }
 0xba8   : > { %v1896_v20 = vsel %vm987_vm2, %v3504_v17, 0.0 }
 0xba9   : > { %v3506_v23 = vpop.eup %3505  ;;  %1897 = vadd.xlane.f32.xlu0 %v1896_v20 }
 0xbaa   : > { %v1899_v36 = vsel %vm987_vm2, %v3506_v23, 0.0 }
 0xbab   : > { %1900 = vadd.xlane.f32.xlu1 %v1899_v36 }
 0xbaf   : > { %v3508_v18 = vpop.eup %3507 }
 0xbb0   : > { %v1902_v25 = vsel %vm987_vm2, %v3508_v18, 0.0 }
 0xbb1   : > { %v3510_v21 = vpop.eup %3509  ;;  %1903 = vadd.xlane.f32.xlu0 %v1902_v25 }
 0xbb2   : > { %v1905_v26 = vsel %vm987_vm2, %v3510_v21, 0.0 }
 0xbb3   : > { %1906 = vadd.xlane.f32.xlu1 %v1905_v26 }
 0xc36   : > { %v1898_v61 = vpop.xlane.xlu0 %1897 }
 0xc37   : > { %3511 = vrcp.f32 %v1898_v61 }
 0xc38   : > { %v1901_v29 = vpop.xlane.xlu1 %1900 }
 0xc39   : > { %3513 = vrcp.f32 %v1901_v29 }
 0xc3e   : > { %v1904_v45 = vpop.xlane.xlu0 %1903 }
 0xc3f   : > { %3515 = vrcp.f32 %v1904_v45 }
 0xc40   : > { %v1907_v60 = vpop.xlane.xlu1 %1906 }
 0xc41   : > { %v3512_v59 = vpop.eup %3511  ;;  %3517 = vrcp.f32 %v1907_v60 }
 0xc42   : > { %v1912_v39 = vmul.f32 %v3512_v59, %v3504_v17  ;;  %v2916_v59 = vld [vmem:[#allocation14 + $0x2] ss:$0 sm:$0xff] }
 0xc43   : > { %v3514_v40 = vpop.eup %3513 }
 0xc44   : > { %v1913_v37 = vmul.f32 %v3514_v40, %v3506_v23  ;;  %v1916_v51 = vpack.c.bf16 %v1912_v39, %v1912_v39 }
 0xc46   : > { %3186 = vmatmul.mubr.msk.bf16.vlgmr.msra.gmra.mrb[40].mxu0 %vm987_vm2, %v1916_v51  ;;  %v1917_v41 = vpack.c.bf16 %v1913_v37, %v1913_v37  ;;  %v2917_v37 = vld [vmem:[#allocation16 + $0x2] ss:$0 sm:$0xff] }
 0xc47   : > { %3196 = vmatpush3.bf16.msra.mxu0 %v2020_v38  ;;  %3197 = vmatprep.mubr.msk.bf16.mxu0 %vm3931_vm0, %v3930_v31 }
 0xc48   : > { %3192 = vmatmul.mubr.msk.bf16.vlgmr.msra.gmra.mrb[40].mxu1 %vm987_vm2, %v1917_v41  ;;  %3207 = vmatprep.subr.bf16.mxu0 %v4469_v12 }
 0xc49   : > { %v3516_v43 = vpop.eup %3515  ;;  %3202 = vmatpush3.bf16.msra.mxu1 %v2066_v54  ;;  %3203 = vmatprep.mubr.msk.bf16.mxu1 %vm3931_vm0, %v3930_v31 }
 0xc4a   : > { %v1914_v24 = vmul.f32 %v3516_v43, %v3508_v18  ;;  %3227 = vmatprep.subr.bf16.mxu1 %v4531_v2 }
 0xc4b   : > { %v3518_v16 = vpop.eup %3517 }
 0xc4c   : > { %v1915_v19 = vmul.f32 %v3518_v16, %v3510_v21  ;;  %v1918_v11 = vpack.c.bf16 %v1914_v24, %v1914_v24 }
 0xc4e   : > { %3198 = vmatmul.mubr.msk.bf16.vlgmr.msra.gmra.mrb[44].mxu0 %vm987_vm2, %v1918_v11  ;;  %v1919_v22 = vpack.c.bf16 %v1915_v19, %v1915_v19 }
 0xc4f   : > { %3208 = vmatpush3.bf16.msra.mxu0 %v4469_v12 }
 0xc50   : > { %3204 = vmatmul.mubr.msk.bf16.vlgmr.msra.gmra.mrb[44].mxu1 %vm987_vm2, %v1919_v22  ;;  %3209 = vmatprep.subr.bf16.mxu0 %v4473_v27 }
 0xc51   : > { %3228 = vmatpush3.bf16.msra.mxu1 %v4531_v2 }
 0xc52   : > { %3229 = vmatprep.subr.bf16.mxu1 %v4535_v3 }
 0xc53   : > { %3210 = vmatpush3.bf16.msra.mxu0 %v4473_v27 }
 0xc54   : > { %3211 = vmatprep.subr.bf16.mxu0 %v4477_v28 }
 0xc55   : > { %3230 = vmatpush3.bf16.msra.mxu1 %v4535_v3 }
 0xc56   : > { %3231 = vmatprep.subr.bf16.mxu1 %v4539_v4 }
 0xc57   : > { %3212 = vmatpush3.bf16.msra.mxu0 %v4477_v28 }
 0xc58   : > { %3213 = vmatprep.subr.bf16.mxu0 %v4481_v30 }
 0xc59   : > { %3232 = vmatpush3.bf16.msra.mxu1 %v4539_v4 }
 0xc5a   : > { %3233 = vmatprep.subr.bf16.mxu1 %v4543_v5 }
 0xc5b   : > { %3214 = vmatpush3.bf16.msra.mxu0 %v4481_v30 }
 0xc5c   : > { %3215 = vmatprep.subr.bf16.mxu0 %v4485_v32 }
 0xc5d   : > { %3234 = vmatpush3.bf16.msra.mxu1 %v4543_v5 }
 0xc5e   : > { %3235 = vmatprep.subr.bf16.mxu1 %v4546_v6 }
 0xc5f   : > { %3216 = vmatpush3.bf16.msra.mxu0 %v4485_v32 }
 0xc60   : > { %3217 = vmatprep.subr.bf16.mxu0 %v4489_v33 }
 0xc61   : > { %3236 = vmatpush3.bf16.msra.mxu1 %v4546_v6 }
 0xc62   : > { %3237 = vmatprep.subr.bf16.mxu1 %v4550_v7 }
 0xc63   : > { %3218 = vmatpush3.bf16.msra.mxu0 %v4489_v33 }
 0xc64   : > { %3219 = vmatprep.subr.bf16.mxu0 %v4493_v34 }
 0xc65   : > { %3238 = vmatpush3.bf16.msra.mxu1 %v4550_v7 }
 0xc66   : > { %3239 = vmatprep.subr.bf16.mxu1 %v4554_v9 }
 0xc67   : > { %3220 = vmatpush3.bf16.msra.mxu0 %v4493_v34 }
 0xc68   : > { %3221 = vmatprep.subr.bf16.mxu0 %v4495_v35 }
 0xc69   : > { %3240 = vmatpush3.bf16.msra.mxu1 %v4554_v9 }
 0xc6a   : > { %3241 = vmatprep.subr.bf16.mxu1 %v4558_v10 }
 0xc6b   : > { %3222 = vmatpush3.bf16.msra.mxu0 %v4495_v35 }
 0xc6c   : > { %3247 = vmatprep.subr.mxu0 %v3930_v31 }
 0xc6d   : > { %3242 = vmatpush3.bf16.msra.mxu1 %v4558_v10 }
 0xc6e   : > { %3252 = vmatprep.subr.mxu1 %v3930_v31 }
 0xd19   : > { %v1964_v12 = vpop.f32.mrb[40].mxu0 }
 0xd1a   : > { %2110 = vadd.xlane.f32.xlu0 %v1964_v12  ;;  %v3187_v27 = vpop.f32.mrb[41].mxu0 }
 0xd1b   : > { %v1967_v28 = vpop.f32.mrb[42].mxu0  ;;  %v2010_v30 = vpop.f32.mrb[40].mxu1 }
 0xd1c   : > { %2112 = vadd.xlane.f32.xlu1 %v2010_v30  ;;  %v3188_v32 = vpop.f32.mrb[43].mxu0  ;;  %v3193_v33 = vpop.f32.mrb[41].mxu1 }
 0xd1d   : > { %v2013_v34 = vpop.f32.mrb[42].mxu1 }
 0xd1e   : > { %v3194_v2 = vpop.f32.mrb[43].mxu1 }
 0xd21   : > { %v2056_v3 = vpop.f32.mrb[44].mxu0 }
 0xd22   : > { %2114 = vadd.xlane.f32.xlu0 %v2056_v3  ;;  %v3199_v4 = vpop.f32.mrb[45].mxu0 }
 0xd23   : > { %v2059_v35 = vpop.f32.mrb[46].mxu0  ;;  %v2102_v5 = vpop.f32.mrb[44].mxu1 }
 0xd24   : > { %2116 = vadd.xlane.f32.xlu1 %v2102_v5  ;;  %v3200_v6 = vpop.f32.mrb[47].mxu0  ;;  %v3205_v7 = vpop.f32.mrb[45].mxu1 }
 0xd25   : > { %v2105_v9 = vpop.f32.mrb[46].mxu1 }
 0xd26   : > { %v3206_v10 = vpop.f32.mrb[47].mxu1 }
 0xda7   : > { %v2111_v0 = vpop.xlane.xlu0 %2110 }
 0xda8   : > { %v2118_v56 = vmul.f32 0.0078125, %v2111_v0 }
 0xda9   : > { %v2113_v8 = vpop.xlane.xlu1 %2112 }
 0xdaa   : > { %v2122_v44 = vsub.f32 %v1964_v12, %v2118_v56  ;;  %v2119_v46 = vmul.f32 0.0078125, %v2113_v8 }
 0xdac   : > { %v2123_v47 = vsub.f32 %v2010_v30, %v2119_v46  ;;  %v2126_v48 = vmul.f32 %v2122_v44, %v2122_v44 }
 0xdae   : > { %2130 = vadd.xlane.f32.xlu0 %v2126_v48  ;;  %v2127_v49 = vmul.f32 %v2123_v47, %v2123_v47 }
 0xdaf   : > { %v2115_v50 = vpop.xlane.xlu0 %2114 }
 0xdb0   : > { %v2120_v52 = vmul.f32 0.0078125, %v2115_v50  ;;  %2132 = vadd.xlane.f32.xlu1 %v2127_v49 }
 0xdb1   : > { %v2117_v53 = vpop.xlane.xlu1 %2116 }
 0xdb2   : > { %v2124_v1 = vsub.f32 %v2056_v3, %v2120_v52  ;;  %v2121_v55 = vmul.f32 0.0078125, %v2117_v53 }
 0xdb4   : > { %v2125_v57 = vsub.f32 %v2102_v5, %v2121_v55  ;;  %v2128_v14 = vmul.f32 %v2124_v1, %v2124_v1 }
 0xdb6   : > { %2134 = vadd.xlane.f32.xlu0 %v2128_v14  ;;  %v2129_v17 = vmul.f32 %v2125_v57, %v2125_v57 }
 0xdb8   : > { %2136 = vadd.xlane.f32.xlu1 %v2129_v17 }
 0xe3b   : > { %v2131_v20 = vpop.xlane.xlu0 %2130 }
 0xe3c   : > { %v2138_v23 = vmul.f32 0.0078125, %v2131_v20 }
 0xe3d   : > { %v2133_v36 = vpop.xlane.xlu1 %2132 }
 0xe3e   : > { %v2142_v18 = vadd.f32 1e-12, %v2138_v23  ;;  %v2139_v25 = vmul.f32 0.0078125, %v2133_v36 }
 0xe40   : > { %3519 = vrsqrt.f32 %v2142_v18  ;;  %v2143_v21 = vadd.f32 1e-12, %v2139_v25 }
 0xe42   : > { %3521 = vrsqrt.f32 %v2143_v21 }
 0xe43   : > { %v2135_v26 = vpop.xlane.xlu0 %2134 }
 0xe44   : > { %v2140_v61 = vmul.f32 0.0078125, %v2135_v26 }
 0xe45   : > { %v2137_v29 = vpop.xlane.xlu1 %2136 }
 0xe46   : > { %v2144_v42 = vadd.f32 1e-12, %v2140_v61  ;;  %v2141_v45 = vmul.f32 0.0078125, %v2137_v29 }
 0xe48   : > { %3523 = vrsqrt.f32 %v2144_v42  ;;  %v2145_v58 = vadd.f32 1e-12, %v2141_v45 }
 0xe4a   : > { %v3520_v60 = vpop.eup %3519  ;;  %3525 = vrsqrt.f32 %v2145_v58 }
 0xe4b   : > { %v2150_v62 = vmul.f32 %v3520_v60, %v2122_v44 }
 0xe4c   : > { %v3522_v39 = vpop.eup %3521 }
 0xe4d   : > { %v2151_v40 = vmul.f32 %v3522_v39, %v2123_v47  ;;  %v2158_v63 = vmul.f32 %v2916_v59, %v2150_v62 }
 0xe4f   : > { %v2159_v51 = vmul.f32 %v2916_v59, %v2151_v40  ;;  %v4687_v38 = vadd.f32 %v2917_v37, %v2158_v63 }
 0xe51   : > { %v4689_v41 = vadd.f32 %v2917_v37, %v2159_v51 }
 0xe52   : > { %v3524_v54 = vpop.eup %3523 }
 0xe53   : > { %v2152_v43 = vmul.f32 %v3524_v54, %v2124_v1  ;;  %v2170_v24 = vpack.c.bf16 %v4689_v41, %v4687_v38 }
 0xe54   : > { %v3526_v16 = vpop.eup %3525 }
 0xe55   : > { %v2153_v19 = vmul.f32 %v3526_v16, %v2125_v57  ;;  %3223 = vmatprep.mubr.bf16.mxu0 %v2170_v24  ;;  %v2160_v11 = vmul.f32 %v2916_v59, %v2152_v43 }
 0xe57   : > { %v2161_v22 = vmul.f32 %v2916_v59, %v2153_v19  ;;  %v4693_v12 = vadd.f32 %v2917_v37, %v2160_v11 }
 0xe59   : > { %v4695_v27 = vadd.f32 %v2917_v37, %v2161_v22 }
 0xe5b   : > { %v2171_v28 = vpack.c.bf16 %v4695_v27, %v4693_v12 }
 0xe5d   : > { %3224 = vmatmul.mubr.bf16.vlgmr.msra.gmra.mrb[48].mxu0 %v2171_v28 }
 0xe5e   : > { %3249 = vmatprep.mubr.msk.f32.mxu0 %vm3931_vm0, %v3930_v31 }
 0xf30   : > { %v3225_v30 = vpop.f32.mrb[48].mxu0 }
 0xf31   : > { %v2215_v32 = vadd.f32 %v3225_v30, %v4564_v15  ;;  %v2206_v33 = vpop.f32.mrb[49].mxu0 }
 0xf32   : > { %v2207_v34 = vadd.f32 %v4564_v15, %v2206_v33  ;;  %v3226_v2 = vpop.f32.mrb[50].mxu0 }
 0xf33   : > { %v2227_v3 = vmul.f32 0.044715, %v2215_v32  ;;  %v2218_v4 = vadd.f32 %v3226_v2, %v4564_v15  ;;  %v2209_v35 = vpop.f32.mrb[51].mxu0  ;;  %v2223_v25 = vmul.f32 0.5, %v2215_v32 }
 0xf34   : > { %v2225_v5 = vmul.f32 0.044715, %v2207_v34  ;;  %v2210_v6 = vadd.f32 %v4564_v15, %v2209_v35  ;;  %v2221_v61 = vmul.f32 0.5, %v2207_v34 }
 0xf35   : > { %v2231_v7 = vmul.f32 %v2227_v3, %v2215_v32  ;;  %v2228_v9 = vmul.f32 0.044715, %v2218_v4  ;;  %v2224_v21 = vmul.f32 0.5, %v2218_v4 }
 0xf36   : > { %v2229_v10 = vmul.f32 %v2225_v5, %v2207_v34  ;;  %v2226_v0 = vmul.f32 0.044715, %v2210_v6  ;;  %v2222_v29 = vmul.f32 0.5, %v2210_v6 }
 0xf37   : > { %v2235_v56 = vmul.f32 %v2231_v7, %v2215_v32  ;;  %v2232_v8 = vmul.f32 %v2228_v9, %v2218_v4 }
 0xf38   : > { %v2233_v44 = vmul.f32 %v2229_v10, %v2207_v34  ;;  %v2230_v46 = vmul.f32 %v2226_v0, %v2210_v6 }
 0xf39   : > { %v2239_v47 = vadd.f32 %v2235_v56, %v2215_v32  ;;  %v2236_v48 = vmul.f32 %v2232_v8, %v2218_v4 }
 0xf3a   : > { %v2234_v49 = vmul.f32 %v2230_v46, %v2210_v6  ;;  %v2237_v50 = vadd.f32 %v2233_v44, %v2207_v34 }
 0xf3b   : > { %v2243_v52 = vmul.f32 0.7978846, %v2239_v47  ;;  %v2240_v53 = vadd.f32 %v2236_v48, %v2218_v4 }
 0xf3c   : > { %v2238_v1 = vadd.f32 %v2234_v49, %v2210_v6  ;;  %v2241_v55 = vmul.f32 0.7978846, %v2237_v50 }
 0xf3d   : > { %3527 = vtanh.f32 %v2243_v52  ;;  %v2244_v57 = vmul.f32 0.7978846, %v2240_v53 }
 0xf3e   : > { %v2242_v14 = vmul.f32 0.7978846, %v2238_v1  ;;  %3529 = vtanh.f32 %v2241_v55  ;;  %v2918_v1 = vld [vmem:[#allocation14 + $0x3] ss:$0 sm:$0xff] }
 0xf3f   : > { %3531 = vtanh.f32 %v2244_v57 }
 0xf40   : > { %3533 = vtanh.f32 %v2242_v14  ;;  %v2919_v14 = vld [vmem:[#allocation16 + $0x3] ss:$0 sm:$0xff] }
 0xf47   : > { %v3528_v15 = vpop.eup %3527 }
 0xf48   : > { %v3530_v17 = vpop.eup %3529  ;;  %v2251_v20 = vadd.f32 1.0, %v3528_v15 }
 0xf49   : > { %v3532_v23 = vpop.eup %3531  ;;  %v2249_v36 = vadd.f32 1.0, %v3530_v17 }
 0xf4a   : > { %v3534_v18 = vpop.eup %3533  ;;  %v2252_v26 = vadd.f32 1.0, %v3532_v23  ;;  %v2255_v45 = vmul.f32 %v2251_v20, %v2223_v25 }
 0xf4b   : > { %v2250_v42 = vadd.f32 1.0, %v3534_v18  ;;  %v2253_v60 = vmul.f32 %v2249_v36, %v2221_v61  ;;  %v2374_v18 = vld [vmem:[#allocation17] sm:$0xf] }
 0xf4c   : > { %v2256_v58 = vmul.f32 %v2252_v26, %v2224_v21 }
 0xf4d   : > { %v2254_v59 = vmul.f32 %v2250_v42, %v2222_v29 }
 0xf4e   : > { %v2258_v62 = vpack.c.bf16 %v2256_v58, %v2255_v45 }
 0xf4f   : > { %v2257_v39 = vpack.c.bf16 %v2254_v59, %v2253_v60 }
 0xf51   : > { %3243 = vmatprep.mubr.bf16.mxu1 %v2257_v39 }
 0xf52   : > { %3244 = vmatmul.mubr.bf16.vlgmr.msra.gmra.mrb[48].mxu1 %v2258_v62 }
 0xf53   : > { %3254 = vmatprep.mubr.msk.f32.mxu1 %vm3931_vm0, %v3930_v31 }
0x1025   : > { %v3245_v40 = vpop.f32.mrb[48].mxu1 }
0x1026   : > { %v2293_v63 = vpop.f32.mrb[49].mxu1  ;;  %v2302_v43 = vadd.f32 %v3245_v40, %v4586_v13 }
0x1027   : > { %v2294_v37 = vadd.f32 %v4586_v13, %v2293_v63  ;;  %v3246_v51 = vpop.f32.mrb[50].mxu1 }
0x1028   : > { %v2296_v54 = vpop.f32.mrb[51].mxu1  ;;  %v2305_v19 = vadd.f32 %v3246_v51, %v4586_v13  ;;  %v2310_v22 = vadd.f32 %v2302_v43, %v4693_v12 }
0x1029   : > { %v2297_v24 = vadd.f32 %v4586_v13, %v2296_v54  ;;  %v2308_v16 = vadd.f32 %v2294_v37, %v4687_v38 }
0x102a   : > { %v2311_v28 = vadd.f32 %v2305_v19, %v4695_v27 }
0x102b   : > { %2314 = vadd.xlane.f32.xlu0 %v2308_v16  ;;  %v2309_v11 = vadd.f32 %v2297_v24, %v4689_v41 }
0x102d   : > { %2316 = vadd.xlane.f32.xlu1 %v2309_v11 }
0x102f   : > { %2318 = vadd.xlane.f32.xlu0 %v2310_v22 }
0x1031   : > { %2320 = vadd.xlane.f32.xlu1 %v2311_v28 }
0x10b8   : > { %v2315_v30 = vpop.xlane.xlu0 %2314 }
0x10b9   : > { %v2322_v32 = vmul.f32 0.0078125, %v2315_v30 }
0x10ba   : > { %v2317_v33 = vpop.xlane.xlu1 %2316 }
0x10bb   : > { %v2326_v34 = vsub.f32 %v2308_v16, %v2322_v32  ;;  %v2323_v2 = vmul.f32 0.0078125, %v2317_v33 }
0x10bc   : > { %v2319_v3 = vpop.xlane.xlu0 %2318 }
0x10bd   : > { %v2327_v4 = vsub.f32 %v2309_v11, %v2323_v2  ;;  %v2324_v38 = vmul.f32 0.0078125, %v2319_v3  ;;  %v2330_v35 = vmul.f32 %v2326_v34, %v2326_v34 }
0x10be   : > { %v2321_v13 = vpop.xlane.xlu1 %2320 }
0x10bf   : > { %v2328_v5 = vsub.f32 %v2310_v22, %v2324_v38  ;;  %v2325_v6 = vmul.f32 0.0078125, %v2321_v13  ;;  %2334 = vadd.xlane.f32.xlu0 %v2330_v35  ;;  %v2331_v41 = vmul.f32 %v2327_v4, %v2327_v4 }
0x10c1   : > { %v2329_v7 = vsub.f32 %v2311_v28, %v2325_v6  ;;  %2336 = vadd.xlane.f32.xlu1 %v2331_v41  ;;  %v2332_v12 = vmul.f32 %v2328_v5, %v2328_v5 }
0x10c3   : > { %2338 = vadd.xlane.f32.xlu0 %v2332_v12  ;;  %v2333_v27 = vmul.f32 %v2329_v7, %v2329_v7 }
0x10c5   : > { %2340 = vadd.xlane.f32.xlu1 %v2333_v27 }
0x114c   : > { %v2335_v9 = vpop.xlane.xlu0 %2334 }
0x114d   : > { %v2342_v10 = vmul.f32 0.0078125, %v2335_v9 }
0x114e   : > { %v2337_v0 = vpop.xlane.xlu1 %2336 }
0x114f   : > { %v2346_v56 = vadd.f32 1e-12, %v2342_v10  ;;  %v2343_v8 = vmul.f32 0.0078125, %v2337_v0 }
0x1150   : > { %v2339_v44 = vpop.xlane.xlu0 %2338 }
0x1151   : > { %3535 = vrsqrt.f32 %v2346_v56  ;;  %v2347_v46 = vadd.f32 1e-12, %v2343_v8  ;;  %v2344_v47 = vmul.f32 0.0078125, %v2339_v44 }
0x1152   : > { %v2341_v48 = vpop.xlane.xlu1 %2340 }
0x1153   : > { %3537 = vrsqrt.f32 %v2347_v46  ;;  %v2348_v49 = vadd.f32 1e-12, %v2344_v47  ;;  %v2345_v50 = vmul.f32 0.0078125, %v2341_v48 }
0x1155   : > { %3539 = vrsqrt.f32 %v2348_v49  ;;  %v2349_v52 = vadd.f32 1e-12, %v2345_v50 }
0x1157   : > { %3541 = vrsqrt.f32 %v2349_v52 }
0x115b   : > { %v3536_v53 = vpop.eup %3535 }
0x115c   : > { %v2354_v55 = vmul.f32 %v3536_v53, %v2326_v34 }
0x115d   : > { %v3538_v57 = vpop.eup %3537 }
0x115e   : > { %v2362_v15 = vmul.f32 %v2918_v1, %v2354_v55  ;;  %v2355_v17 = vmul.f32 %v3538_v57, %v2327_v4 }
0x115f   : > { %v3540_v20 = vpop.eup %3539 }
0x1160   : > { %v2370_v23 = vadd.f32 %v2919_v14, %v2362_v15  ;;  %v2363_v36 = vmul.f32 %v2918_v1, %v2355_v17  ;;  %v2356_v25 = vmul.f32 %v3540_v20, %v2328_v5 }
0x1161   : > { %v3542_v21 = vpop.eup %3541 }
0x1162   : > { %3248 = vmatpush3.msra.mxu0 %v2370_v23  ;;  %v2371_v26 = vadd.f32 %v2919_v14, %v2363_v36  ;;  %v2364_v61 = vmul.f32 %v2918_v1, %v2356_v25  ;;  %v2357_v29 = vmul.f32 %v3542_v21, %v2329_v7 }
0x1163   : > { %3257 = vmatprep.subr.mxu0 %v3930_v31  ;;  %3250 = vmatmul.mubr.msk.f32.vlgmr.msra.gmra.mrb[52].mxu0 %vm987_vm2, %v2374_v18 }
0x1164   : > { %3253 = vmatpush3.msra.mxu1 %v2371_v26  ;;  %v2372_v42 = vadd.f32 %v2919_v14, %v2364_v61  ;;  %v2365_v45 = vmul.f32 %v2918_v1, %v2357_v29  ;;  %3259 = vmatprep.mubr.msk.f32.mxu0 %vm3931_vm0, %v3930_v31 }
0x1165   : > { %3262 = vmatprep.subr.mxu1 %v3930_v31  ;;  %3255 = vmatmul.mubr.msk.f32.vlgmr.msra.gmra.mrb[52].mxu1 %vm987_vm2, %v2374_v18 }
0x1166   : > { %3258 = vmatpush3.msra.mxu0 %v2372_v42  ;;  %v2373_v58 = vadd.f32 %v2919_v14, %v2365_v45  ;;  %3264 = vmatprep.mubr.msk.f32.mxu1 %vm3931_vm0, %v3930_v31 }
0x1167   : > { %3260 = vmatmul.mubr.msk.f32.vlgmr.msra.gmra.mrb[54].mxu0 %vm987_vm2, %v2374_v18 }
0x1168   : > { %3263 = vmatpush3.msra.mxu1 %v2373_v58 }
0x1169   : > { %3265 = vmatmul.mubr.msk.f32.vlgmr.msra.gmra.mrb[54].mxu1 %vm987_vm2, %v2374_v18 }
0x1236   : > { %v2444_v60 = vpop.f32.mrb[52].mxu0 }
0x1237   : > { %2658 = vst [vmem:[%s496_s28] sm:$0xf] %v2444_v60  ;;  %v3251_v59 = vpop.f32.mrb[53].mxu0 }
0x1238   : > { %v2514_v62 = vpop.f32.mrb[52].mxu1 }
0x1239   : > { %2659 = vst [vmem:[%s496_s28 + $0x4] sm:$0xf] %v2514_v62  ;;  %v3256_v31 = vpop.f32.mrb[53].mxu1 }
0x123a   : > { %v2584_v39 = vpop.f32.mrb[54].mxu0 }
0x123b   : > { %2660 = vst [vmem:[%s496_s28 + $0x8] sm:$0xf] %v2584_v39  ;;  %v3261_v40 = vpop.f32.mrb[55].mxu0 }
0x123c   : > { %v2654_v63 = vpop.f32.mrb[54].mxu1 }
0x123d   : > { %2661 = vst [vmem:[%s496_s28 + $0xc] sm:$0xf] %v2654_v63  ;;  %v3266_v37 = vpop.f32.mrb[55].mxu1 }
0x123e   : > { %3838 = shalt.err (!%p3835_p3)
}
0x123f   : > { %s3839_s21 = scalar_lea.hbm %s4732_s20, 256  ;;  %s3843_s11 = scalar_lea.hbm %s4816_s17, 512 }
0x1240   : > { %p3840_p0 = scmp.ne.s32.totalorder %s4732_s20, %s3839_s21  ;;  %p3844_p7 = scmp.lt.u32.totalorder %s4732_s20, %s4816_s17 }
0x1241   : > { %p3845_p10 = scmp.lt.u32.totalorder %s3843_s11, %s3839_s21  ;;  %p3847_p11 = scmp.lt.u32.totalorder %s3839_s21, %s4732_s20 }
0x1242   : > { %p3841_p5 = pnand %p3840_p0, %p4817_p12 }
0x1243   : > { %p3846_p1 = por %p3845_p10, %p3844_p7 }
0x1244   : > { %p3842_p2 = pneg %p3841_p5 }
0x1245   : > { %p3848_p13 = por %p3847_p11, %p3846_p1 }
0x1247   : > { %p3849_p8 = pnand %p3848_p13, %p3842_p2 }
0x1249   : > { %3852 = shalt.err (!%p3849_p8)
}
0x124a   : > { %s3933_s24 = smov 64   ;;  %s3934_s30 = smov 4  }
0x124b   : > { %3305 = dma.vmem_to_hbm [thread:$0]  (%p4817_p12), %s4727_s18, 256, %s4732_s20, %s2663_s19, %s3933_s24, %s3933_s24, %s3934_s30  }
0x124c PF: > { %s2691_s1 = sand.u32 1, %s3899_s13   ;;  %p4818_p6 = scmp.ne.s32.totalorder %s4802_s27, 0 }
0x124d   : > { %p4819_p9 = scmp.ge.s32.totalorder %s3911_s16, 2  ;;  %s2692_s21 = scalar_lea.sflag [#allocation4], %s2691_s1 }
0x124f   : > { %p3340_p4 = pnand %p4819_p9, %p4818_p6 }
0x1251   : > { %3894 = dma.done.wait (!%p3340_p4), %s2692_s21, 256  }
0x1252   : > { %3896 = vsyncadd (!%p3340_p4), %s2692_s21, 4294967040  ;;  %p28_p3 = scmp.ge.s32.totalorder %s4216_s23, 4   ;;  %s4820_s13 = smov %s3903_s14 }
0x1253   : > { %s4821_s14 = smov %s3907_s15  ;;  %s4822_s15 = smov %s4228_s10 }
0x1254   : > { %s4823_s16 = smov %s4216_s23  ;;  %30 = sbr.rel (!%p28_p3) target bundleno = 13 (0xd), region = 141 }
0x125b   :  { %2697 = vsyncpa [#allocation3], 1 }
0x125c   :  { %2699 = vsyncpa [#allocation3 + $0x1], 1 }
0x125d   :  { %2700 = vsyncpa [#allocation6], 1 }
0x125e   :  { %2701 = vsyncpa [#allocation9], 1 }
0x125f   :  { %2702 = vsyncpa [#allocation12], 1 }
0x1260   :  { %2703 = vsyncpa [#allocation15], 1 }
0x1261   :  { %2704 = vsyncpa [#allocation18], 1 }
0x1262   :  { %2705 = vsyncpa [#allocation4], 1 }
0x1263   :  { %2707 = vsyncpa [#allocation4 + $0x1], 1 }

// kernel: intersection_forward.1
= control target key start
LH: loop header
LB: loop body
LE: loop exit
PB: predicated region body
PF: predicated region fallthrough
CT: control target
= control target key end

     0   :  { %s4776_s0 = inlined_call_operand.hbm [shape: f32[8,8,128], index: 0, kind: input, shape index: {}]   ;;  %s4777_s1 = inlined_call_operand.hbm [shape: bf16[128,384], index: 1, kind: input, shape index: {}]   ;;  %s4778_s2 = inlined_call_operand.hbm [shape: f32[1,384], index: 2, kind: input, shape index: {}]   ;;  %s4779_s3 = inlined_call_operand.hbm [shape: bf16[128,128], index: 3, kind: input, shape index: {}]   ;;  %s4780_s4 = inlined_call_operand.hbm [shape: f32[1,128], index: 4, kind: input, shape index: {}]   ;;  %s4781_s5 = inlined_call_operand.hbm [shape: bf16[128,128], index: 5, kind: input, shape index: {}]   ;;  %s4782_s6 = inlined_call_operand.hbm [shape: f32[1,128], index: 6, kind: input, shape index: {}]   ;;  %s4783_s7 = inlined_call_operand.hbm [shape: f32[4,128], index: 7, kind: input, shape index: {}]   ;;  %s4784_s8 = inlined_call_operand.hbm [shape: f32[4,128], index: 8, kind: input, shape index: {}]   ;;  %s4785_s9 = inlined_call_operand.hbm [shape: f32[4,8], index: 9, kind: input, shape index: {}]   ;;  %s4786_s10 = inlined_call_operand.hbm [shape: f32[8,4,128], index: 10, kind: output, shape index: {}]  }
   0x1   :  { %4792 = sst [smem:[#allocation28_spill]] %s4777_s1 }
   0x2   :  { %4793 = sst [smem:[#allocation29_spill]] %s4786_s10 }
   0x3   :  { %15 = vsyncpa [#allocation3], 0 }
   0x4   :  { %17 = vsyncpa [#allocation3 + $0x1], 0 }
   0x5   :  { %18 = vsyncpa [#allocation6], 0 }
   0x6   :  { %19 = vsyncpa [#allocation9], 0 }
   0x7   :  { %20 = vsyncpa [#allocation12], 0 }
   0x8   :  { %21 = vsyncpa [#allocation15], 0 }
   0x9   :  { %22 = vsyncpa [#allocation18], 0 }
   0xa   :  { %23 = vsyncpa [#allocation4], 0 }
   0xb   :  { %25 = vsyncpa [#allocation4 + $0x1], 0  ;;  %s3990_s13 = smov 0   ;;  %s3992_s14 = smov 0  }
   0xc   :  { %s3994_s15 = smov 0   ;;  %s3996_s16 = smov 0  }
   0xd LB: > { %s3913_s17 = smov [#allocation5]   ;;  %s4011_s19 = sadd.s32 4294967295, %s3911_s16   ;;  %s3911_s16 = sphi %s3996_s16, %s4823_s16   ;;  %s3907_s15 = sphi %s3994_s15, %s4822_s15   ;;  %s3903_s14 = sphi %s3992_s14, %s4821_s14   ;;  %s3899_s13 = sphi %s3990_s13, %s4820_s13  }
   0xe   : > { %s289_s18 = sshll.u32 %s3913_s17, 4  ;;  %p2836_p0 = scmp.ge.s32.totalorder %s3911_s16, 1  ;;  %s4016_s18 = int_to_ptr.vmem [resolvable:$true] %s289_s18 }
   0xf   : > { %p4789_p1 = scmp.eq.s32.totalorder %s4011_s19, 0  ;;  %p277_p2 = scmp.lt.s32.totalorder %s3911_s16, 3 }
  0x10   : > { %s3914_s21 = smov [#allocation8]   ;;  %s3915_s24 = smov [#allocation11]  }
  0x11   : > { %p4018_p3 = pnand %p2836_p0, %p277_p2  ;;  %s313_s22 = sshll.u32 %s3914_s21, 4  ;;  %s4031_s22 = int_to_ptr.vmem [resolvable:$true] %s313_s22 }
  0x12   : > { %s4033_s25 = sshll.u32 %s3915_s24, 4  ;;  %s4797_s1 = sld [smem:[#allocation28_spill]]  ;;  %s338_s25 = int_to_ptr.vmem [resolvable:$true] %s4033_s25 }
  0x13   : > { %s4794_s20 = scalar_select %p4018_p3, 1, 0 }
  0x14   : > { %p3307_p5 = pneg %p4018_p3 }
  0x15   : > { %4795 = sst [smem:[#allocation27_spill]] %s4794_s20 }
  0x16   : > { %p4027_p6 = pnand %p3307_p5, %p4789_p1 }
  0x18   : > { %s3543_s28 = scalar_lea.hbm %s4797_s1, 3072  ;;  %p4043_p8 = pneg %p4027_p6 }
  0x19   : > { %p3544_p7 = scmp.ne.s32.totalorder %s4797_s1, %s3543_s28  ;;  %p3550_p11 = scmp.lt.u32.totalorder %s3543_s28, %s4797_s1 }
  0x1b   : > { %p3546_p9 = pnand %p4043_p8, %p3544_p7 }
  0x1d   : > { %p3547_p10 = pneg %p3546_p9 }
  0x1f   : > { %p3552_p12 = pnand %p3550_p11, %p3547_p10 }
  0x21   : > { %3555 = shalt.err (!%p3552_p12)
}
  0x22   : > { %s3556_s21 = scalar_lea.vmem %s4016_s18, 3072  ;;  %p3564_p5 = scmp.lt.s32.totalorder %s4016_s18, %s4016_s18 }
  0x23   : > { %p3557_p13 = scmp.ne.s32.totalorder %s4016_s18, %s3556_s21  ;;  %p3565_p4 = scmp.lt.s32.totalorder %s3556_s21, %s3556_s21 }
  0x25   : > { %p3559_p0 = pnand %p3557_p13, %p4043_p8  ;;  %p3566_p7 = por %p3565_p4, %p3564_p5 }
  0x27   : > { %p3560_p2 = pneg %p3559_p0 }
  0x29   : > { %p3567_p9 = pnand %p3566_p7, %p3560_p2 }
  0x2b   : > { %3570 = shalt.err (!%p3567_p9)
}
  0x2c   : > { %s3916_s24 = smov 192   ;;  %s3917_s26 = smov 12  }
  0x2d   : > { %3310 = dma.hbm_to_vmem [thread:$0]  (!%p4027_p6), %s4797_s1, 3072, %s4016_s18, [#allocation6], %s3916_s24, %s3916_s24, %s3917_s26  }
  0x2e   : > { %s3571_s12 = scalar_lea.hbm %s4779_s3, 1024 }
  0x2f   : > { %p3572_p4 = scmp.ne.s32.totalorder %s4779_s3, %s3571_s12  ;;  %p3578_p12 = scmp.lt.u32.totalorder %s3571_s12, %s4779_s3 }
  0x31   : > { %p3574_p10 = pnand %p3572_p4, %p4043_p8 }
  0x33   : > { %p3575_p11 = pneg %p3574_p10 }
  0x35   : > { %p3580_p13 = pnand %p3578_p12, %p3575_p11 }
  0x37   : > { %3583 = shalt.err (!%p3580_p13)
}
  0x38   : > { %s3584_s18 = scalar_lea.vmem %s4031_s22, 1024  ;;  %p3592_p7 = scmp.lt.s32.totalorder %s4031_s22, %s4031_s22 }
  0x39   : > { %p3585_p0 = scmp.ne.s32.totalorder %s4031_s22, %s3584_s18  ;;  %p3593_p9 = scmp.lt.s32.totalorder %s3584_s18, %s3584_s18 }
  0x3b   : > { %p3587_p2 = pnand %p3585_p0, %p4043_p8  ;;  %p3594_p4 = por %p3593_p9, %p3592_p7 }
  0x3d   : > { %p3588_p5 = pneg %p3587_p2 }
  0x3f   : > { %p3595_p10 = pnand %p3594_p4, %p3588_p5 }
  0x41   : > { %3598 = shalt.err (!%p3595_p10)
}
  0x42   : > { %s3918_s10 = smov 64   ;;  %s3919_s20 = smov 4  }
  0x43   : > { %3316 = dma.hbm_to_vmem [thread:$0]  (!%p4027_p6), %s4779_s3, 1024, %s4031_s22, [#allocation9], %s3918_s10, %s3918_s10, %s3919_s20  }
  0x44   : > { %s3599_s29 = scalar_lea.hbm %s4781_s5, 1024 }
  0x45   : > { %p3600_p11 = scmp.ne.s32.totalorder %s4781_s5, %s3599_s29  ;;  %p3606_p0 = scmp.lt.u32.totalorder %s3599_s29, %s4781_s5 }
  0x47   : > { %p3602_p12 = pnand %p3600_p11, %p4043_p8 }
  0x49   : > { %p3603_p13 = pneg %p3602_p12 }
  0x4b   : > { %p3608_p2 = pnand %p3606_p0, %p3603_p13 }
  0x4d   : > { %3611 = shalt.err (!%p3608_p2)
}
  0x4e   : > { %s3612_s18 = scalar_lea.vmem %s338_s25, 1024  ;;  %p3620_p4 = scmp.lt.s32.totalorder %s338_s25, %s338_s25 }
  0x4f   : > { %p3613_p5 = scmp.ne.s32.totalorder %s338_s25, %s3612_s18  ;;  %p3621_p10 = scmp.lt.s32.totalorder %s3612_s18, %s3612_s18 }
  0x51   : > { %p3615_p7 = pnand %p3613_p5, %p4043_p8  ;;  %p3622_p1 = por %p3621_p10, %p3620_p4 }
  0x53   : > { %p3616_p9 = pneg %p3615_p7 }
  0x55   : > { %p3623_p3 = pnand %p3622_p1, %p3616_p9 }
  0x57   : > { %3626 = shalt.err (!%p3623_p3)
}
  0x58   : > { %3322 = dma.hbm_to_vmem [thread:$0]  (!%p4027_p6), %s4781_s5, 1024, %s338_s25, [#allocation12], %s3918_s10, %s3918_s10, %s3919_s20  }
  0x59   : > { %s3920_s26 = smov [#allocation14]   ;;  %s3921_s28 = smov [#allocation7]  }
  0x5a   : > { %s362_s27 = sshll.u32 %s3920_s26, 4  ;;  %s303_s29 = sshll.u32 %s3921_s28, 4  ;;  %s363_s27 = int_to_ptr.vmem [resolvable:$true] %s362_s27  ;;  %s304_s29 = int_to_ptr.vmem [resolvable:$true] %s303_s29 }
  0x5b   : > { %s3627_s17 = scalar_lea.hbm %s4783_s7, 64 }
  0x5c   : > { %p3628_p1 = scmp.ne.s32.totalorder %s4783_s7, %s3627_s17  ;;  %p3634_p12 = scmp.lt.u32.totalorder %s3627_s17, %s4783_s7 }
  0x5e   : > { %p3630_p3 = pnand %p3628_p1, %p4043_p8 }
  0x60   : > { %p3631_p11 = pneg %p3630_p3 }
  0x62   : > { %p3636_p13 = pnand %p3634_p12, %p3631_p11 }
  0x64   : > { %3639 = shalt.err (!%p3636_p13)
}
  0x65   : > { %s3640_s25 = scalar_lea.vmem %s363_s27, 64  ;;  %p3648_p7 = scmp.lt.s32.totalorder %s363_s27, %s363_s27 }
  0x66   : > { %p3641_p0 = scmp.ne.s32.totalorder %s363_s27, %s3640_s25  ;;  %p3649_p9 = scmp.lt.s32.totalorder %s3640_s25, %s3640_s25 }
  0x68   : > { %p3643_p2 = pnand %p3641_p0, %p4043_p8  ;;  %p3650_p4 = por %p3649_p9, %p3648_p7 }
  0x6a   : > { %p3644_p5 = pneg %p3643_p2 }
  0x6c   : > { %p3651_p10 = pnand %p3650_p4, %p3644_p5 }
  0x6e   : > { %3654 = shalt.err (!%p3651_p10)
}
  0x6f   : > { %3328 = dma.hbm_to_vmem [thread:$0]  (!%p4027_p6), %s4783_s7, 64, %s363_s27, [#allocation15]  }
  0x70   : > { %s3655_s26 = scalar_lea.hbm %s4778_s2, 48 }
  0x71   : > { %p3656_p1 = scmp.ne.s32.totalorder %s4778_s2, %s3655_s26  ;;  %p3662_p12 = scmp.lt.u32.totalorder %s3655_s26, %s4778_s2 }
  0x73   : > { %p3658_p3 = pnand %p3656_p1, %p4043_p8 }
  0x75   : > { %p3659_p11 = pneg %p3658_p3 }
  0x77   : > { %p3664_p13 = pnand %p3662_p12, %p3659_p11 }
  0x79   : > { %3667 = shalt.err (!%p3664_p13)
}
  0x7a   : > { %s3668_s21 = scalar_lea.vmem %s304_s29, 48  ;;  %s3675_s27 = scalar_lea.vmem %s304_s29, 64 }
  0x7b   : > { %p3669_p0 = scmp.ne.s32.totalorder %s304_s29, %s3668_s21  ;;  %p3676_p7 = scmp.lt.s32.totalorder %s304_s29, %s304_s29 }
  0x7c   : > { %p3677_p9 = scmp.lt.s32.totalorder %s3675_s27, %s3668_s21 }
  0x7d   : > { %p3671_p2 = pnand %p3669_p0, %p4043_p8 }
  0x7e   : > { %p3678_p4 = por %p3677_p9, %p3676_p7 }
  0x7f   : > { %p3672_p5 = pneg %p3671_p2 }
  0x81   : > { %p3679_p10 = pnand %p3678_p4, %p3672_p5 }
  0x83   : > { %3682 = shalt.err (!%p3679_p10)
}
  0x84   : > { %3313 = dma.hbm_to_vmem [thread:$0]  (!%p4027_p6), %s4778_s2, 48, %s304_s29, [#allocation6]  }
  0x85   : > { %s3922_s25 = smov [#allocation10]   ;;  %s3923_s20 = smov [#allocation13]  }
  0x86   : > { %s327_s10 = sshll.u32 %s3922_s25, 4  ;;  %s351_s1 = sshll.u32 %s3923_s20, 4  ;;  %s328_s10 = int_to_ptr.vmem [resolvable:$true] %s327_s10  ;;  %s352_s1 = int_to_ptr.vmem [resolvable:$true] %s351_s1 }
  0x87   : > { %s3683_s28 = scalar_lea.hbm %s4780_s4, 16 }
  0x88   : > { %p3684_p1 = scmp.ne.s32.totalorder %s4780_s4, %s3683_s28  ;;  %p3690_p12 = scmp.lt.u32.totalorder %s3683_s28, %s4780_s4 }
  0x8a   : > { %p3686_p3 = pnand %p3684_p1, %p4043_p8 }
  0x8c   : > { %p3687_p11 = pneg %p3686_p3 }
  0x8e   : > { %p3692_p13 = pnand %p3690_p12, %p3687_p11 }
  0x90   : > { %3695 = shalt.err (!%p3692_p13)
}
  0x91   : > { %s3696_s29 = scalar_lea.vmem %s328_s10, 16  ;;  %s3703_s27 = scalar_lea.vmem %s328_s10, 32 }
  0x92   : > { %p3697_p0 = scmp.ne.s32.totalorder %s328_s10, %s3696_s29  ;;  %p3704_p7 = scmp.lt.s32.totalorder %s328_s10, %s328_s10 }
  0x93   : > { %p3705_p9 = scmp.lt.s32.totalorder %s3703_s27, %s3696_s29 }
  0x94   : > { %p3699_p2 = pnand %p3697_p0, %p4043_p8 }
  0x95   : > { %p3706_p4 = por %p3705_p9, %p3704_p7 }
  0x96   : > { %p3700_p5 = pneg %p3699_p2 }
  0x98   : > { %p3707_p10 = pnand %p3706_p4, %p3700_p5 }
  0x9a   : > { %3710 = shalt.err (!%p3707_p10)
}
  0x9b   : > { %3319 = dma.hbm_to_vmem [thread:$0]  (!%p4027_p6), %s4780_s4, 16, %s328_s10, [#allocation9]  }
  0x9c   : > { %s3711_s24 = scalar_lea.hbm %s4782_s6, 16 }
  0x9d   : > { %p3712_p1 = scmp.ne.s32.totalorder %s4782_s6, %s3711_s24  ;;  %p3718_p12 = scmp.lt.u32.totalorder %s3711_s24, %s4782_s6 }
  0x9f   : > { %p3714_p3 = pnand %p3712_p1, %p4043_p8 }
  0xa1   : > { %p3715_p11 = pneg %p3714_p3 }
  0xa3   : > { %p3720_p13 = pnand %p3718_p12, %p3715_p11 }
  0xa5   : > { %3723 = shalt.err (!%p3720_p13)
}
  0xa6   : > { %s3724_s17 = scalar_lea.vmem %s352_s1, 16  ;;  %s3731_s10 = scalar_lea.vmem %s352_s1, 32 }
  0xa7   : > { %p3725_p0 = scmp.ne.s32.totalorder %s352_s1, %s3724_s17  ;;  %p3732_p7 = scmp.lt.s32.totalorder %s352_s1, %s352_s1 }
  0xa8   : > { %p3733_p9 = scmp.lt.s32.totalorder %s3731_s10, %s3724_s17 }
  0xa9   : > { %p3727_p2 = pnand %p3725_p0, %p4043_p8 }
  0xaa   : > { %p3734_p4 = por %p3733_p9, %p3732_p7 }
  0xab   : > { %p3728_p5 = pneg %p3727_p2 }
  0xad   : > { %p3735_p10 = pnand %p3734_p4, %p3728_p5 }
  0xaf   : > { %3738 = shalt.err (!%p3735_p10)
}
  0xb0   : > { %3325 = dma.hbm_to_vmem [thread:$0]  (!%p4027_p6), %s4782_s6, 16, %s352_s1, [#allocation12]  }
  0xb1   : > { %s3924_s27 = smov [#allocation16]   ;;  %s3925_s22 = smov [#allocation17]  }
  0xb2   : > { %s373_s18 = sshll.u32 %s3924_s27, 4  ;;  %s384_s25 = sshll.u32 %s3925_s22, 4  ;;  %s374_s18 = int_to_ptr.vmem [resolvable:$true] %s373_s18  ;;  %s385_s25 = int_to_ptr.vmem [resolvable:$true] %s384_s25 }
  0xb3   : > { %s3739_s26 = scalar_lea.hbm %s4784_s8, 64 }
  0xb4   : > { %p3740_p1 = scmp.ne.s32.totalorder %s4784_s8, %s3739_s26  ;;  %p3746_p12 = scmp.lt.u32.totalorder %s3739_s26, %s4784_s8 }
  0xb6   : > { %p3742_p3 = pnand %p3740_p1, %p4043_p8 }
  0xb8   : > { %p3743_p11 = pneg %p3742_p3 }
  0xba   : > { %p3748_p13 = pnand %p3746_p12, %p3743_p11 }
  0xbc   : > { %3751 = shalt.err (!%p3748_p13)
}
  0xbd   : > { %s3752_s1 = scalar_lea.vmem %s374_s18, 64  ;;  %p3760_p7 = scmp.lt.s32.totalorder %s374_s18, %s374_s18 }
  0xbe   : > { %p3753_p0 = scmp.ne.s32.totalorder %s374_s18, %s3752_s1  ;;  %p3761_p9 = scmp.lt.s32.totalorder %s3752_s1, %s3752_s1 }
  0xc0   : > { %p3755_p2 = pnand %p3753_p0, %p4043_p8  ;;  %p3762_p4 = por %p3761_p9, %p3760_p7 }
  0xc2   : > { %p3756_p5 = pneg %p3755_p2 }
  0xc4   : > { %p3763_p10 = pnand %p3762_p4, %p3756_p5 }
  0xc6   : > { %3766 = shalt.err (!%p3763_p10)
}
  0xc7   : > { %3331 = dma.hbm_to_vmem [thread:$0]  (!%p4027_p6), %s4784_s8, 64, %s374_s18, [#allocation15]  }
  0xc8   : > { %s3767_s22 = scalar_lea.hbm %s4785_s9, 64 }
  0xc9   : > { %p3768_p1 = scmp.ne.s32.totalorder %s4785_s9, %s3767_s22  ;;  %p3774_p12 = scmp.lt.u32.totalorder %s3767_s22, %s4785_s9 }
  0xcb   : > { %p3770_p3 = pnand %p3768_p1, %p4043_p8 }
  0xcd   : > { %p3771_p11 = pneg %p3770_p3 }
  0xcf   : > { %p3776_p13 = pnand %p3774_p12, %p3771_p11 }
  0xd1   : > { %3779 = shalt.err (!%p3776_p13)
}
  0xd2   : > { %s3780_s30 = scalar_lea.vmem %s385_s25, 64  ;;  %p3788_p7 = scmp.lt.s32.totalorder %s385_s25, %s385_s25 }
  0xd3   : > { %p3781_p0 = scmp.ne.s32.totalorder %s385_s25, %s3780_s30  ;;  %p3789_p9 = scmp.lt.s32.totalorder %s3780_s30, %s3780_s30 }
  0xd5   : > { %p3783_p2 = pnand %p3781_p0, %p4043_p8  ;;  %p3790_p4 = por %p3789_p9, %p3788_p7 }
  0xd7   : > { %p3784_p5 = pneg %p3783_p2 }
  0xd9   : > { %p3791_p10 = pnand %p3790_p4, %p3784_p5 }
  0xdb   : > { %3794 = shalt.err (!%p3791_p10)
}
  0xdc   : > { %3334 = dma.hbm_to_vmem [thread:$0]  (!%p4027_p6), %s4785_s9, 64, %s385_s25, [#allocation18]  }
  0xdd   : > { %s2835_s11 = sadd.s32 4294967294, %s3911_s16   ;;  %s4216_s23 = sadd.s32 1, %s3911_s16  }
  0xde   : > { %s38_s17 = sadd.s32 1, %s3907_s15  ;;  %s35_s1 = ssub.s32 %s3911_s16, %s4216_s23 }
  0xdf   : > { %p45_p8 = scmp.ne.s32.totalorder %s3907_s15, %s3903_s14  ;;  %p36_p1 = scmp.eq.s32.totalorder %s35_s1, 0 }
  0xe0   : > { %p46_p3 = scmp.eq.s32.totalorder %s3911_s16, 0  ;;  %p51_p11 = scmp.ne.s32.totalorder %s3903_s14, %s3899_s13 }
  0xe1   : > { %p264_p12 = scmp.eq.s32.totalorder %s4011_s19, 1  ;;  %p4799_p0 = scmp.eq.s32.totalorder %s4011_s19, 0 }
  0xe2   : > { %s4228_s10 = scalar_select %p36_p1, %s3907_s15, %s38_s17  }
  0xe3   : > { %p47_p13 = por %p46_p3, %p45_p8  ;;  %p4232_p2 = por %p4799_p0, %p51_p11 }
  0xe4   : > { %p4236_p6 = por %p264_p12, %p45_p8  ;;  %p270_p5 = scmp.eq.s32.totalorder %s2835_s11, 1 }
  0xe5   : > { %p3352_p7 = scmp.lt.s32.totalorder %s3911_s16, 2  ;;  %s395_s29 = sand.u32 1, %s3907_s15  }
  0xe6   : > { %s4801_s25 = scalar_select %p4236_p6, 1, 0 }
  0xe7   : > { %p4242_p9 = por %p270_p5, %p51_p11  ;;  %s2847_s22 = sshll.u32 %s395_s29, 5 }
  0xe8   : > { %s2929_s20 = sshll.u32 %s3911_s16, 9  ;;  %s399_s30 = scalar_lea.vmem [#allocation2], %s2847_s22 }
  0xe9   : > { %s4802_s27 = scalar_select %p4242_p9, 1, 0 }
  0xea   : > { %s4250_s28 = scalar_lea.hbm %s4776_s0, %s2929_s20  ;;  %s406_s18 = sshll.u32 %s399_s30, 4  ;;  %s4256_s18 = int_to_ptr.vmem [resolvable:$true] %s406_s18 }
  0xeb   : > { %p4252_p4 = pnand %p3352_p7, %p47_p13  ;;  %s4258_s11 = scalar_lea.sflag [#allocation3], %s395_s29 }
  0xec   : > { %s3795_s17 = scalar_lea.hbm %s4250_s28, 512  ;;  %s3800_s20 = scalar_lea.hbm %s4776_s0, 1024 }
  0xed   : > { %p3796_p10 = scmp.ne.s32.totalorder %s4250_s28, %s3795_s17  ;;  %p3797_p8 = pneg %p4252_p4 }
  0xee   : > { %p3801_p11 = scmp.lt.u32.totalorder %s4250_s28, %s4776_s0  ;;  %p3802_p12 = scmp.lt.u32.totalorder %s3800_s20, %s3795_s17 }
  0xef   : > { %p3798_p1 = pnand %p3797_p8, %p3796_p10  ;;  %p3804_p0 = scmp.lt.u32.totalorder %s3795_s17, %s4250_s28 }
  0xf0   : > { %p3803_p13 = por %p3802_p12, %p3801_p11 }
  0xf1   : > { %p3799_p3 = pneg %p3798_p1 }
  0xf2   : > { %p3805_p5 = por %p3804_p0, %p3803_p13 }
  0xf4   : > { %p3806_p7 = pnand %p3805_p5, %p3799_p3 }
  0xf6   : > { %3809 = shalt.err (!%p3806_p7)
}
  0xf7   : > { %s3810_s29 = scalar_lea.vmem %s4256_s18, 512  ;;  %s3926_s30 = smov [#allocation2]  }
  0xf8   : > { %p3811_p10 = scmp.ne.s32.totalorder %s4256_s18, %s3810_s29  ;;  %s3815_s1 = sshll.u32 %s3926_s30, 4  ;;  %s3816_s1 = int_to_ptr.vmem [resolvable:$false] %s3815_s1 }
  0xf9   : > { %s3817_s22 = scalar_lea.vmem %s3816_s1, 1024  ;;  %p3818_p6 = scmp.lt.s32.totalorder %s4256_s18, %s3816_s1 }
  0xfa   : > { %p3813_p1 = pnand %p3811_p10, %p3797_p8  ;;  %p3819_p11 = scmp.lt.s32.totalorder %s3817_s22, %s3810_s29 }
  0xfc   : > { %p3814_p9 = pneg %p3813_p1  ;;  %p3820_p12 = por %p3819_p11, %p3818_p6 }
  0xfe   : > { %p3821_p13 = pnand %p3820_p12, %p3814_p9 }
 0x100   : > { %3824 = shalt.err (!%p3821_p13)
}
 0x101   : > { %s3927_s17 = smov 128   ;;  %s3928_s20 = smov 8  }
 0x102   : > { %3338 = dma.hbm_to_vmem [thread:$0]  (!%p4252_p4), %s4250_s28, 512, %s4256_s18, %s4258_s11, %s3927_s17, %s3927_s17, %s3928_s20  }
 0x103   : > { %s4804_s24 = sld [smem:[#allocation27_spill]] }
 0x109   : > { %p4805_p8 = scmp.ne.s32.totalorder %s4804_s24, 0 }
 0x10a   : > { %s4289_s26 = sand.u32 (!%p4805_p8), 1, %s3903_s14  }
 0x10b   : > { %418 = sbr.rel (%p4805_p8) target bundleno = 4684 (0x124c), region = 60  ;;  %s2851_s29 = sshll.u32 (!%p4805_p8), %s4289_s26, 5 }
 0x10c   : > { %s421_s30 = scalar_lea.sflag (!%p4805_p8), [#allocation3], %s4289_s26  ;;  %s4293_s1 = scalar_lea.vmem (!%p4805_p8), [#allocation2], %s2851_s29 }
 0x112   : > { %3870 = dma.done.wait (%p4232_p2), %s421_s30, 512  }
 0x113   : > { %3872 = vsyncadd (%p4232_p2), %s421_s30, 4294966784  ;;  %p4806_p6 = scmp.eq.s32.totalorder %s4011_s19, 0 }
 0x115   : > { %3874 = dma.done.wait (%p4806_p6), [#allocation6], 3120   ;;  %p4807_p9 = pmov %p4806_p6 }
 0x116   : > { %p4808_p4 = pmov %p4806_p6 }
 0x117   : > { %3876 = vsyncadd (%p4807_p9), [#allocation6], 4294964176 }
 0x118   : > { %3878 = dma.done.wait (%p4808_p4), [#allocation9], 1040   ;;  %p4809_p3 = pmov %p4808_p4 }
 0x11a   : > { %3880 = vsyncadd (%p4809_p3), [#allocation9], 4294966256  ;;  %p4810_p0 = pmov %p4809_p3 }
 0x11c   : > { %3882 = dma.done.wait (%p4810_p0), [#allocation12], 1040   ;;  %p4811_p5 = pmov %p4810_p0 }
 0x11d   : > { %p4812_p2 = pmov %p4810_p0 }
 0x11e   : > { %3884 = vsyncadd (%p4811_p5), [#allocation12], 4294966256 }
 0x11f   : > { %3886 = dma.done.wait (%p4812_p2), [#allocation15], 128   ;;  %p4813_p7 = pmov %p4810_p0 }
 0x120   : > { %p4814_p10 = pmov %p4810_p0 }
 0x121   : > { %3888 = vsyncadd (%p4813_p7), [#allocation15], 4294967168 }
 0x122   : > { %3890 = dma.done.wait (%p4814_p10), [#allocation18], 64   ;;  %p4815_p1 = pmov %p4810_p0 }
 0x123   : > { %v3929_v0 = vmov 0   ;;  %v4320_v1 = vld [vmem:[#allocation5 + $0x4] ss:$12 sps:$4 sm:$0xff]   ;;  %v4322_v2 = vld [vmem:[#allocation5] ss:$12 sps:$4 sm:$0xff]   ;;  %v570_v28 = vld [vmem:[%s4293_s1 + $0x18] sm:$0xff]  ;;  %v574_v32 = vlaneseq }
 0x124   : > { %3892 = vsyncadd (%p4815_p1), [#allocation18], 4294967232  ;;  %749 = vmatprep.mubr.bf16.mxu0 %v3929_v0  ;;  %717 = vmatprep.subr.bf16.mxu0 %v4320_v1  ;;  %v4325_v3 = vld [vmem:[#allocation5 + $0x1c] ss:$12 sps:$4 sm:$0xff]   ;;  %v4328_v4 = vld [vmem:[#allocation5 + $0x18] ss:$12 sps:$4 sm:$0xff]  }
 0x125   : > { %718 = vmatpush1.bf16.msra.mxu0 %v4322_v2  ;;  %v4331_v5 = vld [vmem:[#allocation5 + $0x34] ss:$12 sps:$4 sm:$0xff]   ;;  %v4334_v6 = vld [vmem:[#allocation5 + $0x30] ss:$12 sps:$4 sm:$0xff]   ;;  %v4337_v7 = vld [vmem:[#allocation5 + $0x4c] ss:$12 sps:$4 sm:$0xff]  }
 0x126   : > { %719 = vmatprep.subr.bf16.mxu0 %v4325_v3  ;;  %v567_v8 = vld [vmem:[%s4293_s1] sm:$0xff]  ;;  %v4341_v9 = vld [vmem:[#allocation5 + $0x48] ss:$12 sps:$4 sm:$0xff]   ;;  %v4370_v20 = vld [vmem:[#allocation5 + $0x50] ss:$12 sps:$4 sm:$0xff]   ;;  %v3930_v31 = vmov 0.0  }
 0x127   : > { %v4343_v10 = vld [vmem:[#allocation5 + $0x64] ss:$12 sps:$4 sm:$0xff]   ;;  %v568_v11 = vld [vmem:[%s4293_s1 + $0x8] sm:$0xff]  ;;  %v4365_v19 = vld [vmem:[#allocation5 + $0x94] ss:$12 sps:$4 sm:$0xff]   ;;  %vm3931_vm0 = vmmov 0  }
 0x128   : > { %v571_v12 = vpack.c.bf16 %v568_v11, %v567_v8  ;;  %v4347_v13 = vld [vmem:[#allocation5 + $0x8] ss:$12 sps:$4 sm:$0xff]   ;;  %v4349_v14 = vld [vmem:[#allocation5 + $0x20] ss:$12 sps:$4 sm:$0xff]   ;;  %v4360_v17 = vld [vmem:[#allocation5 + $0x38] ss:$12 sps:$4 sm:$0xff]  }
 0x129   : > { %720 = vmatpush1.bf16.msra.mxu0 %v4328_v4  ;;  %v4351_v15 = vld [vmem:[#allocation5 + $0x60] ss:$12 sps:$4 sm:$0xff]   ;;  %3031 = vmatprep.subr.bf16.mxu1 %v4347_v13  ;;  %v4355_v16 = vld [vmem:[#allocation5 + $0x7c] ss:$12 sps:$4 sm:$0xff]   ;;  %v4362_v18 = vld [vmem:[#allocation5 + $0x78] ss:$12 sps:$4 sm:$0xff]  }
 0x12a   : > { %721 = vmatprep.subr.bf16.mxu0 %v4331_v5  ;;  %3047 = vmatprep.mubr.bf16.mxu1 %v571_v12  ;;  %v4372_v21 = vld [vmem:[#allocation5 + $0x90] ss:$12 sps:$4 sm:$0xff]   ;;  %v4374_v22 = vld [vmem:[#allocation5 + $0xac] ss:$12 sps:$4 sm:$0xff]   ;;  %v4376_v23 = vld [vmem:[#allocation5 + $0x68] ss:$12 sps:$4 sm:$0xff]  }
 0x12b   : > { %3032 = vmatpush3.bf16.msra.mxu1 %v4347_v13  ;;  %v4382_v24 = vld [vmem:[#allocation5 + $0xa8] ss:$12 sps:$4 sm:$0xff]   ;;  %v4384_v25 = vld [vmem:[#allocation5 + $0x80] ss:$12 sps:$4 sm:$0xff]   ;;  %v4393_v26 = vld [vmem:[#allocation5 + $0x98] ss:$12 sps:$4 sm:$0xff]  }
 0x12c   : > { %3033 = vmatprep.subr.bf16.mxu1 %v4349_v14  ;;  %v569_v27 = vld [vmem:[%s4293_s1 + $0x10] sm:$0xff]  ;;  %v575_v33 = vshrl.u32 %v574_v32, 7  ;;  %v532_v35 = vld [vmem:[#allocation7] sm:$0x7]  ;;  %vm1043_vm1 = vcmask 1043456   ;;  %vm987_vm2 = vcmask 64512  }
 0x12d   : > { %722 = vmatpush1.bf16.msra.mxu0 %v4334_v6  ;;  %v4400_v29 = vld [vmem:[#allocation5 + $0xb0] ss:$12 sps:$4 sm:$0xff]   ;;  %v572_v30 = vpack.c.bf16 %v570_v28, %v569_v27  ;;  %s2861_s21 = sshll.u32 %s4289_s26, 4  ;;  %s2930_s12 = sshll.u32 %s4011_s19, 8 }
 0x12e   : > { %723 = vmatprep.subr.bf16.mxu0 %v4337_v7  ;;  %v580_v34 = vsub.s32 1, %v575_v33  ;;  %v576_v37 = vsub.s32 0, %v575_v33  ;;  %v584_v47 = vsub.s32 2, %v575_v33  ;;  %s496_s28 = scalar_lea.vmem [#allocation19], %s2861_s21  ;;  %s4816_s17 = sld [smem:[#allocation29_spill]] }
 0x12f   : > { %3034 = vmatpush3.bf16.msra.mxu1 %v4349_v14  ;;  %s2676_s18 = sshll.u32 %s496_s28, 4  ;;  %s2663_s19 = scalar_lea.sflag [#allocation4], %s4289_s26  ;;  %s4727_s18 = int_to_ptr.vmem [resolvable:$true] %s2676_s18 }
 0x130   : > { %3035 = vmatprep.subr.bf16.mxu1 %v4360_v17  ;;  %v4411_v36 = vrot.slane %v532_v35, %v580_v34  ;;  %v4414_v42 = vrot.slane %v532_v35, %v576_v37  ;;  %v4422_v54 = vrot.slane %v532_v35, %v584_v47  ;;  %s3825_s24 = scalar_lea.vmem %s4727_s18, 256  ;;  %p4817_p12 = scmp.ne.s32.totalorder %s4801_s25, 0 }
 0x131   : > { %724 = vmatpush1.bf16.msra.mxu0 %v4341_v9  ;;  %p3826_p11 = scmp.ne.s32.totalorder %s4727_s18, %s3825_s24  ;;  %s3932_s29 = smov [#allocation19]  }
 0x132   : > { %725 = vmatprep.subr.bf16.mxu0 %v4343_v10  ;;  %s3829_s30 = sshll.u32 %s3932_s29, 4  ;;  %s3830_s30 = int_to_ptr.vmem [resolvable:$false] %s3829_s30 }
 0x133   : > { %3036 = vmatpush3.bf16.msra.mxu1 %v4360_v17  ;;  %p3827_p13 = pnand %p3826_p11, %p4817_p12  ;;  %s3831_s1 = scalar_lea.vmem %s3830_s30, 512 }
 0x134   : > { %3037 = vmatprep.subr.bf16.mxu1 %v4370_v20  ;;  %s4732_s20 = scalar_lea.hbm %s4816_s17, %s2930_s12  ;;  %p3832_p6 = scmp.lt.s32.totalorder %s4727_s18, %s3830_s30 }
 0x135   : > { %726 = vmatpush1.bf16.msra.mxu0 %v4351_v15  ;;  %p3828_p8 = pneg %p3827_p13  ;;  %p3833_p9 = scmp.lt.s32.totalorder %s3831_s1, %s3825_s24 }
 0x136   : > { %727 = vmatprep.subr.bf16.mxu0 %v4355_v16 }
 0x137   : > { %3038 = vmatpush3.bf16.msra.mxu1 %v4370_v20  ;;  %p3834_p4 = por %p3833_p9, %p3832_p6 }
 0x138   : > { %3039 = vmatprep.subr.bf16.mxu1 %v4376_v23 }
 0x139   : > { %728 = vmatpush1.bf16.msra.mxu0 %v4362_v18  ;;  %p3835_p3 = pnand %p3834_p4, %p3828_p8 }
 0x13a   : > { %729 = vmatprep.subr.bf16.mxu0 %v4365_v19 }
 0x13b   : > { %3040 = vmatpush3.bf16.msra.mxu1 %v4376_v23 }
 0x13c   : > { %3041 = vmatprep.subr.bf16.mxu1 %v4384_v25 }
 0x13d   : > { %730 = vmatpush1.bf16.msra.mxu0 %v4372_v21 }
 0x13e   : > { %731 = vmatprep.subr.bf16.mxu0 %v4374_v22 }
 0x13f   : > { %3042 = vmatpush3.bf16.msra.mxu1 %v4384_v25 }
 0x140   : > { %3043 = vmatprep.subr.bf16.mxu1 %v4393_v26 }
 0x141   : > { %732 = vmatpush1.bf16.msra.mxu0 %v4382_v24 }
 0x142   : > { %3057 = vmatprep.subr.bf16.mxu0 %v3930_v31 }
 0x143   : > { %3044 = vmatpush3.bf16.msra.mxu1 %v4393_v26 }
 0x144   : > { %750 = vmatmul.mubr.bf16.vlgmr.msra.gmra.mrb[0].mxu0 %v571_v12  ;;  %3045 = vmatprep.subr.bf16.mxu1 %v4400_v29 }
 0x145   : > { %759 = vmatprep.mubr.bf16.mxu0 %v3929_v0 }
 0x147   : > { %3046 = vmatpush3.bf16.msra.mxu1 %v4400_v29 }
 0x148   : > { %3051 = vmatprep.subr.bf16.mxu1 %v3930_v31 }
 0x14a   : > { %3048 = vmatmul.mubr.bf16.vlgmr.msra.gmra.mrb[0].mxu1 %v572_v30 }
 0x14b   : > { %3053 = vmatprep.mubr.msk.bf16.mxu1 %vm3931_vm0, %v3930_v31 }
 0x14c   : > { %760 = vmatmul.mubr.bf16.gmra.mrb[4].mxu0 %v572_v30 }
 0x14d   : > { %3059 = vmatprep.mubr.msk.bf16.mxu0 %vm3931_vm0, %v3930_v31 }
 0x217   : > { %v751_v38 = vpop.f32.mrb[0].mxu0 }
 0x218   : > { %v753_v39 = vpop.f32.mrb[1].mxu0  ;;  %v752_v48 = vadd.f32 %v751_v38, %v4414_v42 }
 0x219   : > { %v754_v40 = vadd.f32 %v753_v39, %v4411_v36  ;;  %v755_v41 = vpop.f32.mrb[2].mxu0 }
 0x21a   : > { %v757_v43 = vpop.f32.mrb[3].mxu0  ;;  %v756_v50 = vadd.f32 %v755_v41, %v4414_v42  ;;  %v819_v55 = vpack.c.bf16 %v752_v48, %v752_v48 }
 0x21b   : > { %v823_v44 = vpack.c.bf16 %v754_v40, %v754_v40  ;;  %v758_v45 = vadd.f32 %v757_v43, %v4411_v36 }
 0x21c   : > { %v820_v60 = vpack.c.bf16 %v756_v50, %v756_v50 }
 0x21d   : > { %v824_v46 = vpack.c.bf16 %v758_v45, %v758_v45  ;;  %3052 = vmatpush3.bf16.xpose.msra.mxu1 %v823_v44  ;;  %v4425_v59 = vpop.f32.mrb[0].mxu1 }
 0x21e   : > { %3063 = vmatprep.subr.bf16.mxu1 %v3930_v31  ;;  %v804_v61 = vpop.f32.mrb[1].mxu1 }
 0x21f   : > { %v761_v49 = vpop.f32.mrb[4].mxu0  ;;  %3058 = vmatpush3.bf16.xpose.msra.mxu0 %v824_v46  ;;  %v805_v63 = vadd.f32 %v804_v61, %v4422_v54  ;;  %v4430_v8 = vpop.f32.mrb[2].mxu1 }
 0x220   : > { %v763_v51 = vpop.f32.mrb[5].mxu0  ;;  %3069 = vmatprep.subr.bf16.mxu0 %v3930_v31  ;;  %v762_v11 = vadd.f32 %v761_v49, %v4414_v42  ;;  %v807_v12 = vpop.f32.mrb[3].mxu1 }
 0x221   : > { %v764_v52 = vadd.f32 %v763_v51, %v4411_v36  ;;  %v765_v53 = vpop.f32.mrb[6].mxu0  ;;  %v1036_v27 = vpack.c.bf16 %v805_v63, %v805_v63  ;;  %v808_v28 = vadd.f32 %v807_v12, %v4422_v54 }
 0x222   : > { %v767_v56 = vpop.f32.mrb[7].mxu0  ;;  %v766_v30 = vadd.f32 %v765_v53, %v4414_v42  ;;  %v821_v33 = vpack.c.bf16 %v762_v11, %v762_v11 }
 0x223   : > { %v825_v57 = vpack.c.bf16 %v764_v52, %v764_v52  ;;  %v768_v58 = vadd.f32 %v767_v56, %v4411_v36  ;;  %v1037_v32 = vpack.c.bf16 %v808_v28, %v808_v28  ;;  %v1045_v34 = vsel %vm1043_vm1, %v1036_v27, 0 }
 0x224   : > { %3054 = vmatmul.mubr.bf16.vlgmr.msra.gmra.mrb[4].mxu1 %v819_v55  ;;  %v822_v35 = vpack.c.bf16 %v766_v30, %v766_v30 }
 0x225   : > { %v826_v62 = vpack.c.bf16 %v768_v58, %v768_v58  ;;  %3064 = vmatpush3.bf16.xpose.msra.mxu1 %v825_v57  ;;  %3065 = vmatprep.mubr.msk.bf16.mxu1 %vm3931_vm0, %v3930_v31  ;;  %v1091_v37 = vsel %vm1043_vm1, %v1037_v32, 0 }
 0x226   : > { %3060 = vmatmul.mubr.bf16.vlgmr.msra.gmra.mrb[8].mxu0 %v820_v60  ;;  %3075 = vmatprep.subr.bf16.mxu1 %v3930_v31 }
 0x227   : > { %3070 = vmatpush3.bf16.xpose.msra.mxu0 %v826_v62  ;;  %3071 = vmatprep.mubr.msk.bf16.mxu0 %vm3931_vm0, %v3930_v31 }
 0x228   : > { %3081 = vmatprep.subr.bf16.mxu0 %v3930_v31 }
 0x22c   : > { %3066 = vmatmul.mubr.bf16.vlgmr.msra.gmra.mrb[8].mxu1 %v821_v33 }
 0x22d   : > { %3076 = vmatpush3.bf16.msra.mxu1 %v1045_v34  ;;  %3077 = vmatprep.mubr.msk.bf16.mxu1 %vm3931_vm0, %v3930_v31 }
 0x22e   : > { %3072 = vmatmul.mubr.bf16.vlgmr.msra.gmra.mrb[12].mxu0 %v822_v35  ;;  %3087 = vmatprep.subr.bf16.mxu1 %v3930_v31 }
 0x22f   : > { %3082 = vmatpush3.bf16.msra.mxu0 %v1091_v37  ;;  %3083 = vmatprep.mubr.msk.bf16.mxu0 %vm3931_vm0, %v3930_v31 }
 0x230   : > { %3093 = vmatprep.subr.bf16.mxu0 %v3930_v31 }
 0x2f7   : > { %v861_v38 = vpop.f32.mrb[4].mxu1 }
 0x2f8   : > { %v3055_v39 = vpop.f32.mrb[5].mxu1  ;;  %v988_v40 = vsel %vm987_vm2, %v861_v38, -inf }
 0x2f9   : > { %v901_v41 = vpop.f32.mrb[8].mxu0  ;;  %989 = vmax.xlane.f32.xlu0 %v988_v40  ;;  %v864_v43 = vpop.f32.mrb[6].mxu1 }
 0x2fa   : > { %v3056_v44 = vpop.f32.mrb[7].mxu1  ;;  %v3061_v45 = vpop.f32.mrb[9].mxu0  ;;  %v991_v48 = vsel %vm987_vm2, %v901_v41, -inf }
 0x2fb   : > { %v904_v46 = vpop.f32.mrb[10].mxu0 }
 0x2fc   : > { %v3062_v47 = vpop.f32.mrb[11].mxu0 }
 0x2fd   : > { %992 = vmax.xlane.f32.xlu0 %v991_v48  ;;  %v813_v48 = vadd.f32 %v4425_v59, %v4422_v54 }
 0x2ff   : > { %v941_v49 = vpop.f32.mrb[8].mxu1 }
 0x300   : > { %v3067_v50 = vpop.f32.mrb[9].mxu1  ;;  %v994_v51 = vsel %vm987_vm2, %v941_v49, -inf }
 0x301   : > { %v981_v52 = vpop.f32.mrb[12].mxu0  ;;  %995 = vmax.xlane.f32.xlu1 %v994_v51  ;;  %v944_v53 = vpop.f32.mrb[10].mxu1  ;;  %v1038_v51 = vpack.c.bf16 %v813_v48, %v813_v48 }
 0x302   : > { %v3068_v55 = vpop.f32.mrb[11].mxu1  ;;  %v3073_v56 = vpop.f32.mrb[13].mxu0  ;;  %v997_v60 = vsel %vm987_vm2, %v981_v52, -inf }
 0x303   : > { %v984_v57 = vpop.f32.mrb[14].mxu0 }
 0x304   : > { %v3074_v58 = vpop.f32.mrb[15].mxu0 }
 0x305   : > { %998 = vmax.xlane.f32.xlu1 %v997_v60  ;;  %v1137_v58 = vsel %vm1043_vm1, %v1038_v51, 0 }
 0x386   : > { %v990_v61 = vpop.xlane.xlu0 %989 }
 0x387   : > { %v1000_v62 = vsub.f32 %v861_v38, %v990_v61 }
 0x389   : > { %v1004_v63 = vmul.f32 1.442695, %v1000_v62 }
 0x38a   : > { %v993_v11 = vpop.xlane.xlu0 %992 }
 0x38b   : > { %3463 = vpow2.f32 %v1004_v63  ;;  %v1001_v12 = vsub.f32 %v901_v41, %v993_v11 }
 0x38d   : > { %v1006_v27 = vmul.f32 1.442695, %v1001_v12 }
 0x38e   : > { %v996_v28 = vpop.xlane.xlu1 %995 }
 0x38f   : > { %3465 = vpow2.f32 %v1006_v27  ;;  %v1002_v30 = vsub.f32 %v941_v49, %v996_v28 }
 0x391   : > { %v1008_v32 = vmul.f32 1.442695, %v1002_v30 }
 0x392   : > { %v999_v33 = vpop.xlane.xlu1 %998 }
 0x393   : > { %3467 = vpow2.f32 %v1008_v32  ;;  %v1003_v34 = vsub.f32 %v981_v52, %v999_v33  ;;  %v816_v52 = vadd.f32 %v4430_v8, %v4422_v54 }
 0x395   : > { %v3464_v35 = vpop.eup %3463  ;;  %v1010_v37 = vmul.f32 1.442695, %v1003_v34  ;;  %v1039_v60 = vpack.c.bf16 %v816_v52, %v816_v52 }
 0x396   : > { %v1012_v39 = vsel %vm987_vm2, %v3464_v35, 0.0 }
 0x397   : > { %3469 = vpow2.f32 %v1010_v37  ;;  %1013 = vadd.xlane.f32.xlu0 %v1012_v39  ;;  %v1183_v63 = vsel %vm1043_vm1, %v1039_v60, 0 }
 0x399   : > { %v3466_v40 = vpop.eup %3465 }
 0x39a   : > { %v1015_v38 = vsel %vm987_vm2, %v3466_v40, 0.0 }
 0x39b   : > { %1016 = vadd.xlane.f32.xlu1 %v1015_v38 }
 0x39d   : > { %v3468_v43 = vpop.eup %3467 }
 0x39e   : > { %v1018_v41 = vsel %vm987_vm2, %v3468_v43, 0.0 }
 0x39f   : > { %1019 = vadd.xlane.f32.xlu0 %v1018_v41 }
 0x3a1   : > { %v3470_v44 = vpop.eup %3469 }
 0x3a2   : > { %v1021_v45 = vsel %vm987_vm2, %v3470_v44, 0.0 }
 0x3a3   : > { %1022 = vadd.xlane.f32.xlu1 %v1021_v45 }
 0x424   : > { %v1014_v46 = vpop.xlane.xlu0 %1013 }
 0x425   : > { %3471 = vrcp.f32 %v1014_v46 }
 0x428   : > { %v1017_v47 = vpop.xlane.xlu1 %1016 }
 0x429   : > { %3473 = vrcp.f32 %v1017_v47 }
 0x42c   : > { %v1020_v49 = vpop.xlane.xlu0 %1019 }
 0x42d   : > { %3475 = vrcp.f32 %v1020_v49 }
 0x42f   : > { %v3472_v50 = vpop.eup %3471 }
 0x430   : > { %v1028_v53 = vmul.f32 %v3472_v50, %v3464_v35  ;;  %v1023_v55 = vpop.xlane.xlu1 %1022 }
 0x431   : > { %3477 = vrcp.f32 %v1023_v55 }
 0x432   : > { %v1032_v56 = vpack.c.bf16 %v1028_v53, %v1028_v53 }
 0x433   : > { %v3474_v57 = vpop.eup %3473 }
 0x434   : > { %v1029_v61 = vmul.f32 %v3474_v57, %v3466_v40  ;;  %3078 = vmatmul.mubr.msk.bf16.vlgmr.msra.gmra.mrb[12].mxu1 %vm987_vm2, %v1032_v56 }
 0x435   : > { %3088 = vmatpush3.bf16.msra.mxu1 %v1137_v58  ;;  %3089 = vmatprep.mubr.msk.bf16.mxu1 %vm3931_vm0, %v3930_v31 }
 0x436   : > { %v1033_v59 = vpack.c.bf16 %v1029_v61, %v1029_v61 }
 0x437   : > { %v3476_v62 = vpop.eup %3475 }
 0x438   : > { %v1030_v8 = vmul.f32 %v3476_v62, %v3468_v43  ;;  %3084 = vmatmul.mubr.msk.bf16.vlgmr.msra.gmra.mrb[16].mxu0 %vm987_vm2, %v1033_v59 }
 0x439   : > { %3094 = vmatpush3.bf16.msra.mxu0 %v1183_v63  ;;  %3095 = vmatprep.mubr.msk.bf16.mxu0 %vm3931_vm0, %v3930_v31 }
 0x43a   : > { %v1034_v11 = vpack.c.bf16 %v1030_v8, %v1030_v8 }
 0x43b   : > { %v3478_v12 = vpop.eup %3477 }
 0x43c   : > { %v1031_v27 = vmul.f32 %v3478_v12, %v3470_v44  ;;  %3090 = vmatmul.mubr.msk.bf16.vlgmr.msra.gmra.mrb[16].mxu1 %vm987_vm2, %v1034_v11  ;;  %v4469_v12 = vld [vmem:[#allocation8] sm:$0xff]  }
 0x43d   : > { %3099 = vmatprep.subr.bf16.mxu1 %v4469_v12 }
 0x43e   : > { %v1035_v28 = vpack.c.bf16 %v1031_v27, %v1031_v27  ;;  %3100 = vmatpush3.bf16.msra.mxu1 %v4469_v12  ;;  %v4473_v27 = vld [vmem:[#allocation8 + $0x8] sm:$0xff]  }
 0x43f   : > { %3101 = vmatprep.subr.bf16.mxu1 %v4473_v27 }
 0x440   : > { %3096 = vmatmul.mubr.msk.bf16.vlgmr.msra.gmra.mrb[20].mxu0 %vm987_vm2, %v1035_v28  ;;  %v4477_v28 = vld [vmem:[#allocation8 + $0x10] sm:$0xff]  }
 0x442   : > { %3102 = vmatpush3.bf16.msra.mxu1 %v4473_v27 }
 0x443   : > { %3103 = vmatprep.subr.bf16.mxu1 %v4477_v28 }
 0x446   : > { %3104 = vmatpush3.bf16.msra.mxu1 %v4477_v28 }
 0x507   : > { %v1081_v30 = vpop.f32.mrb[12].mxu1 }
 0x508   : > { %1227 = vadd.xlane.f32.xlu0 %v1081_v30  ;;  %v3079_v32 = vpop.f32.mrb[13].mxu1 }
 0x509   : > { %v1084_v33 = vpop.f32.mrb[14].mxu1  ;;  %v4485_v32 = vld [vmem:[#allocation8 + $0x20] sm:$0xff]  }
 0x50a   : > { %v3080_v34 = vpop.f32.mrb[15].mxu1  ;;  %v4489_v33 = vld [vmem:[#allocation8 + $0x28] sm:$0xff]  }
 0x50b   : > { %v1127_v35 = vpop.f32.mrb[16].mxu0  ;;  %v4493_v34 = vld [vmem:[#allocation8 + $0x30] sm:$0xff]  }
 0x50c   : > { %1229 = vadd.xlane.f32.xlu1 %v1127_v35  ;;  %v3085_v37 = vpop.f32.mrb[17].mxu0 }
 0x50d   : > { %v1130_v39 = vpop.f32.mrb[18].mxu0 }
 0x50e   : > { %v3086_v40 = vpop.f32.mrb[19].mxu0 }
 0x50f   : > { %v1173_v38 = vpop.f32.mrb[16].mxu1 }
 0x510   : > { %1231 = vadd.xlane.f32.xlu0 %v1173_v38  ;;  %v3091_v43 = vpop.f32.mrb[17].mxu1 }
 0x511   : > { %v1176_v41 = vpop.f32.mrb[18].mxu1 }
 0x512   : > { %v3092_v44 = vpop.f32.mrb[19].mxu1 }
 0x513   : > { %v1219_v45 = vpop.f32.mrb[20].mxu0 }
 0x514   : > { %1233 = vadd.xlane.f32.xlu1 %v1219_v45  ;;  %v3097_v46 = vpop.f32.mrb[21].mxu0 }
 0x515   : > { %v1222_v47 = vpop.f32.mrb[22].mxu0 }
 0x516   : > { %v3098_v48 = vpop.f32.mrb[23].mxu0 }
 0x595   : > { %v1228_v49 = vpop.xlane.xlu0 %1227 }
 0x596   : > { %v1236_v50 = vmul.f32 0.0078125, %v1228_v49 }
 0x598   : > { %v1240_v51 = vsub.f32 %v1081_v30, %v1236_v50  ;;  %v4481_v30 = vld [vmem:[#allocation8 + $0x18] sm:$0xff]  }
 0x599   : > { %v1230_v52 = vpop.xlane.xlu1 %1229  ;;  %3105 = vmatprep.subr.bf16.mxu1 %v4481_v30 }
 0x59a   : > { %v1237_v53 = vmul.f32 0.0078125, %v1230_v52  ;;  %v1244_v55 = vmul.f32 %v1240_v51, %v1240_v51  ;;  %3106 = vmatpush3.bf16.msra.mxu1 %v4481_v30 }
 0x59b   : > { %3107 = vmatprep.subr.bf16.mxu1 %v4485_v32 }
 0x59c   : > { %v1241_v56 = vsub.f32 %v1127_v35, %v1237_v53  ;;  %1248 = vadd.xlane.f32.xlu0 %v1244_v55  ;;  %v4495_v35 = vld [vmem:[#allocation8 + $0x38] sm:$0xff]   ;;  %v2890_v53 = vld [vmem:[#allocation14] ss:$0 sm:$0xff] }
 0x59d   : > { %v1232_v57 = vpop.xlane.xlu0 %1231 }
 0x59e   : > { %v1238_v58 = vmul.f32 0.0078125, %v1232_v57  ;;  %v1245_v60 = vmul.f32 %v1241_v56, %v1241_v56  ;;  %3108 = vmatpush3.bf16.msra.mxu1 %v4485_v32 }
 0x59f   : > { %3109 = vmatprep.subr.bf16.mxu1 %v4489_v33 }
 0x5a0   : > { %v1242_v61 = vsub.f32 %v1173_v38, %v1238_v58  ;;  %1250 = vadd.xlane.f32.xlu1 %v1245_v60  ;;  %v2891_v58 = vld [vmem:[#allocation16] ss:$0 sm:$0xff] }
 0x5a1   : > { %v1234_v59 = vpop.xlane.xlu1 %1233 }
 0x5a2   : > { %v1239_v62 = vmul.f32 0.0078125, %v1234_v59  ;;  %v1246_v63 = vmul.f32 %v1242_v61, %v1242_v61  ;;  %3110 = vmatpush3.bf16.msra.mxu1 %v4489_v33 }
 0x5a3   : > { %3111 = vmatprep.subr.bf16.mxu1 %v4493_v34 }
 0x5a4   : > { %v1243_v8 = vsub.f32 %v1219_v45, %v1239_v62  ;;  %1252 = vadd.xlane.f32.xlu0 %v1246_v63 }
 0x5a6   : > { %v1247_v11 = vmul.f32 %v1243_v8, %v1243_v8  ;;  %3112 = vmatpush3.bf16.msra.mxu1 %v4493_v34 }
 0x5a7   : > { %3113 = vmatprep.subr.bf16.mxu1 %v4495_v35 }
 0x5a8   : > { %1254 = vadd.xlane.f32.xlu1 %v1247_v11 }
 0x5aa   : > { %3114 = vmatpush3.bf16.msra.mxu1 %v4495_v35 }
 0x5ab   : > { %1602 = vmatprep.subr.bf16.mxu1 %v4320_v1 }
 0x629   : > { %v1249_v37 = vpop.xlane.xlu0 %1248 }
 0x62a   : > { %v1256_v39 = vmul.f32 0.0078125, %v1249_v37 }
 0x62c   : > { %v1260_v40 = vadd.f32 1e-12, %v1256_v39 }
 0x62d   : > { %v1251_v38 = vpop.xlane.xlu1 %1250 }
 0x62e   : > { %3479 = vrsqrt.f32 %v1260_v40  ;;  %v1257_v43 = vmul.f32 0.0078125, %v1251_v38 }
 0x630   : > { %v1261_v41 = vadd.f32 1e-12, %v1257_v43 }
 0x631   : > { %v1253_v44 = vpop.xlane.xlu0 %1252 }
 0x632   : > { %3481 = vrsqrt.f32 %v1261_v41  ;;  %v1258_v45 = vmul.f32 0.0078125, %v1253_v44 }
 0x634   : > { %v1262_v46 = vadd.f32 1e-12, %v1258_v45 }
 0x635   : > { %v1255_v47 = vpop.xlane.xlu1 %1254 }
 0x636   : > { %3483 = vrsqrt.f32 %v1262_v46  ;;  %v1259_v48 = vmul.f32 0.0078125, %v1255_v47 }
 0x638   : > { %v3480_v49 = vpop.eup %3479  ;;  %v1263_v50 = vadd.f32 1e-12, %v1259_v48 }
 0x639   : > { %v1268_v52 = vmul.f32 %v3480_v49, %v1240_v51 }
 0x63a   : > { %3485 = vrsqrt.f32 %v1263_v50 }
 0x63b   : > { %v1276_v57 = vmul.f32 %v2890_v53, %v1268_v52 }
 0x63c   : > { %v3482_v1 = vpop.eup %3481 }
 0x63d   : > { %v1269_v55 = vmul.f32 %v3482_v1, %v1241_v56  ;;  %v4502_v63 = vadd.f32 %v2891_v58, %v1276_v57 }
 0x63f   : > { %v1277_v60 = vmul.f32 %v2890_v53, %v1269_v55 }
 0x640   : > { %v3484_v59 = vpop.eup %3483 }
 0x641   : > { %v1270_v62 = vmul.f32 %v3484_v59, %v1242_v61  ;;  %v4504_v11 = vadd.f32 %v2891_v58, %v1277_v60 }
 0x643   : > { %v1288_v37 = vpack.c.bf16 %v4504_v11, %v4502_v63  ;;  %v1278_v51 = vmul.f32 %v2890_v53, %v1270_v62 }
 0x644   : > { %v3486_v39 = vpop.eup %3485 }
 0x645   : > { %v1271_v40 = vmul.f32 %v3486_v39, %v1243_v8  ;;  %3115 = vmatprep.mubr.bf16.mxu1 %v1288_v37  ;;  %v4508_v43 = vadd.f32 %v2891_v58, %v1278_v51 }
 0x647   : > { %v1279_v38 = vmul.f32 %v2890_v53, %v1271_v40 }
 0x649   : > { %v4510_v56 = vadd.f32 %v2891_v58, %v1279_v38 }
 0x64b   : > { %v1289_v41 = vpack.c.bf16 %v4510_v56, %v4508_v43 }
 0x64d   : > { %3116 = vmatmul.mubr.bf16.vlgmr.msra.gmra.mrb[20].mxu1 %v1289_v41 }
 0x64e   : > { %1603 = vmatpush1.bf16.msra.mxu1 %v4322_v2  ;;  %1634 = vmatprep.mubr.bf16.mxu1 %v3929_v0  ;;  %v4531_v2 = vld [vmem:[#allocation11] sm:$0xff]  }
 0x64f   : > { %1604 = vmatprep.subr.bf16.mxu1 %v4325_v3  ;;  %3119 = vmatprep.subr.bf16.mxu0 %v4531_v2  ;;  %v4535_v3 = vld [vmem:[#allocation11 + $0x8] sm:$0xff]  }
 0x650   : > { %3120 = vmatpush3.bf16.msra.mxu0 %v4531_v2 }
 0x651   : > { %3121 = vmatprep.subr.bf16.mxu0 %v4535_v3 }
 0x652   : > { %1605 = vmatpush1.bf16.msra.mxu1 %v4328_v4  ;;  %v4539_v4 = vld [vmem:[#allocation11 + $0x10] sm:$0xff]  }
 0x653   : > { %1606 = vmatprep.subr.bf16.mxu1 %v4331_v5  ;;  %v4543_v5 = vld [vmem:[#allocation11 + $0x18] sm:$0xff]  }
 0x654   : > { %3122 = vmatpush3.bf16.msra.mxu0 %v4535_v3 }
 0x655   : > { %3123 = vmatprep.subr.bf16.mxu0 %v4539_v4 }
 0x656   : > { %1607 = vmatpush1.bf16.msra.mxu1 %v4334_v6  ;;  %v4546_v6 = vld [vmem:[#allocation11 + $0x20] sm:$0xff]  }
 0x657   : > { %1608 = vmatprep.subr.bf16.mxu1 %v4337_v7  ;;  %v4550_v7 = vld [vmem:[#allocation11 + $0x28] sm:$0xff]  }
 0x658   : > { %3124 = vmatpush3.bf16.msra.mxu0 %v4539_v4 }
 0x659   : > { %3125 = vmatprep.subr.bf16.mxu0 %v4543_v5 }
 0x65a   : > { %1609 = vmatpush1.bf16.msra.mxu1 %v4341_v9  ;;  %v4554_v9 = vld [vmem:[#allocation11 + $0x30] sm:$0xff]  }
 0x65b   : > { %1610 = vmatprep.subr.bf16.mxu1 %v4343_v10  ;;  %v4558_v10 = vld [vmem:[#allocation11 + $0x38] sm:$0xff]  }
 0x65c   : > { %3126 = vmatpush3.bf16.msra.mxu0 %v4543_v5 }
 0x65d   : > { %3127 = vmatprep.subr.bf16.mxu0 %v4546_v6 }
 0x65e   : > { %1611 = vmatpush1.bf16.msra.mxu1 %v4351_v15  ;;  %v4564_v15 = vld [vmem:[#allocation10] ss:$0 sm:$0xff] }
 0x65f   : > { %1612 = vmatprep.subr.bf16.mxu1 %v4355_v16 }
 0x660   : > { %3128 = vmatpush3.bf16.msra.mxu0 %v4546_v6 }
 0x661   : > { %3129 = vmatprep.subr.bf16.mxu0 %v4550_v7 }
 0x662   : > { %1613 = vmatpush1.bf16.msra.mxu1 %v4362_v18 }
 0x663   : > { %1614 = vmatprep.subr.bf16.mxu1 %v4365_v19 }
 0x664   : > { %3130 = vmatpush3.bf16.msra.mxu0 %v4550_v7 }
 0x665   : > { %3131 = vmatprep.subr.bf16.mxu0 %v4554_v9 }
 0x666   : > { %1615 = vmatpush1.bf16.msra.mxu1 %v4372_v21 }
 0x667   : > { %1616 = vmatprep.subr.bf16.mxu1 %v4374_v22 }
 0x668   : > { %3132 = vmatpush3.bf16.msra.mxu0 %v4554_v9 }
 0x669   : > { %3133 = vmatprep.subr.bf16.mxu0 %v4558_v10 }
 0x66a   : > { %1617 = vmatpush1.bf16.msra.mxu1 %v4382_v24 }
 0x66b   : > { %3165 = vmatprep.subr.bf16.mxu1 %v3930_v31 }
 0x66c   : > { %3134 = vmatpush3.bf16.msra.mxu0 %v4558_v10 }
 0x66d   : > { %3139 = vmatprep.subr.bf16.mxu0 %v4347_v13 }
 0x720   : > { %v3117_v16 = vpop.f32.mrb[20].mxu1 }
 0x721   : > { %v1387_v18 = vadd.f32 %v3117_v16, %v4564_v15  ;;  %v1378_v19 = vpop.f32.mrb[21].mxu1 }
 0x722   : > { %v1379_v21 = vadd.f32 %v4564_v15, %v1378_v19  ;;  %v3118_v22 = vpop.f32.mrb[22].mxu1 }
 0x723   : > { %v1399_v24 = vmul.f32 0.044715, %v1387_v18  ;;  %v1390_v61 = vadd.f32 %v3118_v22, %v4564_v15  ;;  %v1381_v8 = vpop.f32.mrb[23].mxu1 }
 0x724   : > { %v1397_v44 = vmul.f32 0.044715, %v1379_v21  ;;  %v1382_v45 = vadd.f32 %v4564_v15, %v1381_v8  ;;  %v1395_v8 = vmul.f32 0.5, %v1387_v18 }
 0x725   : > { %v1403_v46 = vmul.f32 %v1399_v24, %v1387_v18  ;;  %v1400_v47 = vmul.f32 0.044715, %v1390_v61 }
 0x726   : > { %v1401_v48 = vmul.f32 %v1397_v44, %v1379_v21  ;;  %v1398_v49 = vmul.f32 0.044715, %v1382_v45  ;;  %v1396_v44 = vmul.f32 0.5, %v1390_v61 }
 0x727   : > { %v1407_v50 = vmul.f32 %v1403_v46, %v1387_v18  ;;  %v1404_v52 = vmul.f32 %v1400_v47, %v1390_v61  ;;  %v1393_v47 = vmul.f32 0.5, %v1379_v21 }
 0x728   : > { %v1405_v53 = vmul.f32 %v1401_v48, %v1379_v21  ;;  %v1402_v1 = vmul.f32 %v1398_v49, %v1382_v45  ;;  %v1394_v48 = vmul.f32 0.5, %v1382_v45 }
 0x729   : > { %v1411_v55 = vadd.f32 %v1407_v50, %v1387_v18  ;;  %v1408_v57 = vmul.f32 %v1404_v52, %v1390_v61 }
 0x72a   : > { %v1406_v58 = vmul.f32 %v1402_v1, %v1382_v45  ;;  %v1409_v60 = vadd.f32 %v1405_v53, %v1379_v21 }
 0x72b   : > { %v1415_v59 = vmul.f32 0.7978846, %v1411_v55  ;;  %v1412_v62 = vadd.f32 %v1408_v57, %v1390_v61 }
 0x72c   : > { %v1410_v37 = vadd.f32 %v1406_v58, %v1382_v45  ;;  %v1413_v39 = vmul.f32 0.7978846, %v1409_v60 }
 0x72d   : > { %3487 = vtanh.f32 %v1415_v59  ;;  %v1416_v40 = vmul.f32 0.7978846, %v1412_v62 }
 0x72e   : > { %v1414_v51 = vmul.f32 0.7978846, %v1410_v37  ;;  %3489 = vtanh.f32 %v1413_v39 }
 0x72f   : > { %3491 = vtanh.f32 %v1416_v40 }
 0x730   : > { %3493 = vtanh.f32 %v1414_v51 }
 0x737   : > { %v3488_v38 = vpop.eup %3487 }
 0x738   : > { %v3490_v41 = vpop.eup %3489  ;;  %v1423_v16 = vadd.f32 1.0, %v3488_v38 }
 0x739   : > { %v3492_v19 = vpop.eup %3491  ;;  %v1421_v22 = vadd.f32 1.0, %v3490_v41 }
 0x73a   : > { %v3494_v24 = vpop.eup %3493  ;;  %v1424_v46 = vadd.f32 1.0, %v3492_v19  ;;  %v1427_v50 = vmul.f32 %v1423_v16, %v1395_v8 }
 0x73b   : > { %v1422_v49 = vadd.f32 1.0, %v3494_v24  ;;  %v1425_v53 = vmul.f32 %v1421_v22, %v1393_v47 }
 0x73c   : > { %v1428_v52 = vmul.f32 %v1424_v46, %v1396_v44 }
 0x73d   : > { %v1426_v1 = vmul.f32 %v1422_v49, %v1394_v48 }
 0x73e   : > { %v1430_v55 = vpack.c.bf16 %v1428_v52, %v1427_v50 }
 0x73f   : > { %v1429_v57 = vpack.c.bf16 %v1426_v1, %v1425_v53 }
 0x741   : > { %3135 = vmatprep.mubr.bf16.mxu0 %v1429_v57 }
 0x742   : > { %3136 = vmatmul.mubr.bf16.vlgmr.msra.gmra.mrb[24].mxu0 %v1430_v55 }
 0x743   : > { %3140 = vmatpush3.bf16.msra.mxu0 %v4347_v13  ;;  %v4586_v13 = vld [vmem:[#allocation13] ss:$0 sm:$0xff] }
 0x744   : > { %3141 = vmatprep.subr.bf16.mxu0 %v4349_v14 }
 0x747   : > { %3142 = vmatpush3.bf16.msra.mxu0 %v4349_v14 }
 0x748   : > { %3143 = vmatprep.subr.bf16.mxu0 %v4360_v17 }
 0x74b   : > { %3144 = vmatpush3.bf16.msra.mxu0 %v4360_v17 }
 0x74c   : > { %3145 = vmatprep.subr.bf16.mxu0 %v4370_v20 }
 0x74f   : > { %3146 = vmatpush3.bf16.msra.mxu0 %v4370_v20 }
 0x750   : > { %3147 = vmatprep.subr.bf16.mxu0 %v4376_v23 }
 0x753   : > { %3148 = vmatpush3.bf16.msra.mxu0 %v4376_v23 }
 0x754   : > { %3149 = vmatprep.subr.bf16.mxu0 %v4384_v25 }
 0x757   : > { %3150 = vmatpush3.bf16.msra.mxu0 %v4384_v25 }
 0x758   : > { %3151 = vmatprep.subr.bf16.mxu0 %v4393_v26 }
 0x75b   : > { %3152 = vmatpush3.bf16.msra.mxu0 %v4393_v26 }
 0x75c   : > { %3153 = vmatprep.subr.bf16.mxu0 %v4400_v29 }
 0x75f   : > { %3154 = vmatpush3.bf16.msra.mxu0 %v4400_v29 }
 0x760   : > { %3159 = vmatprep.subr.bf16.mxu0 %v3930_v31 }
 0x815   : > { %v3137_v14 = vpop.f32.mrb[24].mxu0 }
 0x816   : > { %v1519_v17 = vpop.f32.mrb[25].mxu0  ;;  %v1528_v25 = vadd.f32 %v3137_v14, %v4586_v13  ;;  %v2910_v14 = vld [vmem:[#allocation14 + $0x1] ss:$0 sm:$0xff] }
 0x817   : > { %v1520_v20 = vadd.f32 %v4586_v13, %v1519_v17  ;;  %v3138_v23 = vpop.f32.mrb[26].mxu0 }
 0x818   : > { %v1522_v18 = vpop.f32.mrb[27].mxu0  ;;  %v1531_v61 = vadd.f32 %v3138_v23, %v4586_v13  ;;  %v1536_v45 = vadd.f32 %v1528_v25, %v4508_v43 }
 0x819   : > { %v1523_v21 = vadd.f32 %v4586_v13, %v1522_v18  ;;  %v1534_v26 = vadd.f32 %v1520_v20, %v4502_v63 }
 0x81a   : > { %v1537_v58 = vadd.f32 %v1531_v61, %v4510_v56 }
 0x81b   : > { %1540 = vadd.xlane.f32.xlu0 %v1534_v26  ;;  %v1535_v29 = vadd.f32 %v1523_v21, %v4504_v11  ;;  %v2911_v21 = vld [vmem:[#allocation16 + $0x1] ss:$0 sm:$0xff] }
 0x81d   : > { %1542 = vadd.xlane.f32.xlu1 %v1535_v29 }
 0x81f   : > { %1544 = vadd.xlane.f32.xlu0 %v1536_v45 }
 0x821   : > { %1546 = vadd.xlane.f32.xlu1 %v1537_v58 }
 0x8a8   : > { %v1541_v60 = vpop.xlane.xlu0 %1540 }
 0x8a9   : > { %v1548_v59 = vmul.f32 0.0078125, %v1541_v60 }
 0x8aa   : > { %v1543_v62 = vpop.xlane.xlu1 %1542 }
 0x8ab   : > { %v1552_v37 = vsub.f32 %v1534_v26, %v1548_v59  ;;  %v1549_v39 = vmul.f32 0.0078125, %v1543_v62 }
 0x8ac   : > { %v1545_v40 = vpop.xlane.xlu0 %1544 }
 0x8ad   : > { %v1553_v51 = vsub.f32 %v1535_v29, %v1549_v39  ;;  %v1550_v63 = vmul.f32 0.0078125, %v1545_v40  ;;  %v1556_v38 = vmul.f32 %v1552_v37, %v1552_v37 }
 0x8ae   : > { %v1547_v41 = vpop.xlane.xlu1 %1546 }
 0x8af   : > { %v1554_v16 = vsub.f32 %v1536_v45, %v1550_v63  ;;  %v1551_v19 = vmul.f32 0.0078125, %v1547_v41  ;;  %1560 = vadd.xlane.f32.xlu0 %v1556_v38  ;;  %v1557_v11 = vmul.f32 %v1553_v51, %v1553_v51 }
 0x8b1   : > { %v1555_v22 = vsub.f32 %v1537_v58, %v1551_v19  ;;  %1562 = vadd.xlane.f32.xlu1 %v1557_v11  ;;  %v1558_v43 = vmul.f32 %v1554_v16, %v1554_v16 }
 0x8b3   : > { %1564 = vadd.xlane.f32.xlu0 %v1558_v43  ;;  %v1559_v56 = vmul.f32 %v1555_v22, %v1555_v22 }
 0x8b5   : > { %1566 = vadd.xlane.f32.xlu1 %v1559_v56 }
 0x93c   : > { %v1561_v24 = vpop.xlane.xlu0 %1560 }
 0x93d   : > { %v1568_v8 = vmul.f32 0.0078125, %v1561_v24 }
 0x93e   : > { %v1563_v44 = vpop.xlane.xlu1 %1562 }
 0x93f   : > { %v1572_v46 = vadd.f32 1e-12, %v1568_v8  ;;  %v1569_v47 = vmul.f32 0.0078125, %v1563_v44 }
 0x940   : > { %v1565_v48 = vpop.xlane.xlu0 %1564 }
 0x941   : > { %3495 = vrsqrt.f32 %v1572_v46  ;;  %v1573_v49 = vadd.f32 1e-12, %v1569_v47  ;;  %v1570_v50 = vmul.f32 0.0078125, %v1565_v48 }
 0x942   : > { %v1567_v52 = vpop.xlane.xlu1 %1566 }
 0x943   : > { %3497 = vrsqrt.f32 %v1573_v49  ;;  %v1574_v53 = vadd.f32 1e-12, %v1570_v50  ;;  %v1571_v1 = vmul.f32 0.0078125, %v1567_v52 }
 0x945   : > { %3499 = vrsqrt.f32 %v1574_v53  ;;  %v1575_v55 = vadd.f32 1e-12, %v1571_v1 }
 0x947   : > { %3501 = vrsqrt.f32 %v1575_v55 }
 0x94b   : > { %v3496_v57 = vpop.eup %3495 }
 0x94c   : > { %v1580_v17 = vmul.f32 %v3496_v57, %v1552_v37 }
 0x94d   : > { %v3498_v20 = vpop.eup %3497 }
 0x94e   : > { %v1581_v23 = vmul.f32 %v3498_v20, %v1553_v51  ;;  %v1588_v18 = vmul.f32 %v2910_v14, %v1580_v17 }
 0x94f   : > { %v3500_v25 = vpop.eup %3499 }
 0x950   : > { %v1582_v26 = vmul.f32 %v3500_v25, %v1554_v16  ;;  %v1589_v61 = vmul.f32 %v2910_v14, %v1581_v23  ;;  %v1596_v58 = vadd.f32 %v2911_v21, %v1588_v18 }
 0x951   : > { %v3502_v29 = vpop.eup %3501 }
 0x952   : > { %v1583_v45 = vmul.f32 %v3502_v29, %v1555_v22  ;;  %v1597_v60 = vadd.f32 %v2911_v21, %v1589_v61  ;;  %v1590_v59 = vmul.f32 %v2910_v14, %v1582_v26 }
 0x954   : > { %v1600_v62 = vpack.c.bf16 %v1597_v60, %v1596_v58  ;;  %v1591_v39 = vmul.f32 %v2910_v14, %v1583_v45  ;;  %v1598_v40 = vadd.f32 %v2911_v21, %v1590_v59 }
 0x956   : > { %1635 = vmatmul.mubr.bf16.vlgmr.msra.gmra.mrb[24].mxu1 %v1600_v62  ;;  %3155 = vmatprep.mubr.bf16.mxu0 %v1600_v62  ;;  %v1599_v63 = vadd.f32 %v2911_v21, %v1591_v39 }
 0x957   : > { %1644 = vmatprep.mubr.bf16.mxu1 %v3929_v0 }
 0x958   : > { %v1601_v37 = vpack.c.bf16 %v1599_v63, %v1598_v40 }
 0x95a   : > { %3156 = vmatmul.mubr.bf16.vlgmr.msra.gmra.mrb[28].mxu0 %v1601_v37 }
 0x95b   : > { %3161 = vmatprep.mubr.msk.bf16.mxu0 %vm3931_vm0, %v3930_v31 }
 0x95e   : > { %1645 = vmatmul.mubr.bf16.gmra.mrb[28].mxu1 %v1601_v37 }
 0x95f   : > { %3167 = vmatprep.mubr.msk.bf16.mxu1 %vm3931_vm0, %v3930_v31 }
 0xa29   : > { %v1636_v51 = vpop.f32.mrb[24].mxu1 }
 0xa2a   : > { %v1638_v38 = vpop.f32.mrb[25].mxu1  ;;  %v1637_v8 = vadd.f32 %v1636_v51, %v4414_v42 }
 0xa2b   : > { %v1639_v41 = vadd.f32 %v1638_v38, %v4411_v36  ;;  %v1640_v16 = vpop.f32.mrb[26].mxu1 }
 0xa2c   : > { %v1642_v19 = vpop.f32.mrb[27].mxu1  ;;  %v1641_v47 = vadd.f32 %v1640_v16, %v4414_v42  ;;  %v1704_v52 = vpack.c.bf16 %v1637_v8, %v1637_v8 }
 0xa2d   : > { %v1708_v11 = vpack.c.bf16 %v1639_v41, %v1639_v41  ;;  %v1643_v22 = vadd.f32 %v1642_v19, %v4411_v36  ;;  %v4603_v43 = vpop.f32.mrb[28].mxu0 }
 0xa2e   : > { %v1689_v0 = vpop.f32.mrb[29].mxu0  ;;  %v1705_v57 = vpack.c.bf16 %v1641_v47, %v1641_v47 }
 0xa2f   : > { %v1709_v56 = vpack.c.bf16 %v1643_v22, %v1643_v22  ;;  %v4605_v24 = vpop.f32.mrb[30].mxu0  ;;  %3160 = vmatpush3.bf16.xpose.msra.mxu0 %v1708_v11  ;;  %v1690_v14 = vadd.f32 %v1689_v0, %v4422_v54 }
 0xa30   : > { %v1692_v44 = vpop.f32.mrb[31].mxu0  ;;  %3171 = vmatprep.subr.bf16.mxu0 %v3930_v31 }
 0xa31   : > { %v1646_v46 = vpop.f32.mrb[28].mxu1  ;;  %3166 = vmatpush3.bf16.xpose.msra.mxu1 %v1709_v56  ;;  %v1693_v20 = vadd.f32 %v1692_v44, %v4422_v54 }
 0xa32   : > { %v1648_v48 = vpop.f32.mrb[29].mxu1  ;;  %3177 = vmatprep.subr.bf16.mxu1 %v3930_v31  ;;  %v1647_v23 = vadd.f32 %v1646_v46, %v4414_v42 }
 0xa33   : > { %v1649_v49 = vadd.f32 %v1648_v48, %v4411_v36  ;;  %v1650_v50 = vpop.f32.mrb[30].mxu1  ;;  %v1921_v25 = vpack.c.bf16 %v1693_v20, %v1693_v20 }
 0xa34   : > { %v1652_v53 = vpop.f32.mrb[31].mxu1  ;;  %v1651_v18 = vadd.f32 %v1650_v50, %v4414_v42  ;;  %v1706_v21 = vpack.c.bf16 %v1647_v23, %v1647_v23 }
 0xa35   : > { %v1710_v1 = vpack.c.bf16 %v1649_v49, %v1649_v49  ;;  %v1653_v55 = vadd.f32 %v1652_v53, %v4411_v36  ;;  %v1920_v36 = vpack.c.bf16 %v1690_v14, %v1690_v14  ;;  %v1974_v29 = vsel %vm1043_vm1, %v1921_v25, 0 }
 0xa36   : > { %3162 = vmatmul.mubr.bf16.vlgmr.msra.gmra.mrb[32].mxu0 %v1704_v52  ;;  %v1707_v61 = vpack.c.bf16 %v1651_v18, %v1651_v18 }
 0xa37   : > { %v1711_v17 = vpack.c.bf16 %v1653_v55, %v1653_v55  ;;  %3172 = vmatpush3.bf16.xpose.msra.mxu0 %v1710_v1  ;;  %3173 = vmatprep.mubr.msk.bf16.mxu0 %vm3931_vm0, %v3930_v31  ;;  %v1928_v26 = vsel %vm1043_vm1, %v1920_v36, 0 }
 0xa38   : > { %3168 = vmatmul.mubr.bf16.vlgmr.msra.gmra.mrb[32].mxu1 %v1705_v57  ;;  %3183 = vmatprep.subr.bf16.mxu0 %v3930_v31 }
 0xa39   : > { %3178 = vmatpush3.bf16.xpose.msra.mxu1 %v1711_v17  ;;  %3179 = vmatprep.mubr.msk.bf16.mxu1 %vm3931_vm0, %v3930_v31 }
 0xa3a   : > { %3189 = vmatprep.subr.bf16.mxu1 %v3930_v31 }
 0xa3e   : > { %3174 = vmatmul.mubr.bf16.vlgmr.msra.gmra.mrb[36].mxu0 %v1706_v21 }
 0xa3f   : > { %3184 = vmatpush3.bf16.msra.mxu0 %v1928_v26  ;;  %3185 = vmatprep.mubr.msk.bf16.mxu0 %vm3931_vm0, %v3930_v31 }
 0xa40   : > { %3180 = vmatmul.mubr.bf16.vlgmr.msra.gmra.mrb[36].mxu1 %v1707_v61  ;;  %3195 = vmatprep.subr.bf16.mxu0 %v3930_v31 }
 0xa41   : > { %3190 = vmatpush3.bf16.msra.mxu1 %v1974_v29  ;;  %3191 = vmatprep.mubr.msk.bf16.mxu1 %vm3931_vm0, %v3930_v31 }
 0xa42   : > { %3201 = vmatprep.subr.bf16.mxu1 %v3930_v31 }
 0xb09   : > { %v1746_v42 = vpop.f32.mrb[32].mxu0 }
 0xb0a   : > { %v3163_v45 = vpop.f32.mrb[33].mxu0  ;;  %v1872_v58 = vsel %vm987_vm2, %v1746_v42, -inf }
 0xb0b   : > { %1873 = vmax.xlane.f32.xlu0 %v1872_v58  ;;  %v1749_v60 = vpop.f32.mrb[34].mxu0  ;;  %v1786_v59 = vpop.f32.mrb[32].mxu1  ;;  %v1701_v58 = vadd.f32 %v4605_v24, %v4422_v54 }
 0xb0c   : > { %v3164_v62 = vpop.f32.mrb[35].mxu0  ;;  %v3169_v39 = vpop.f32.mrb[33].mxu1  ;;  %v1875_v40 = vsel %vm987_vm2, %v1786_v59, -inf }
 0xb0d   : > { %1876 = vmax.xlane.f32.xlu1 %v1875_v40  ;;  %v1789_v63 = vpop.f32.mrb[34].mxu1 }
 0xb0e   : > { %v3170_v37 = vpop.f32.mrb[35].mxu1  ;;  %v1923_v63 = vpack.c.bf16 %v1701_v58, %v1701_v58 }
 0xb11   : > { %v1826_v51 = vpop.f32.mrb[36].mxu0 }
 0xb12   : > { %v3175_v38 = vpop.f32.mrb[37].mxu0  ;;  %v1878_v41 = vsel %vm987_vm2, %v1826_v51, -inf }
 0xb13   : > { %v1866_v16 = vpop.f32.mrb[36].mxu1  ;;  %1879 = vmax.xlane.f32.xlu0 %v1878_v41  ;;  %v1829_v19 = vpop.f32.mrb[38].mxu0 }
 0xb14   : > { %v3176_v11 = vpop.f32.mrb[39].mxu0  ;;  %v3181_v22 = vpop.f32.mrb[37].mxu1  ;;  %v1881_v0 = vsel %vm987_vm2, %v1866_v16, -inf }
 0xb15   : > { %1882 = vmax.xlane.f32.xlu1 %v1881_v0  ;;  %v1869_v56 = vpop.f32.mrb[38].mxu1 }
 0xb16   : > { %v3182_v8 = vpop.f32.mrb[39].mxu1 }
 0xb98   : > { %v1874_v44 = vpop.xlane.xlu0 %1873 }
 0xb99   : > { %v1884_v46 = vsub.f32 %v1746_v42, %v1874_v44  ;;  %v1698_v42 = vadd.f32 %v4603_v43, %v4422_v54  ;;  %v2066_v54 = vsel %vm1043_vm1, %v1923_v63, 0 }
 0xb9a   : > { %v1877_v47 = vpop.xlane.xlu1 %1876 }
 0xb9b   : > { %v1888_v48 = vmul.f32 1.442695, %v1884_v46  ;;  %v1885_v49 = vsub.f32 %v1786_v59, %v1877_v47  ;;  %v1922_v62 = vpack.c.bf16 %v1698_v42, %v1698_v42 }
 0xb9d   : > { %3503 = vpow2.f32 %v1888_v48  ;;  %v1890_v50 = vmul.f32 1.442695, %v1885_v49  ;;  %v2020_v38 = vsel %vm1043_vm1, %v1922_v62, 0 }
 0xb9f   : > { %3505 = vpow2.f32 %v1890_v50 }
 0xba0   : > { %v1880_v52 = vpop.xlane.xlu0 %1879 }
 0xba1   : > { %v1886_v53 = vsub.f32 %v1826_v51, %v1880_v52 }
 0xba2   : > { %v1883_v1 = vpop.xlane.xlu1 %1882 }
 0xba3   : > { %v1892_v55 = vmul.f32 1.442695, %v1886_v53  ;;  %v1887_v57 = vsub.f32 %v1866_v16, %v1883_v1 }
 0xba5   : > { %3507 = vpow2.f32 %v1892_v55  ;;  %v1894_v14 = vmul.f32 1.442695, %v1887_v57 }
 0xba7   : > { %v3504_v17 = vpop.eup %3503  ;;  %3509 = vpow2.f32 %v1894_v14 }
 0xba8   : > { %v1896_v20 = vsel %vm987_vm2, %v3504_v17, 0.0 }
 0xba9   : > { %v3506_v23 = vpop.eup %3505  ;;  %1897 = vadd.xlane.f32.xlu0 %v1896_v20 }
 0xbaa   : > { %v1899_v36 = vsel %vm987_vm2, %v3506_v23, 0.0 }
 0xbab   : > { %1900 = vadd.xlane.f32.xlu1 %v1899_v36 }
 0xbaf   : > { %v3508_v18 = vpop.eup %3507 }
 0xbb0   : > { %v1902_v25 = vsel %vm987_vm2, %v3508_v18, 0.0 }
 0xbb1   : > { %v3510_v21 = vpop.eup %3509  ;;  %1903 = vadd.xlane.f32.xlu0 %v1902_v25 }
 0xbb2   : > { %v1905_v26 = vsel %vm987_vm2, %v3510_v21, 0.0 }
 0xbb3   : > { %1906 = vadd.xlane.f32.xlu1 %v1905_v26 }
 0xc36   : > { %v1898_v61 = vpop.xlane.xlu0 %1897 }
 0xc37   : > { %3511 = vrcp.f32 %v1898_v61 }
 0xc38   : > { %v1901_v29 = vpop.xlane.xlu1 %1900 }
 0xc39   : > { %3513 = vrcp.f32 %v1901_v29 }
 0xc3e   : > { %v1904_v45 = vpop.xlane.xlu0 %1903 }
 0xc3f   : > { %3515 = vrcp.f32 %v1904_v45 }
 0xc40   : > { %v1907_v60 = vpop.xlane.xlu1 %1906 }
 0xc41   : > { %v3512_v59 = vpop.eup %3511  ;;  %3517 = vrcp.f32 %v1907_v60 }
 0xc42   : > { %v1912_v39 = vmul.f32 %v3512_v59, %v3504_v17  ;;  %v2916_v59 = vld [vmem:[#allocation14 + $0x2] ss:$0 sm:$0xff] }
 0xc43   : > { %v3514_v40 = vpop.eup %3513 }
 0xc44   : > { %v1913_v37 = vmul.f32 %v3514_v40, %v3506_v23  ;;  %v1916_v51 = vpack.c.bf16 %v1912_v39, %v1912_v39 }
 0xc46   : > { %3186 = vmatmul.mubr.msk.bf16.vlgmr.msra.gmra.mrb[40].mxu0 %vm987_vm2, %v1916_v51  ;;  %v1917_v41 = vpack.c.bf16 %v1913_v37, %v1913_v37  ;;  %v2917_v37 = vld [vmem:[#allocation16 + $0x2] ss:$0 sm:$0xff] }
 0xc47   : > { %3196 = vmatpush3.bf16.msra.mxu0 %v2020_v38  ;;  %3197 = vmatprep.mubr.msk.bf16.mxu0 %vm3931_vm0, %v3930_v31 }
 0xc48   : > { %3192 = vmatmul.mubr.msk.bf16.vlgmr.msra.gmra.mrb[40].mxu1 %vm987_vm2, %v1917_v41  ;;  %3207 = vmatprep.subr.bf16.mxu0 %v4469_v12 }
 0xc49   : > { %v3516_v43 = vpop.eup %3515  ;;  %3202 = vmatpush3.bf16.msra.mxu1 %v2066_v54  ;;  %3203 = vmatprep.mubr.msk.bf16.mxu1 %vm3931_vm0, %v3930_v31 }
 0xc4a   : > { %v1914_v24 = vmul.f32 %v3516_v43, %v3508_v18  ;;  %3227 = vmatprep.subr.bf16.mxu1 %v4531_v2 }
 0xc4b   : > { %v3518_v16 = vpop.eup %3517 }
 0xc4c   : > { %v1915_v19 = vmul.f32 %v3518_v16, %v3510_v21  ;;  %v1918_v11 = vpack.c.bf16 %v1914_v24, %v1914_v24 }
 0xc4e   : > { %3198 = vmatmul.mubr.msk.bf16.vlgmr.msra.gmra.mrb[44].mxu0 %vm987_vm2, %v1918_v11  ;;  %v1919_v22 = vpack.c.bf16 %v1915_v19, %v1915_v19 }
 0xc4f   : > { %3208 = vmatpush3.bf16.msra.mxu0 %v4469_v12 }
 0xc50   : > { %3204 = vmatmul.mubr.msk.bf16.vlgmr.msra.gmra.mrb[44].mxu1 %vm987_vm2, %v1919_v22  ;;  %3209 = vmatprep.subr.bf16.mxu0 %v4473_v27 }
 0xc51   : > { %3228 = vmatpush3.bf16.msra.mxu1 %v4531_v2 }
 0xc52   : > { %3229 = vmatprep.subr.bf16.mxu1 %v4535_v3 }
 0xc53   : > { %3210 = vmatpush3.bf16.msra.mxu0 %v4473_v27 }
 0xc54   : > { %3211 = vmatprep.subr.bf16.mxu0 %v4477_v28 }
 0xc55   : > { %3230 = vmatpush3.bf16.msra.mxu1 %v4535_v3 }
 0xc56   : > { %3231 = vmatprep.subr.bf16.mxu1 %v4539_v4 }
 0xc57   : > { %3212 = vmatpush3.bf16.msra.mxu0 %v4477_v28 }
 0xc58   : > { %3213 = vmatprep.subr.bf16.mxu0 %v4481_v30 }
 0xc59   : > { %3232 = vmatpush3.bf16.msra.mxu1 %v4539_v4 }
 0xc5a   : > { %3233 = vmatprep.subr.bf16.mxu1 %v4543_v5 }
 0xc5b   : > { %3214 = vmatpush3.bf16.msra.mxu0 %v4481_v30 }
 0xc5c   : > { %3215 = vmatprep.subr.bf16.mxu0 %v4485_v32 }
 0xc5d   : > { %3234 = vmatpush3.bf16.msra.mxu1 %v4543_v5 }
 0xc5e   : > { %3235 = vmatprep.subr.bf16.mxu1 %v4546_v6 }
 0xc5f   : > { %3216 = vmatpush3.bf16.msra.mxu0 %v4485_v32 }
 0xc60   : > { %3217 = vmatprep.subr.bf16.mxu0 %v4489_v33 }
 0xc61   : > { %3236 = vmatpush3.bf16.msra.mxu1 %v4546_v6 }
 0xc62   : > { %3237 = vmatprep.subr.bf16.mxu1 %v4550_v7 }
 0xc63   : > { %3218 = vmatpush3.bf16.msra.mxu0 %v4489_v33 }
 0xc64   : > { %3219 = vmatprep.subr.bf16.mxu0 %v4493_v34 }
 0xc65   : > { %3238 = vmatpush3.bf16.msra.mxu1 %v4550_v7 }
 0xc66   : > { %3239 = vmatprep.subr.bf16.mxu1 %v4554_v9 }
 0xc67   : > { %3220 = vmatpush3.bf16.msra.mxu0 %v4493_v34 }
 0xc68   : > { %3221 = vmatprep.subr.bf16.mxu0 %v4495_v35 }
 0xc69   : > { %3240 = vmatpush3.bf16.msra.mxu1 %v4554_v9 }
 0xc6a   : > { %3241 = vmatprep.subr.bf16.mxu1 %v4558_v10 }
 0xc6b   : > { %3222 = vmatpush3.bf16.msra.mxu0 %v4495_v35 }
 0xc6c   : > { %3247 = vmatprep.subr.mxu0 %v3930_v31 }
 0xc6d   : > { %3242 = vmatpush3.bf16.msra.mxu1 %v4558_v10 }
 0xc6e   : > { %3252 = vmatprep.subr.mxu1 %v3930_v31 }
 0xd19   : > { %v1964_v12 = vpop.f32.mrb[40].mxu0 }
 0xd1a   : > { %2110 = vadd.xlane.f32.xlu0 %v1964_v12  ;;  %v3187_v27 = vpop.f32.mrb[41].mxu0 }
 0xd1b   : > { %v1967_v28 = vpop.f32.mrb[42].mxu0  ;;  %v2010_v30 = vpop.f32.mrb[40].mxu1 }
 0xd1c   : > { %2112 = vadd.xlane.f32.xlu1 %v2010_v30  ;;  %v3188_v32 = vpop.f32.mrb[43].mxu0  ;;  %v3193_v33 = vpop.f32.mrb[41].mxu1 }
 0xd1d   : > { %v2013_v34 = vpop.f32.mrb[42].mxu1 }
 0xd1e   : > { %v3194_v2 = vpop.f32.mrb[43].mxu1 }
 0xd21   : > { %v2056_v3 = vpop.f32.mrb[44].mxu0 }
 0xd22   : > { %2114 = vadd.xlane.f32.xlu0 %v2056_v3  ;;  %v3199_v4 = vpop.f32.mrb[45].mxu0 }
 0xd23   : > { %v2059_v35 = vpop.f32.mrb[46].mxu0  ;;  %v2102_v5 = vpop.f32.mrb[44].mxu1 }
 0xd24   : > { %2116 = vadd.xlane.f32.xlu1 %v2102_v5  ;;  %v3200_v6 = vpop.f32.mrb[47].mxu0  ;;  %v3205_v7 = vpop.f32.mrb[45].mxu1 }
 0xd25   : > { %v2105_v9 = vpop.f32.mrb[46].mxu1 }
 0xd26   : > { %v3206_v10 = vpop.f32.mrb[47].mxu1 }
 0xda7   : > { %v2111_v0 = vpop.xlane.xlu0 %2110 }
 0xda8   : > { %v2118_v56 = vmul.f32 0.0078125, %v2111_v0 }
 0xda9   : > { %v2113_v8 = vpop.xlane.xlu1 %2112 }
 0xdaa   : > { %v2122_v44 = vsub.f32 %v1964_v12, %v2118_v56  ;;  %v2119_v46 = vmul.f32 0.0078125, %v2113_v8 }
 0xdac   : > { %v2123_v47 = vsub.f32 %v2010_v30, %v2119_v46  ;;  %v2126_v48 = vmul.f32 %v2122_v44, %v2122_v44 }
 0xdae   : > { %2130 = vadd.xlane.f32.xlu0 %v2126_v48  ;;  %v2127_v49 = vmul.f32 %v2123_v47, %v2123_v47 }
 0xdaf   : > { %v2115_v50 = vpop.xlane.xlu0 %2114 }
 0xdb0   : > { %v2120_v52 = vmul.f32 0.0078125, %v2115_v50  ;;  %2132 = vadd.xlane.f32.xlu1 %v2127_v49 }
 0xdb1   : > { %v2117_v53 = vpop.xlane.xlu1 %2116 }
 0xdb2   : > { %v2124_v1 = vsub.f32 %v2056_v3, %v2120_v52  ;;  %v2121_v55 = vmul.f32 0.0078125, %v2117_v53 }
 0xdb4   : > { %v2125_v57 = vsub.f32 %v2102_v5, %v2121_v55  ;;  %v2128_v14 = vmul.f32 %v2124_v1, %v2124_v1 }
 0xdb6   : > { %2134 = vadd.xlane.f32.xlu0 %v2128_v14  ;;  %v2129_v17 = vmul.f32 %v2125_v57, %v2125_v57 }
 0xdb8   : > { %2136 = vadd.xlane.f32.xlu1 %v2129_v17 }
 0xe3b   : > { %v2131_v20 = vpop.xlane.xlu0 %2130 }
 0xe3c   : > { %v2138_v23 = vmul.f32 0.0078125, %v2131_v20 }
 0xe3d   : > { %v2133_v36 = vpop.xlane.xlu1 %2132 }
 0xe3e   : > { %v2142_v18 = vadd.f32 1e-12, %v2138_v23  ;;  %v2139_v25 = vmul.f32 0.0078125, %v2133_v36 }
 0xe40   : > { %3519 = vrsqrt.f32 %v2142_v18  ;;  %v2143_v21 = vadd.f32 1e-12, %v2139_v25 }
 0xe42   : > { %3521 = vrsqrt.f32 %v2143_v21 }
 0xe43   : > { %v2135_v26 = vpop.xlane.xlu0 %2134 }
 0xe44   : > { %v2140_v61 = vmul.f32 0.0078125, %v2135_v26 }
 0xe45   : > { %v2137_v29 = vpop.xlane.xlu1 %2136 }
 0xe46   : > { %v2144_v42 = vadd.f32 1e-12, %v2140_v61  ;;  %v2141_v45 = vmul.f32 0.0078125, %v2137_v29 }
 0xe48   : > { %3523 = vrsqrt.f32 %v2144_v42  ;;  %v2145_v58 = vadd.f32 1e-12, %v2141_v45 }
 0xe4a   : > { %v3520_v60 = vpop.eup %3519  ;;  %3525 = vrsqrt.f32 %v2145_v58 }
 0xe4b   : > { %v2150_v62 = vmul.f32 %v3520_v60, %v2122_v44 }
 0xe4c   : > { %v3522_v39 = vpop.eup %3521 }
 0xe4d   : > { %v2151_v40 = vmul.f32 %v3522_v39, %v2123_v47  ;;  %v2158_v63 = vmul.f32 %v2916_v59, %v2150_v62 }
 0xe4f   : > { %v2159_v51 = vmul.f32 %v2916_v59, %v2151_v40  ;;  %v4687_v38 = vadd.f32 %v2917_v37, %v2158_v63 }
 0xe51   : > { %v4689_v41 = vadd.f32 %v2917_v37, %v2159_v51 }
 0xe52   : > { %v3524_v54 = vpop.eup %3523 }
 0xe53   : > { %v2152_v43 = vmul.f32 %v3524_v54, %v2124_v1  ;;  %v2170_v24 = vpack.c.bf16 %v4689_v41, %v4687_v38 }
 0xe54   : > { %v3526_v16 = vpop.eup %3525 }
 0xe55   : > { %v2153_v19 = vmul.f32 %v3526_v16, %v2125_v57  ;;  %3223 = vmatprep.mubr.bf16.mxu0 %v2170_v24  ;;  %v2160_v11 = vmul.f32 %v2916_v59, %v2152_v43 }
 0xe57   : > { %v2161_v22 = vmul.f32 %v2916_v59, %v2153_v19  ;;  %v4693_v12 = vadd.f32 %v2917_v37, %v2160_v11 }
 0xe59   : > { %v4695_v27 = vadd.f32 %v2917_v37, %v2161_v22 }
 0xe5b   : > { %v2171_v28 = vpack.c.bf16 %v4695_v27, %v4693_v12 }
 0xe5d   : > { %3224 = vmatmul.mubr.bf16.vlgmr.msra.gmra.mrb[48].mxu0 %v2171_v28 }
 0xe5e   : > { %3249 = vmatprep.mubr.msk.f32.mxu0 %vm3931_vm0, %v3930_v31 }
 0xf30   : > { %v3225_v30 = vpop.f32.mrb[48].mxu0 }
 0xf31   : > { %v2215_v32 = vadd.f32 %v3225_v30, %v4564_v15  ;;  %v2206_v33 = vpop.f32.mrb[49].mxu0 }
 0xf32   : > { %v2207_v34 = vadd.f32 %v4564_v15, %v2206_v33  ;;  %v3226_v2 = vpop.f32.mrb[50].mxu0 }
 0xf33   : > { %v2227_v3 = vmul.f32 0.044715, %v2215_v32  ;;  %v2218_v4 = vadd.f32 %v3226_v2, %v4564_v15  ;;  %v2209_v35 = vpop.f32.mrb[51].mxu0  ;;  %v2223_v25 = vmul.f32 0.5, %v2215_v32 }
 0xf34   : > { %v2225_v5 = vmul.f32 0.044715, %v2207_v34  ;;  %v2210_v6 = vadd.f32 %v4564_v15, %v2209_v35  ;;  %v2221_v61 = vmul.f32 0.5, %v2207_v34 }
 0xf35   : > { %v2231_v7 = vmul.f32 %v2227_v3, %v2215_v32  ;;  %v2228_v9 = vmul.f32 0.044715, %v2218_v4  ;;  %v2224_v21 = vmul.f32 0.5, %v2218_v4 }
 0xf36   : > { %v2229_v10 = vmul.f32 %v2225_v5, %v2207_v34  ;;  %v2226_v0 = vmul.f32 0.044715, %v2210_v6  ;;  %v2222_v29 = vmul.f32 0.5, %v2210_v6 }
 0xf37   : > { %v2235_v56 = vmul.f32 %v2231_v7, %v2215_v32  ;;  %v2232_v8 = vmul.f32 %v2228_v9, %v2218_v4 }
 0xf38   : > { %v2233_v44 = vmul.f32 %v2229_v10, %v2207_v34  ;;  %v2230_v46 = vmul.f32 %v2226_v0, %v2210_v6 }
 0xf39   : > { %v2239_v47 = vadd.f32 %v2235_v56, %v2215_v32  ;;  %v2236_v48 = vmul.f32 %v2232_v8, %v2218_v4 }
 0xf3a   : > { %v2234_v49 = vmul.f32 %v2230_v46, %v2210_v6  ;;  %v2237_v50 = vadd.f32 %v2233_v44, %v2207_v34 }
 0xf3b   : > { %v2243_v52 = vmul.f32 0.7978846, %v2239_v47  ;;  %v2240_v53 = vadd.f32 %v2236_v48, %v2218_v4 }
 0xf3c   : > { %v2238_v1 = vadd.f32 %v2234_v49, %v2210_v6  ;;  %v2241_v55 = vmul.f32 0.7978846, %v2237_v50 }
 0xf3d   : > { %3527 = vtanh.f32 %v2243_v52  ;;  %v2244_v57 = vmul.f32 0.7978846, %v2240_v53 }
 0xf3e   : > { %v2242_v14 = vmul.f32 0.7978846, %v2238_v1  ;;  %3529 = vtanh.f32 %v2241_v55  ;;  %v2918_v1 = vld [vmem:[#allocation14 + $0x3] ss:$0 sm:$0xff] }
 0xf3f   : > { %3531 = vtanh.f32 %v2244_v57 }
 0xf40   : > { %3533 = vtanh.f32 %v2242_v14  ;;  %v2919_v14 = vld [vmem:[#allocation16 + $0x3] ss:$0 sm:$0xff] }
 0xf47   : > { %v3528_v15 = vpop.eup %3527 }
 0xf48   : > { %v3530_v17 = vpop.eup %3529  ;;  %v2251_v20 = vadd.f32 1.0, %v3528_v15 }
 0xf49   : > { %v3532_v23 = vpop.eup %3531  ;;  %v2249_v36 = vadd.f32 1.0, %v3530_v17 }
 0xf4a   : > { %v3534_v18 = vpop.eup %3533  ;;  %v2252_v26 = vadd.f32 1.0, %v3532_v23  ;;  %v2255_v45 = vmul.f32 %v2251_v20, %v2223_v25 }
 0xf4b   : > { %v2250_v42 = vadd.f32 1.0, %v3534_v18  ;;  %v2253_v60 = vmul.f32 %v2249_v36, %v2221_v61  ;;  %v2374_v18 = vld [vmem:[#allocation17] sm:$0xf] }
 0xf4c   : > { %v2256_v58 = vmul.f32 %v2252_v26, %v2224_v21 }
 0xf4d   : > { %v2254_v59 = vmul.f32 %v2250_v42, %v2222_v29 }
 0xf4e   : > { %v2258_v62 = vpack.c.bf16 %v2256_v58, %v2255_v45 }
 0xf4f   : > { %v2257_v39 = vpack.c.bf16 %v2254_v59, %v2253_v60 }
 0xf51   : > { %3243 = vmatprep.mubr.bf16.mxu1 %v2257_v39 }
 0xf52   : > { %3244 = vmatmul.mubr.bf16.vlgmr.msra.gmra.mrb[48].mxu1 %v2258_v62 }
 0xf53   : > { %3254 = vmatprep.mubr.msk.f32.mxu1 %vm3931_vm0, %v3930_v31 }
0x1025   : > { %v3245_v40 = vpop.f32.mrb[48].mxu1 }
0x1026   : > { %v2293_v63 = vpop.f32.mrb[49].mxu1  ;;  %v2302_v43 = vadd.f32 %v3245_v40, %v4586_v13 }
0x1027   : > { %v2294_v37 = vadd.f32 %v4586_v13, %v2293_v63  ;;  %v3246_v51 = vpop.f32.mrb[50].mxu1 }
0x1028   : > { %v2296_v54 = vpop.f32.mrb[51].mxu1  ;;  %v2305_v19 = vadd.f32 %v3246_v51, %v4586_v13  ;;  %v2310_v22 = vadd.f32 %v2302_v43, %v4693_v12 }
0x1029   : > { %v2297_v24 = vadd.f32 %v4586_v13, %v2296_v54  ;;  %v2308_v16 = vadd.f32 %v2294_v37, %v4687_v38 }
0x102a   : > { %v2311_v28 = vadd.f32 %v2305_v19, %v4695_v27 }
0x102b   : > { %2314 = vadd.xlane.f32.xlu0 %v2308_v16  ;;  %v2309_v11 = vadd.f32 %v2297_v24, %v4689_v41 }
0x102d   : > { %2316 = vadd.xlane.f32.xlu1 %v2309_v11 }
0x102f   : > { %2318 = vadd.xlane.f32.xlu0 %v2310_v22 }
0x1031   : > { %2320 = vadd.xlane.f32.xlu1 %v2311_v28 }
0x10b8   : > { %v2315_v30 = vpop.xlane.xlu0 %2314 }
0x10b9   : > { %v2322_v32 = vmul.f32 0.0078125, %v2315_v30 }
0x10ba   : > { %v2317_v33 = vpop.xlane.xlu1 %2316 }
0x10bb   : > { %v2326_v34 = vsub.f32 %v2308_v16, %v2322_v32  ;;  %v2323_v2 = vmul.f32 0.0078125, %v2317_v33 }
0x10bc   : > { %v2319_v3 = vpop.xlane.xlu0 %2318 }
0x10bd   : > { %v2327_v4 = vsub.f32 %v2309_v11, %v2323_v2  ;;  %v2324_v38 = vmul.f32 0.0078125, %v2319_v3  ;;  %v2330_v35 = vmul.f32 %v2326_v34, %v2326_v34 }
0x10be   : > { %v2321_v13 = vpop.xlane.xlu1 %2320 }
0x10bf   : > { %v2328_v5 = vsub.f32 %v2310_v22, %v2324_v38  ;;  %v2325_v6 = vmul.f32 0.0078125, %v2321_v13  ;;  %2334 = vadd.xlane.f32.xlu0 %v2330_v35  ;;  %v2331_v41 = vmul.f32 %v2327_v4, %v2327_v4 }
0x10c1   : > { %v2329_v7 = vsub.f32 %v2311_v28, %v2325_v6  ;;  %2336 = vadd.xlane.f32.xlu1 %v2331_v41  ;;  %v2332_v12 = vmul.f32 %v2328_v5, %v2328_v5 }
0x10c3   : > { %2338 = vadd.xlane.f32.xlu0 %v2332_v12  ;;  %v2333_v27 = vmul.f32 %v2329_v7, %v2329_v7 }
0x10c5   : > { %2340 = vadd.xlane.f32.xlu1 %v2333_v27 }
0x114c   : > { %v2335_v9 = vpop.xlane.xlu0 %2334 }
0x114d   : > { %v2342_v10 = vmul.f32 0.0078125, %v2335_v9 }
0x114e   : > { %v2337_v0 = vpop.xlane.xlu1 %2336 }
0x114f   : > { %v2346_v56 = vadd.f32 1e-12, %v2342_v10  ;;  %v2343_v8 = vmul.f32 0.0078125, %v2337_v0 }
0x1150   : > { %v2339_v44 = vpop.xlane.xlu0 %2338 }
0x1151   : > { %3535 = vrsqrt.f32 %v2346_v56  ;;  %v2347_v46 = vadd.f32 1e-12, %v2343_v8  ;;  %v2344_v47 = vmul.f32 0.0078125, %v2339_v44 }
0x1152   : > { %v2341_v48 = vpop.xlane.xlu1 %2340 }
0x1153   : > { %3537 = vrsqrt.f32 %v2347_v46  ;;  %v2348_v49 = vadd.f32 1e-12, %v2344_v47  ;;  %v2345_v50 = vmul.f32 0.0078125, %v2341_v48 }
0x1155   : > { %3539 = vrsqrt.f32 %v2348_v49  ;;  %v2349_v52 = vadd.f32 1e-12, %v2345_v50 }
0x1157   : > { %3541 = vrsqrt.f32 %v2349_v52 }
0x115b   : > { %v3536_v53 = vpop.eup %3535 }
0x115c   : > { %v2354_v55 = vmul.f32 %v3536_v53, %v2326_v34 }
0x115d   : > { %v3538_v57 = vpop.eup %3537 }
0x115e   : > { %v2362_v15 = vmul.f32 %v2918_v1, %v2354_v55  ;;  %v2355_v17 = vmul.f32 %v3538_v57, %v2327_v4 }
0x115f   : > { %v3540_v20 = vpop.eup %3539 }
0x1160   : > { %v2370_v23 = vadd.f32 %v2919_v14, %v2362_v15  ;;  %v2363_v36 = vmul.f32 %v2918_v1, %v2355_v17  ;;  %v2356_v25 = vmul.f32 %v3540_v20, %v2328_v5 }
0x1161   : > { %v3542_v21 = vpop.eup %3541 }
0x1162   : > { %3248 = vmatpush3.msra.mxu0 %v2370_v23  ;;  %v2371_v26 = vadd.f32 %v2919_v14, %v2363_v36  ;;  %v2364_v61 = vmul.f32 %v2918_v1, %v2356_v25  ;;  %v2357_v29 = vmul.f32 %v3542_v21, %v2329_v7 }
0x1163   : > { %3257 = vmatprep.subr.mxu0 %v3930_v31  ;;  %3250 = vmatmul.mubr.msk.f32.vlgmr.msra.gmra.mrb[52].mxu0 %vm987_vm2, %v2374_v18 }
0x1164   : > { %3253 = vmatpush3.msra.mxu1 %v2371_v26  ;;  %v2372_v42 = vadd.f32 %v2919_v14, %v2364_v61  ;;  %v2365_v45 = vmul.f32 %v2918_v1, %v2357_v29  ;;  %3259 = vmatprep.mubr.msk.f32.mxu0 %vm3931_vm0, %v3930_v31 }
0x1165   : > { %3262 = vmatprep.subr.mxu1 %v3930_v31  ;;  %3255 = vmatmul.mubr.msk.f32.vlgmr.msra.gmra.mrb[52].mxu1 %vm987_vm2, %v2374_v18 }
0x1166   : > { %3258 = vmatpush3.msra.mxu0 %v2372_v42  ;;  %v2373_v58 = vadd.f32 %v2919_v14, %v2365_v45  ;;  %3264 = vmatprep.mubr.msk.f32.mxu1 %vm3931_vm0, %v3930_v31 }
0x1167   : > { %3260 = vmatmul.mubr.msk.f32.vlgmr.msra.gmra.mrb[54].mxu0 %vm987_vm2, %v2374_v18 }
0x1168   : > { %3263 = vmatpush3.msra.mxu1 %v2373_v58 }
0x1169   : > { %3265 = vmatmul.mubr.msk.f32.vlgmr.msra.gmra.mrb[54].mxu1 %vm987_vm2, %v2374_v18 }
0x1236   : > { %v2444_v60 = vpop.f32.mrb[52].mxu0 }
0x1237   : > { %2658 = vst [vmem:[%s496_s28] sm:$0xf] %v2444_v60  ;;  %v3251_v59 = vpop.f32.mrb[53].mxu0 }
0x1238   : > { %v2514_v62 = vpop.f32.mrb[52].mxu1 }
0x1239   : > { %2659 = vst [vmem:[%s496_s28 + $0x4] sm:$0xf] %v2514_v62  ;;  %v3256_v31 = vpop.f32.mrb[53].mxu1 }
0x123a   : > { %v2584_v39 = vpop.f32.mrb[54].mxu0 }
0x123b   : > { %2660 = vst [vmem:[%s496_s28 + $0x8] sm:$0xf] %v2584_v39  ;;  %v3261_v40 = vpop.f32.mrb[55].mxu0 }
0x123c   : > { %v2654_v63 = vpop.f32.mrb[54].mxu1 }
0x123d   : > { %2661 = vst [vmem:[%s496_s28 + $0xc] sm:$0xf] %v2654_v63  ;;  %v3266_v37 = vpop.f32.mrb[55].mxu1 }
0x123e   : > { %3838 = shalt.err (!%p3835_p3)
}
0x123f   : > { %s3839_s21 = scalar_lea.hbm %s4732_s20, 256  ;;  %s3843_s11 = scalar_lea.hbm %s4816_s17, 512 }
0x1240   : > { %p3840_p0 = scmp.ne.s32.totalorder %s4732_s20, %s3839_s21  ;;  %p3844_p7 = scmp.lt.u32.totalorder %s4732_s20, %s4816_s17 }
0x1241   : > { %p3845_p10 = scmp.lt.u32.totalorder %s3843_s11, %s3839_s21  ;;  %p3847_p11 = scmp.lt.u32.totalorder %s3839_s21, %s4732_s20 }
0x1242   : > { %p3841_p5 = pnand %p3840_p0, %p4817_p12 }
0x1243   : > { %p3846_p1 = por %p3845_p10, %p3844_p7 }
0x1244   : > { %p3842_p2 = pneg %p3841_p5 }
0x1245   : > { %p3848_p13 = por %p3847_p11, %p3846_p1 }
0x1247   : > { %p3849_p8 = pnand %p3848_p13, %p3842_p2 }
0x1249   : > { %3852 = shalt.err (!%p3849_p8)
}
0x124a   : > { %s3933_s24 = smov 64   ;;  %s3934_s30 = smov 4  }
0x124b   : > { %3305 = dma.vmem_to_hbm [thread:$0]  (%p4817_p12), %s4727_s18, 256, %s4732_s20, %s2663_s19, %s3933_s24, %s3933_s24, %s3934_s30  }
0x124c PF: > { %s2691_s1 = sand.u32 1, %s3899_s13   ;;  %p4818_p6 = scmp.ne.s32.totalorder %s4802_s27, 0 }
0x124d   : > { %p4819_p9 = scmp.ge.s32.totalorder %s3911_s16, 2  ;;  %s2692_s21 = scalar_lea.sflag [#allocation4], %s2691_s1 }
0x124f   : > { %p3340_p4 = pnand %p4819_p9, %p4818_p6 }
0x1251   : > { %3894 = dma.done.wait (!%p3340_p4), %s2692_s21, 256  }
0x1252   : > { %3896 = vsyncadd (!%p3340_p4), %s2692_s21, 4294967040  ;;  %p28_p3 = scmp.ge.s32.totalorder %s4216_s23, 4   ;;  %s4820_s13 = smov %s3903_s14 }
0x1253   : > { %s4821_s14 = smov %s3907_s15  ;;  %s4822_s15 = smov %s4228_s10 }
0x1254   : > { %s4823_s16 = smov %s4216_s23  ;;  %30 = sbr.rel (!%p28_p3) target bundleno = 13 (0xd), region = 141 }
0x125b   :  { %2697 = vsyncpa [#allocation3], 1 }
0x125c   :  { %2699 = vsyncpa [#allocation3 + $0x1], 1 }
0x125d   :  { %2700 = vsyncpa [#allocation6], 1 }
0x125e   :  { %2701 = vsyncpa [#allocation9], 1 }
0x125f   :  { %2702 = vsyncpa [#allocation12], 1 }
0x1260   :  { %2703 = vsyncpa [#allocation15], 1 }
0x1261   :  { %2704 = vsyncpa [#allocation18], 1 }
0x1262   :  { %2705 = vsyncpa [#allocation4], 1 }
0x1263   :  { %2707 = vsyncpa [#allocation4 + $0x1], 1 }

</bundles_post_ra>
